<compile_context>
chip_gen: v7x
topology: tpu7x:2x2x1
jax: 0.10.0
libtpu: 0.0.40
codegen_flags: <defaults>
</compile_context>

<pallas_src>
import functools
import math

import jax
import jax.numpy as jnp
import numpy as np
from jax.experimental import pallas as pl
from jax.experimental.pallas import tpu as pltpu


def _attention_stem_kernel(xp_ref, w_ref, o_ref, qkv_s, *,
                           TH, S, W, Wpp, K, Cin, Cout, Ntot, pad):
    """One (batch, row-tile) grid step.

    xp_ref : (Hp*Wpp, Cin)  bf16  zero-padded input, spatially flattened
    w_ref  : (Cin, Ntot)    bf16  fused 1x1-conv weights [q | k | v_0 .. v_{K*K-1}]
    o_ref  : (TH, W, Cout)  f32   output row tile
    qkv_s  : (S, Wpp, Ntot) f32   VMEM scratch: fused conv outputs for the slab
    """
    t = pl.program_id(1)
    row0 = pl.multiple_of(t * TH * Wpp, Wpp)          # slab start in flattened rows

    # ---- all 1x1 convolutions as ONE MXU matmul over the row slab ----
    slab = xp_ref[pl.ds(row0, S * Wpp), :]            # (S*Wpp, Cin) bf16
    res = jnp.dot(slab, w_ref[...], preferred_element_type=jnp.float32)
    qkv_s[...] = res.reshape(S, Wpp, Ntot)            # layout-preserving (Wpp % 8 == 0)

    # q for this tile's output pixels = interior slice of the padded conv output
    q = qkv_s[pl.ds(pad, TH), pl.ds(pad, W), pl.ds(0, Cout)]        # (TH, W, Cout)

    # ---- single-pass online softmax over the K*K window offsets ----
    mx = jnp.full((TH, W, Cout), -jnp.inf, dtype=jnp.float32)
    den = jnp.zeros((TH, W, Cout), dtype=jnp.float32)
    acc = jnp.zeros((TH, W, Cout), dtype=jnp.float32)
    for i in range(K):
        for j in range(K):
            kk = i * K + j
            k_win = qkv_s[pl.ds(i, TH), pl.ds(j, W), pl.ds(Cout, Cout)]
            v_win = qkv_s[pl.ds(i, TH), pl.ds(j, W), pl.ds((2 + kk) * Cout, Cout)]
            s = q * k_win
            m_new = jnp.maximum(mx, s)
            scale = jnp.exp(mx - m_new)               # exp(-inf) = 0 on first offset
            p = jnp.exp(s - m_new)
            den = scale * den + p
            acc = scale * acc + p * v_win
            mx = m_new

    o_ref[...] = (acc * pl.reciprocal(den, approx=True)).astype(o_ref.dtype)


def attention_stem_forward(x_nchw, params, *, kernel_size, stride, padding, groups, m,
                           row_tile=8):
    """AttentionStem forward. Input/output are NCHW (PyTorch convention)."""
    # TODO(synk): only the stride=1 configuration is implemented (the PyTorch
    # module's [:height, :width] window slicing is only shape-consistent there).
    assert stride == 1
    B, Cin, H, W = x_nchw.shape
    wq, wk, wv = params["wq"], params["wk"], params["wv"]
    Cout = wq.shape[1]
    assert Cout % groups == 0
    K, M = kernel_size, m
    assert 2 * padding >= K - 1, "need enough padding for H x W full windows"
    Hp, Wp = H + 2 * padding, W + 2 * padding

    # --- tiny glue in plain JAX: positional-embedding mixture softmax over m ---
    logit_a = params["emb_mix"] @ params["emb_a"]               # (m, K)
    logit_b = params["emb_mix"] @ params["emb_b"]               # (m, K)
    emb = (logit_a[:, :, None] + logit_b[:, None, :]).reshape(M, K * K)
    emb_sm = jax.nn.softmax(emb, axis=0)                        # (m, K*K)

    # --- fold the mixture into the value weights, fuse every 1x1 conv weight ---
    wv_eff = jnp.einsum("mk,mcd->kcd", emb_sm, wv)              # (K*K, Cin, Cout)
    w_all = jnp.concatenate([wq[None], wk[None], wv_eff], axis=0)    # (2+K*K, Cin, Cout)
    w_all = jnp.transpose(w_all, (1, 0, 2)).reshape(Cin, (2 + K * K) * Cout)
    w_all = w_all.astype(jnp.bfloat16)
    Ntot = (2 + K * K) * Cout

    # --- NCHW -> NHWC, zero-pad; pad width to a multiple of 16 so the in-kernel
    #     reshape of the fused matmul output is layout preserving ---
    Wpp = ((Wp + 15) // 16) * 16
    x = jnp.transpose(x_nchw, (0, 2, 3, 1)).astype(jnp.float32)
    xp = jnp.pad(x, ((0, 0), (padding, padding),
                     (padding, padding + (Wpp - Wp)), (0, 0)))
    xp = xp.astype(jnp.bfloat16).reshape(B, Hp * Wpp, Cin)

    # --- row tiling: TH output rows per grid step, slab of S padded rows ---
    TH = max(1, min(row_tile, H))
    while H % TH:
        TH -= 1
    S = TH + max(K - 1, padding)          # rows needed for all K offsets + q interior
    grid = (B, H // TH)

    kernel = functools.partial(_attention_stem_kernel, TH=TH, S=S, W=W, Wpp=Wpp,
                               K=K, Cin=Cin, Cout=Cout, Ntot=Ntot, pad=padding)

    # scoped-VMEM / scheduling hints
    vmem_est = (S * Wpp * Ntot * 4 + 2 * Hp * Wpp * Cin * 2
                + 2 * TH * W * Cout * 4 + 2 * Cin * Ntot * 2)
    vmem_limit = int(min(64 * 2**20, max(32 * 2**20, 4 * vmem_est)))
    n_steps = B * (H // TH)
    cost = pl.CostEstimate(
        flops=2 * n_steps * S * Wpp * Cin * Ntot + 8 * B * H * W * Cout * K * K,
        transcendentals=2 * B * H * W * Cout * K * K,
        bytes_accessed=B * Hp * Wpp * Cin * 2 + B * H * W * Cout * 4 + Cin * Ntot * 2,
    )

    out_nhwc = pl.pallas_call(
        kernel,
        out_shape=jax.ShapeDtypeStruct((B, H, W, Cout), jnp.float32),
        grid=grid,
        in_specs=[
            # padded input: whole (tiny-channel) image per batch element, kept
            # resident across the row-tile axis (index map ignores t)
            pl.BlockSpec((None, Hp * Wpp, Cin), lambda b, t: (b, 0, 0)),
            pl.BlockSpec((Cin, Ntot), lambda b, t: (0, 0)),
        ],
        out_specs=pl.BlockSpec((None, TH, W, Cout), lambda b, t: (b, t, 0, 0)),
        scratch_shapes=[pltpu.VMEM((S, Wpp, Ntot), jnp.float32)],
        compiler_params=pltpu.CompilerParams(
            dimension_semantics=("parallel", "parallel"),
            vmem_limit_bytes=vmem_limit),
        cost_estimate=cost,
    )(xp, w_all)

    return jnp.transpose(out_nhwc, (0, 3, 1, 2))                # NHWC -> NCHW


def init_params(key, in_channels, out_channels, kernel_size, groups, m):
    """Deterministic synthetic params matching the torch module's shapes/inits."""
    cg = out_channels // groups
    ks = jax.random.split(key, 6)
    # kaiming_normal_(mode='fan_out', relu) on a 1x1 conv -> std = sqrt(2 / out_channels)
    std = math.sqrt(2.0 / out_channels)
    wq = (jax.random.normal(ks[0], (in_channels, out_channels)) * std).astype(jnp.float32)
    wk = (jax.random.normal(ks[1], (in_channels, out_channels)) * std).astype(jnp.float32)
    wv = (jax.random.normal(ks[2], (m, in_channels, out_channels)) * std).astype(jnp.float32)
    emb_a = jax.random.normal(ks[3], (cg, kernel_size), dtype=jnp.float32)
    emb_b = jax.random.normal(ks[4], (cg, kernel_size), dtype=jnp.float32)
    emb_mix = jax.random.normal(ks[5], (m, cg), dtype=jnp.float32)
    return dict(wq=wq, wk=wk, wv=wv, emb_a=emb_a, emb_b=emb_b, emb_mix=emb_mix)


def reference_forward(x_nchw, params, *, kernel_size, padding, m):
    """Pure-JAX f32 reference mirroring the PyTorch forward, for verification."""
    K = kernel_size
    B, Cin, H, W = x_nchw.shape
    wq, wk, wv = params["wq"], params["wk"], params["wv"]
    logit_a = params["emb_mix"] @ params["emb_a"]
    logit_b = params["emb_mix"] @ params["emb_b"]
    emb_sm = jax.nn.softmax(
        (logit_a[:, :, None] + logit_b[:, None, :]).reshape(m, K * K), axis=0)
    x = jnp.transpose(x_nchw, (0, 2, 3, 1)).astype(jnp.float32)
    xp = jnp.pad(x, ((0, 0), (padding, padding), (padding, padding), (0, 0)))
    q = jnp.einsum("bhwc,cd->bhwd", x, wq)
    kp = jnp.einsum("bhwc,cd->bhwd", xp, wk)
    vp = jnp.einsum("bhwc,mcd->mbhwd", xp, wv)
    logits, vals = [], []
    for i in range(K):
        for j in range(K):
            logits.append(q * kp[:, i:i + H, j:j + W, :])
            vals.append(jnp.einsum("m,mbhwd->bhwd", emb_sm[:, i * K + j],
                                   vp[:, :, i:i + H, j:j + W, :]))
    attn = jax.nn.softmax(jnp.stack(logits, axis=-1), axis=-1)
    out = jnp.sum(attn * jnp.stack(vals, axis=-1), axis=-1)
    return jnp.transpose(out, (0, 3, 1, 2))


if __name__ == "__main__":
    in_channels, out_channels = 4, 8
    kernel_size, stride, padding, groups, m = 3, 1, 1, 2, 4
    B, H, W = 2, 16, 16

    key = jax.random.PRNGKey(0)
    kparam, kx = jax.random.split(key)
    params = init_params(kparam, in_channels, out_channels, kernel_size, groups, m)
    x = jax.random.normal(kx, (B, in_channels, H, W), dtype=jnp.float32)

    out = attention_stem_forward(x, params, kernel_size=kernel_size, stride=stride,
                                 padding=padding, groups=groups, m=m)
    out = jax.block_until_ready(out)

    ref = reference_forward(x, params, kernel_size=kernel_size, padding=padding, m=m)
    assert out.shape == (B, out_channels, H, W)
    # Kernel uses bf16 MXU operands (per perf guidance); elementwise math is f32,
    # so tolerance is set at the usual bf16 level vs. the pure-f32 reference.
    np.testing.assert_allclose(np.asarray(out), np.asarray(ref), rtol=5e-2, atol=5e-2)
    print("KERNEL_OK")
</pallas_src>

<mosaic_0001>
module attributes {stable_mosaic.version = 11 : i64} {
  func.func @_attention_stem_kernel(%arg0: i32, %arg1: i32, %arg2: memref<1x576x4xbf16, #tpu.memory_space<vmem>>, %arg3: memref<4x88xbf16, #tpu.memory_space<vmem>>, %arg4: memref<1x8x16x8xf32, #tpu.memory_space<vmem>>, %arg5: memref<10x32x88xf32, #tpu.memory_space<vmem>>) attributes {dimension_semantics = [#tpu.dimension_semantics<parallel>, #tpu.dimension_semantics<parallel>], iteration_bounds = array<i64: 2, 2>, scalar_prefetch = 0 : i64, scratch_operands = 1 : i64, tpu.core_type = #tpu.core_type<tc>, window_params = [{transform_indices = @transform_0, window_bounds = array<i64: 1, 576, 4>}, {pipeline_mode = #tpu.pipeline_mode<synchronous>, transform_indices = @transform_1, window_bounds = array<i64: 4, 88>}, {transform_indices = @transform_2, window_bounds = array<i64: 1, 8, 16, 8>}]} {
    %c8_i32 = arith.constant 8 : i32
    %0 = arith.muli %arg1, %c8_i32 : i32
    %c32_i32 = arith.constant 32 : i32
    %1 = arith.muli %0, %c32_i32 : i32
    %2 = tpu.assume_multiple %1, 32 : i32
    %c0 = arith.constant 0 : index
    %3 = arith.index_cast %2 : i32 to index
    %c0_0 = arith.constant 0 : index
    %4 = vector.load %arg2[%c0, %3, %c0_0] : memref<1x576x4xbf16, #tpu.memory_space<vmem>>, vector<1x320x4xbf16>
    %5 = vector.shape_cast %4 : vector<1x320x4xbf16> to vector<320x4xbf16>
    %c0_1 = arith.constant 0 : index
    %c0_2 = arith.constant 0 : index
    %6 = vector.load %arg3[%c0_1, %c0_2] : memref<4x88xbf16, #tpu.memory_space<vmem>>, vector<4x88xbf16>
    %cst = arith.constant dense<0.000000e+00> : vector<320x88xf32>
    %7 = tpu.matmul %5, %6, %cst {dimension_numbers = #tpu.dot_dimension_numbers<[1], [0], [0], [1], [0, 0, 1, 1], [], []>} : vector<320x4xbf16>, vector<4x88xbf16>, vector<320x88xf32> -> vector<320x88xf32>
    %8 = vector.shape_cast %7 : vector<320x88xf32> to vector<10x32x88xf32>
    %c0_3 = arith.constant 0 : index
    %c0_4 = arith.constant 0 : index
    %c0_5 = arith.constant 0 : index
    %9 = vector.load %arg5[%c0_3, %c0_4, %c0_5] : memref<10x32x88xf32, #tpu.memory_space<vmem>>, vector<10x32x88xf32>
    tpu.vector_store %arg5[%c0_3, %c0_4, %c0_5], %8 {strides = array<i32>} : memref<10x32x88xf32, #tpu.memory_space<vmem>>, vector<10x32x88xf32>,
    %c1 = arith.constant 1 : index
    %c1_6 = arith.constant 1 : index
    %c0_7 = arith.constant 0 : index
    %10 = vector.load %arg5[%c1, %c1_6, %c0_7] : memref<10x32x88xf32, #tpu.memory_space<vmem>>, vector<8x16x8xf32>
    %cst_8 = arith.constant 0xFF800000 : f32
    %11 = vector.broadcast %cst_8 : f32 to vector<8x16x8xf32>
    %cst_9 = arith.constant 0.000000e+00 : f32
    %12 = vector.broadcast %cst_9 : f32 to vector<8x16x8xf32>
    %cst_10 = arith.constant 0.000000e+00 : f32
    %13 = vector.broadcast %cst_10 : f32 to vector<8x16x8xf32>
    %c0_11 = arith.constant 0 : index
    %c0_12 = arith.constant 0 : index
    %c8 = arith.constant 8 : index
    %14 = vector.load %arg5[%c0_11, %c0_12, %c8] : memref<10x32x88xf32, #tpu.memory_space<vmem>>, vector<8x16x8xf32>
    %c0_13 = arith.constant 0 : index
    %c0_14 = arith.constant 0 : index
    %c16 = arith.constant 16 : index
    %15 = vector.load %arg5[%c0_13, %c0_14, %c16] : memref<10x32x88xf32, #tpu.memory_space<vmem>>, vector<8x16x8xf32>
    %16 = arith.mulf %10, %14 : vector<8x16x8xf32>
    %17 = arith.maximumf %11, %16 : vector<8x16x8xf32>
    %18 = arith.subf %11, %17 : vector<8x16x8xf32>
    %19 = math.exp %18 : vector<8x16x8xf32>
    %20 = arith.subf %16, %17 : vector<8x16x8xf32>
    %21 = math.exp %20 : vector<8x16x8xf32>
    %22 = arith.mulf %19, %12 : vector<8x16x8xf32>
    %23 = arith.addf %22, %21 : vector<8x16x8xf32>
    %24 = arith.mulf %19, %13 : vector<8x16x8xf32>
    %25 = arith.mulf %21, %15 : vector<8x16x8xf32>
    %26 = arith.addf %24, %25 : vector<8x16x8xf32>
    %c0_15 = arith.constant 0 : index
    %c1_16 = arith.constant 1 : index
    %c8_17 = arith.constant 8 : index
    %27 = vector.load %arg5[%c0_15, %c1_16, %c8_17] : memref<10x32x88xf32, #tpu.memory_space<vmem>>, vector<8x16x8xf32>
    %c0_18 = arith.constant 0 : index
    %c1_19 = arith.constant 1 : index
    %c24 = arith.constant 24 : index
    %28 = vector.load %arg5[%c0_18, %c1_19, %c24] : memref<10x32x88xf32, #tpu.memory_space<vmem>>, vector<8x16x8xf32>
    %29 = arith.mulf %10, %27 : vector<8x16x8xf32>
    %30 = arith.maximumf %17, %29 : vector<8x16x8xf32>
    %31 = arith.subf %17, %30 : vector<8x16x8xf32>
    %32 = math.exp %31 : vector<8x16x8xf32>
    %33 = arith.subf %29, %30 : vector<8x16x8xf32>
    %34 = math.exp %33 : vector<8x16x8xf32>
    %35 = arith.mulf %32, %23 : vector<8x16x8xf32>
    %36 = arith.addf %35, %34 : vector<8x16x8xf32>
    %37 = arith.mulf %32, %26 : vector<8x16x8xf32>
    %38 = arith.mulf %34, %28 : vector<8x16x8xf32>
    %39 = arith.addf %37, %38 : vector<8x16x8xf32>
    %c0_20 = arith.constant 0 : index
    %c2 = arith.constant 2 : index
    %c8_21 = arith.constant 8 : index
    %40 = vector.load %arg5[%c0_20, %c2, %c8_21] : memref<10x32x88xf32, #tpu.memory_space<vmem>>, vector<8x16x8xf32>
    %c0_22 = arith.constant 0 : index
    %c2_23 = arith.constant 2 : index
    %c32 = arith.constant 32 : index
    %41 = vector.load %arg5[%c0_22, %c2_23, %c32] : memref<10x32x88xf32, #tpu.memory_space<vmem>>, vector<8x16x8xf32>
    %42 = arith.mulf %10, %40 : vector<8x16x8xf32>
    %43 = arith.maximumf %30, %42 : vector<8x16x8xf32>
    %44 = arith.subf %30, %43 : vector<8x16x8xf32>
    %45 = math.exp %44 : vector<8x16x8xf32>
    %46 = arith.subf %42, %43 : vector<8x16x8xf32>
    %47 = math.exp %46 : vector<8x16x8xf32>
    %48 = arith.mulf %45, %36 : vector<8x16x8xf32>
    %49 = arith.addf %48, %47 : vector<8x16x8xf32>
    %50 = arith.mulf %45, %39 : vector<8x16x8xf32>
    %51 = arith.mulf %47, %41 : vector<8x16x8xf32>
    %52 = arith.addf %50, %51 : vector<8x16x8xf32>
    %c1_24 = arith.constant 1 : index
    %c0_25 = arith.constant 0 : index
    %c8_26 = arith.constant 8 : index
    %53 = vector.load %arg5[%c1_24, %c0_25, %c8_26] : memref<10x32x88xf32, #tpu.memory_space<vmem>>, vector<8x16x8xf32>
    %c1_27 = arith.constant 1 : index
    %c0_28 = arith.constant 0 : index
    %c40 = arith.constant 40 : index
    %54 = vector.load %arg5[%c1_27, %c0_28, %c40] : memref<10x32x88xf32, #tpu.memory_space<vmem>>, vector<8x16x8xf32>
    %55 = arith.mulf %10, %53 : vector<8x16x8xf32>
    %56 = arith.maximumf %43, %55 : vector<8x16x8xf32>
    %57 = arith.subf %43, %56 : vector<8x16x8xf32>
    %58 = math.exp %57 : vector<8x16x8xf32>
    %59 = arith.subf %55, %56 : vector<8x16x8xf32>
    %60 = math.exp %59 : vector<8x16x8xf32>
    %61 = arith.mulf %58, %49 : vector<8x16x8xf32>
    %62 = arith.addf %61, %60 : vector<8x16x8xf32>
    %63 = arith.mulf %58, %52 : vector<8x16x8xf32>
    %64 = arith.mulf %60, %54 : vector<8x16x8xf32>
    %65 = arith.addf %63, %64 : vector<8x16x8xf32>
    %c1_29 = arith.constant 1 : index
    %c1_30 = arith.constant 1 : index
    %c8_31 = arith.constant 8 : index
    %66 = vector.load %arg5[%c1_29, %c1_30, %c8_31] : memref<10x32x88xf32, #tpu.memory_space<vmem>>, vector<8x16x8xf32>
    %c1_32 = arith.constant 1 : index
    %c1_33 = arith.constant 1 : index
    %c48 = arith.constant 48 : index
    %67 = vector.load %arg5[%c1_32, %c1_33, %c48] : memref<10x32x88xf32, #tpu.memory_space<vmem>>, vector<8x16x8xf32>
    %68 = arith.mulf %10, %66 : vector<8x16x8xf32>
    %69 = arith.maximumf %56, %68 : vector<8x16x8xf32>
    %70 = arith.subf %56, %69 : vector<8x16x8xf32>
    %71 = math.exp %70 : vector<8x16x8xf32>
    %72 = arith.subf %68, %69 : vector<8x16x8xf32>
    %73 = math.exp %72 : vector<8x16x8xf32>
    %74 = arith.mulf %71, %62 : vector<8x16x8xf32>
    %75 = arith.addf %74, %73 : vector<8x16x8xf32>
    %76 = arith.mulf %71, %65 : vector<8x16x8xf32>
    %77 = arith.mulf %73, %67 : vector<8x16x8xf32>
    %78 = arith.addf %76, %77 : vector<8x16x8xf32>
    %c1_34 = arith.constant 1 : index
    %c2_35 = arith.constant 2 : index
    %c8_36 = arith.constant 8 : index
    %79 = vector.load %arg5[%c1_34, %c2_35, %c8_36] : memref<10x32x88xf32, #tpu.memory_space<vmem>>, vector<8x16x8xf32>
    %c1_37 = arith.constant 1 : index
    %c2_38 = arith.constant 2 : index
    %c56 = arith.constant 56 : index
    %80 = vector.load %arg5[%c1_37, %c2_38, %c56] : memref<10x32x88xf32, #tpu.memory_space<vmem>>, vector<8x16x8xf32>
    %81 = arith.mulf %10, %79 : vector<8x16x8xf32>
    %82 = arith.maximumf %69, %81 : vector<8x16x8xf32>
    %83 = arith.subf %69, %82 : vector<8x16x8xf32>
    %84 = math.exp %83 : vector<8x16x8xf32>
    %85 = arith.subf %81, %82 : vector<8x16x8xf32>
    %86 = math.exp %85 : vector<8x16x8xf32>
    %87 = arith.mulf %84, %75 : vector<8x16x8xf32>
    %88 = arith.addf %87, %86 : vector<8x16x8xf32>
    %89 = arith.mulf %84, %78 : vector<8x16x8xf32>
    %90 = arith.mulf %86, %80 : vector<8x16x8xf32>
    %91 = arith.addf %89, %90 : vector<8x16x8xf32>
    %c2_39 = arith.constant 2 : index
    %c0_40 = arith.constant 0 : index
    %c8_41 = arith.constant 8 : index
    %92 = vector.load %arg5[%c2_39, %c0_40, %c8_41] : memref<10x32x88xf32, #tpu.memory_space<vmem>>, vector<8x16x8xf32>
    %c2_42 = arith.constant 2 : index
    %c0_43 = arith.constant 0 : index
    %c64 = arith.constant 64 : index
    %93 = vector.load %arg5[%c2_42, %c0_43, %c64] : memref<10x32x88xf32, #tpu.memory_space<vmem>>, vector<8x16x8xf32>
    %94 = arith.mulf %10, %92 : vector<8x16x8xf32>
    %95 = arith.maximumf %82, %94 : vector<8x16x8xf32>
    %96 = arith.subf %82, %95 : vector<8x16x8xf32>
    %97 = math.exp %96 : vector<8x16x8xf32>
    %98 = arith.subf %94, %95 : vector<8x16x8xf32>
    %99 = math.exp %98 : vector<8x16x8xf32>
    %100 = arith.mulf %97, %88 : vector<8x16x8xf32>
    %101 = arith.addf %100, %99 : vector<8x16x8xf32>
    %102 = arith.mulf %97, %91 : vector<8x16x8xf32>
    %103 = arith.mulf %99, %93 : vector<8x16x8xf32>
    %104 = arith.addf %102, %103 : vector<8x16x8xf32>
    %c2_44 = arith.constant 2 : index
    %c1_45 = arith.constant 1 : index
    %c8_46 = arith.constant 8 : index
    %105 = vector.load %arg5[%c2_44, %c1_45, %c8_46] : memref<10x32x88xf32, #tpu.memory_space<vmem>>, vector<8x16x8xf32>
    %c2_47 = arith.constant 2 : index
    %c1_48 = arith.constant 1 : index
    %c72 = arith.constant 72 : index
    %106 = vector.load %arg5[%c2_47, %c1_48, %c72] : memref<10x32x88xf32, #tpu.memory_space<vmem>>, vector<8x16x8xf32>
    %107 = arith.mulf %10, %105 : vector<8x16x8xf32>
    %108 = arith.maximumf %95, %107 : vector<8x16x8xf32>
    %109 = arith.subf %95, %108 : vector<8x16x8xf32>
    %110 = math.exp %109 : vector<8x16x8xf32>
    %111 = arith.subf %107, %108 : vector<8x16x8xf32>
    %112 = math.exp %111 : vector<8x16x8xf32>
    %113 = arith.mulf %110, %101 : vector<8x16x8xf32>
    %114 = arith.addf %113, %112 : vector<8x16x8xf32>
    %115 = arith.mulf %110, %104 : vector<8x16x8xf32>
    %116 = arith.mulf %112, %106 : vector<8x16x8xf32>
    %117 = arith.addf %115, %116 : vector<8x16x8xf32>
    %c2_49 = arith.constant 2 : index
    %c2_50 = arith.constant 2 : index
    %c8_51 = arith.constant 8 : index
    %118 = vector.load %arg5[%c2_49, %c2_50, %c8_51] : memref<10x32x88xf32, #tpu.memory_space<vmem>>, vector<8x16x8xf32>
    %c2_52 = arith.constant 2 : index
    %c2_53 = arith.constant 2 : index
    %c80 = arith.constant 80 : index
    %119 = vector.load %arg5[%c2_52, %c2_53, %c80] : memref<10x32x88xf32, #tpu.memory_space<vmem>>, vector<8x16x8xf32>
    %120 = arith.mulf %10, %118 : vector<8x16x8xf32>
    %121 = arith.maximumf %108, %120 : vector<8x16x8xf32>
    %122 = arith.subf %108, %121 : vector<8x16x8xf32>
    %123 = math.exp %122 : vector<8x16x8xf32>
    %124 = arith.subf %120, %121 : vector<8x16x8xf32>
    %125 = math.exp %124 : vector<8x16x8xf32>
    %126 = arith.mulf %123, %114 : vector<8x16x8xf32>
    %127 = arith.addf %126, %125 : vector<8x16x8xf32>
    %128 = arith.mulf %123, %117 : vector<8x16x8xf32>
    %129 = arith.mulf %125, %119 : vector<8x16x8xf32>
    %130 = arith.addf %128, %129 : vector<8x16x8xf32>
    %131 = tpu.reciprocal %127 {approx = true} : vector<8x16x8xf32> -> vector<8x16x8xf32>
    %132 = arith.mulf %130, %131 : vector<8x16x8xf32>
    %c0_54 = arith.constant 0 : index
    %c0_55 = arith.constant 0 : index
    %c0_56 = arith.constant 0 : index
    %c0_57 = arith.constant 0 : index
    %133 = vector.load %arg4[%c0_54, %c0_55, %c0_56, %c0_57] : memref<1x8x16x8xf32, #tpu.memory_space<vmem>>, vector<1x8x16x8xf32>
    %134 = vector.shape_cast %133 : vector<1x8x16x8xf32> to vector<8x16x8xf32>
    %135 = vector.shape_cast %132 : vector<8x16x8xf32> to vector<1x8x16x8xf32>
    tpu.vector_store %arg4[%c0_54, %c0_55, %c0_56, %c0_57], %135 {strides = array<i32>} : memref<1x8x16x8xf32, #tpu.memory_space<vmem>>, vector<1x8x16x8xf32>,
    return
  }
  func.func @transform_0(%arg0: i32, %arg1: i32) -> (i32, i32, i32) {
    %c0_i32 = arith.constant 0 : i32
    %c0_i32_0 = arith.constant 0 : i32
    %c0_i32_1 = arith.constant 0 : i32
    return %arg0, %c0_i32, %c0_i32_0 : i32, i32, i32
  }
  func.func @transform_1(%arg0: i32, %arg1: i32) -> (i32, i32) {
    %c0_i32 = arith.constant 0 : i32
    %c0_i32_0 = arith.constant 0 : i32
    %c0_i32_1 = arith.constant 0 : i32
    return %c0_i32, %c0_i32_0 : i32, i32
  }
  func.func @transform_2(%arg0: i32, %arg1: i32) -> (i32, i32, i32, i32) {
    %c0_i32 = arith.constant 0 : i32
    %c0_i32_0 = arith.constant 0 : i32
    %c0_i32_1 = arith.constant 0 : i32
    return %arg0, %arg1, %c0_i32, %c0_i32_0 : i32, i32, i32, i32
  }
}

</mosaic_0001>

<bundles_post_ra>
// kernel: tpu_custom_call.1
= control target key start
LH: loop header
LB: loop body
LE: loop exit
PB: predicated region body
PF: predicated region fallthrough
CT: control target
= control target key end

     0   :  { %s4672_s9 = smov 0   ;;  %s4674_s10 = smov 0   ;;  %s8704_s0 = inlined_call_operand.vmem [shape: bf16[2,576,4], index: 0, kind: input, shape index: {}]   ;;  %s8705_s1 = inlined_call_operand.vmem [shape: bf16[4,88], index: 1, kind: input, shape index: {}]   ;;  %s8706_s2 = inlined_call_operand.vmem [shape: f32[2,16,16,8], index: 2, kind: output, shape index: {}]  }
   0x1   :  { %s4676_s11 = smov 0   ;;  %s4678_s12 = smov 0  }
   0x2   :  { %s4680_s13 = smov 0  }
   0x3 LB: > { %s21_s14 = sadd.s32 1, %s4637_s11  ;;  %s24_s15 = sadd.s32 1, %s4641_s12  ;;  %s4645_s13 = sphi %s4680_s13, %s12_s13   ;;  %s4641_s12 = sphi %s4678_s12, %s9566_s12   ;;  %s4637_s11 = sphi %s4676_s11, %s9565_s11   ;;  %s4633_s10 = sphi %s4674_s10, %s9564_s10   ;;  %s4629_s9 = sphi %s4672_s9, %s9563_s9  }
   0x4   : > { %p22_p0 = scmp.ge.s32.totalorder %s21_s14, 2  ;;  %p3754_p1 = scmp.ge.s32.totalorder %s4645_s13, 1 }
   0x5   : > { %p126_p2 = scmp.lt.s32.totalorder %s4645_s13, 5 }
   0x6   : > { %s9568_s14 = smov (%p22_p0, %s21_s14), 0  ;;  %s9570_s15 = smov (!%p22_p0, %s24_s15), %s4641_s12 }
   0x7   : > { %p127_p3 = pnand %p3754_p1, %p126_p2  ;;  %p26_p4 = scmp.ge.s32.totalorder %s9570_s15, 2 }
   0x9   : > { %s9572_s15 = smov (%p26_p4, %s9570_s15), 0  ;;  %130 = sbr.rel (%p127_p3) target bundleno = 944 (0x3b0), region = 28 }
  0x10   : > { %v215_v0 = vld [vmem:[%s8705_s1] sm:$0x3]  ;;  %vm377_vm0 = vcmask 1041408   ;;  %p153_p5 = scmp.lt.s32.totalorder %s4633_s10, 1  ;;  %s3760_s18 = sshll.u32 %s4629_s9, 8  ;;  %vm316_vm1 = vcmask 31744  }
  0x11   : > { %3869 = vmatprep.subr.msk.bf16.mxu0 %vm377_vm0, %v215_v0  ;;  %3870 = vmatprep.subr.msk.bf16.mxu1 %vm377_vm0, %v215_v0  ;;  %v379_v1 = vsel %vm377_vm0, %v215_v0, 0  ;;  %s171_s19 = sshra.s32 %s3760_s18, 3  ;;  %vm574_vm2 = vcmask 719872   ;;  %s4647_s26 = smov 120   ;;  %vm3641_vm3 = vcmask 64512  }
  0x12   : > { %3826 = vmatpush3.bf16.msra.mxu0 %v379_v1  ;;  %3868 = vmatpush3.bf16.msra.mxu1 %v379_v1  ;;  %s9574_s10 = smov (!%p153_p5, %s4633_s10), 1  ;;  %s3761_s21 = sshll.u32 %s171_s19, 2 }
  0x13   : > { %s3871_s20 = smul.u32 288, %s9574_s10  ;;  %s4648_s27 = smov 112  }
  0x14   : > { %s4649_s28 = smov 88   ;;  %s4650_s29 = smov 104  }
  0x15   : > { %s157_s24 = scalar_lea.vmem %s8704_s0, %s3871_s20  ;;  %s4651_s30 = smov 96  }
  0x16   : > { %s4714_s25 = scalar_lea.vmem %s157_s24, %s3761_s21  ;;  %s4652_s3 = smov 80  }
  0x17   : > { %v3922_v2 = vld [vmem:[%s4714_s25] sm:$0xff]   ;;  %v3923_v3 = vld [vmem:[%s4714_s25 + $0x50] sm:$0xff]   ;;  %v3924_v4 = vld [vmem:[%s4714_s25 + $0x8] sm:$0xff]   ;;  %s4653_s4 = smov 72   ;;  %s4654_s5 = smov 64  }
  0x18   : > { %3827 = vmatprep.mubr.msk.bf16.mxu0 %vm316_vm1, %v3922_v2  ;;  %3847 = vmatprep.mubr.msk.bf16.mxu1 %vm316_vm1, %v3923_v3  ;;  %v3925_v5 = vld [vmem:[%s4714_s25 + $0x58] sm:$0xff]   ;;  %v3926_v6 = vld [vmem:[%s4714_s25 + $0x10] sm:$0xff]   ;;  %v3928_v7 = vld [vmem:[%s4714_s25 + $0x60] sm:$0xff]   ;;  %s4655_s6 = smov 56   ;;  %s4656_s7 = smov 48  }
  0x19   : > { %3828 = vmatmul.mubr.msk.bf16.vlgmr.msra.gmra.mrb[0].mxu0 %vm316_vm1, %v3924_v4  ;;  %3848 = vmatmul.mubr.msk.bf16.vlgmr.msra.gmra.mrb[0].mxu1 %vm316_vm1, %v3925_v5  ;;  %v3927_v8 = vld [vmem:[%s4714_s25 + $0x18] sm:$0xff]   ;;  %v3929_v9 = vld [vmem:[%s4714_s25 + $0x68] sm:$0xff]   ;;  %v3930_v10 = vld [vmem:[%s4714_s25 + $0x20] sm:$0xff]   ;;  %s3756_s8 = sshll.u32 %s4629_s9, 3  ;;  %s3758_s17 = sshll.u32 %s9574_s10, 5 }
  0x1a   : > { %3831 = vmatprep.mubr.msk.bf16.mxu0 %vm316_vm1, %v3926_v6  ;;  %3851 = vmatprep.mubr.msk.bf16.mxu1 %vm316_vm1, %v3928_v7  ;;  %v3932_v11 = vld [vmem:[%s4714_s25 + $0x70] sm:$0xff]   ;;  %v3931_v12 = vld [vmem:[%s4714_s25 + $0x28] sm:$0xff]   ;;  %v3933_v13 = vld [vmem:[%s4714_s25 + $0x78] sm:$0xff]   ;;  %p8480_p6 = scmp.lt.s32.totalorder %s3756_s8, 15 }
  0x1b   : > { %v3934_v14 = vld [vmem:[%s4714_s25 + $0x30] sm:$0xff]   ;;  %v3936_v15 = vld [vmem:[%s4714_s25 + $0x80] sm:$0xff]   ;;  %v3935_v16 = vld [vmem:[%s4714_s25 + $0x38] sm:$0xff]  }
  0x1c   : > { %v3937_v17 = vld [vmem:[%s4714_s25 + $0x88] sm:$0xff]   ;;  %v3938_v18 = vld [vmem:[%s4714_s25 + $0x40] sm:$0xff]   ;;  %v3940_v63 = vld [vmem:[%s4714_s25 + $0x90] sm:$0xff]   ;;  %s9576_s8 = smov (!%p8480_p6, %s3756_s8), 15 }
  0x1d   : > { %v3939_v19 = vld [vmem:[%s4714_s25 + $0x48] sm:$0xff]   ;;  %v3941_v1 = vld [vmem:[%s4714_s25 + $0x98] sm:$0xff]   ;;  %s3757_s9 = sshll.u32 %s9576_s8, 1 }
  0x1e   : > { %s8571_s10 = sadd.s32 %s3758_s17, %s3757_s9 }
  0x1f   : > { %s3759_s18 = sshll.u32 %s8571_s10, 3 }
  0x20   : > { %s8601_s21 = scalar_lea.vmem %s8706_s2, %s3759_s18 }
  0x21   : > { %3832 = vmatmul.mubr.msk.bf16.gmra.mrb[4].mxu0 %vm316_vm1, %v3927_v8  ;;  %3852 = vmatmul.mubr.msk.bf16.gmra.mrb[4].mxu1 %vm316_vm1, %v3929_v9 }
  0x22   : > { %3835 = vmatprep.mubr.msk.bf16.mxu0 %vm316_vm1, %v3930_v10  ;;  %3855 = vmatprep.mubr.msk.bf16.mxu1 %vm316_vm1, %v3932_v11 }
  0x29   : > { %3836 = vmatmul.mubr.msk.bf16.gmra.mrb[8].mxu0 %vm316_vm1, %v3931_v12  ;;  %3856 = vmatmul.mubr.msk.bf16.gmra.mrb[8].mxu1 %vm316_vm1, %v3933_v13 }
  0x2a   : > { %3839 = vmatprep.mubr.msk.bf16.mxu0 %vm316_vm1, %v3934_v14  ;;  %3859 = vmatprep.mubr.msk.bf16.mxu1 %vm316_vm1, %v3936_v15 }
  0x31   : > { %3840 = vmatmul.mubr.msk.bf16.gmra.mrb[12].mxu0 %vm316_vm1, %v3935_v16  ;;  %3860 = vmatmul.mubr.msk.bf16.gmra.mrb[12].mxu1 %vm316_vm1, %v3937_v17 }
  0x32   : > { %3843 = vmatprep.mubr.msk.bf16.mxu0 %vm316_vm1, %v3938_v18  ;;  %3863 = vmatprep.mubr.msk.bf16.mxu1 %vm316_vm1, %v3940_v63 }
  0x39   : > { %3844 = vmatmul.mubr.msk.bf16.gmra.mrb[16].mxu0 %vm316_vm1, %v3939_v19  ;;  %3864 = vmatmul.mubr.msk.bf16.gmra.mrb[16].mxu1 %vm316_vm1, %v3941_v1 }
  0xec   : > { %v3829_v20 = vpop.f32.mrb[0].mxu0  ;;  %v3849_v21 = vpop.f32.mrb[0].mxu1 }
  0xed   : > { %577 = vst.msk [vmem:[#allocation2 + $0x10] sm:$0xff] %vm574_vm2, %v3829_v20  ;;  %v415_v22 = vpop.f32.mrb[1].mxu0  ;;  %597 = vst.msk [vmem:[#allocation2 + $0xb0] sm:$0xff] %vm574_vm2, %v3849_v21  ;;  %v495_v23 = vpop.f32.mrb[1].mxu1 }
  0xee   : > { %575 = vst.msk [vmem:[#allocation2] sm:$0xff] %vm574_vm2, %v415_v22  ;;  %v3830_v24 = vpop.f32.mrb[2].mxu0  ;;  %595 = vst.msk [vmem:[#allocation2 + $0xa0] sm:$0xff] %vm574_vm2, %v495_v23  ;;  %v3850_v25 = vpop.f32.mrb[2].mxu1 }
  0xef   : > { %v418_v26 = vpop.f32.mrb[3].mxu0  ;;  %v498_v27 = vpop.f32.mrb[3].mxu1 }
  0xf0   : > { %576 = vst.msk [vmem:[#allocation2 + $0x8] sm:$0xff] %vm574_vm2, %v418_v26  ;;  %596 = vst.msk [vmem:[#allocation2 + $0xa8] sm:$0xff] %vm574_vm2, %v498_v27 }
  0xf4   : > { %v3833_v28 = vpop.f32.mrb[4].mxu0  ;;  %v3853_v31 = vpop.f32.mrb[4].mxu1 }
  0xf5   : > { %v632_v29 = vld [vmem:[#allocation2] sm:$0xff]  ;;  %581 = vst.msk [vmem:[#allocation2 + $0x30] sm:$0xff] %vm574_vm2, %v3833_v28  ;;  %v431_v30 = vpop.f32.mrb[5].mxu0  ;;  %601 = vst.msk [vmem:[#allocation2 + $0xd0] sm:$0xff] %vm574_vm2, %v3853_v31  ;;  %v511_v33 = vpop.f32.mrb[5].mxu1 }
  0xf6   : > { %664 = vrot.lane.b32.xlu0 %v632_v29, %s4647_s26  ;;  %579 = vst.msk [vmem:[#allocation2 + $0x20] sm:$0xff] %vm574_vm2, %v431_v30  ;;  %v3834_v32 = vpop.f32.mrb[6].mxu0  ;;  %599 = vst.msk [vmem:[#allocation2 + $0xc0] sm:$0xff] %vm574_vm2, %v511_v33  ;;  %v3854_v35 = vpop.f32.mrb[6].mxu1  ;;  %v642_v38 = vld [vmem:[#allocation2 + $0xa0] sm:$0xff] }
  0xf7   : > { %v434_v34 = vpop.f32.mrb[7].mxu0  ;;  %v643_v36 = vld [vmem:[#allocation2 + $0xa8] sm:$0xff]  ;;  %v514_v37 = vpop.f32.mrb[7].mxu1 }
  0xf8   : > { %580 = vst.msk [vmem:[#allocation2 + $0x28] sm:$0xff] %vm574_vm2, %v434_v34  ;;  %686 = vrot.lane.b32.xlu1 %v643_v36, %s4647_s26  ;;  %600 = vst.msk [vmem:[#allocation2 + $0xc8] sm:$0xff] %vm574_vm2, %v514_v37  ;;  %v633_v39 = vld [vmem:[#allocation2 + $0x8] sm:$0xff] }
  0xf9   : > { %v937_v48 = vld [vmem:[#allocation2 + $0x9] sm:$0xff]  ;;  %v936_v50 = vld [vmem:[#allocation2 + $0x1] sm:$0xff] }
  0xfa   : > { %684 = vrot.lane.b32.xlu0 %v642_v38, %s4647_s26  ;;  %v4779_v49 = vld [vmem:[#allocation2 + $0xa9] sm:$0xff]  ;;  %v4790_v52 = vld [vmem:[#allocation2 + $0xa1] sm:$0xff] }
  0xfb   : > { %v1273_v51 = vld [vmem:[#allocation2 + $0xa] sm:$0xff]  ;;  %v1272_v54 = vld [vmem:[#allocation2 + $0x2] sm:$0xff] }
  0xfc   : > { %v3837_v40 = vpop.f32.mrb[8].mxu0  ;;  %858 = vrot.lane.b32.xlu1 %v633_v39, %s4648_s27  ;;  %v3857_v42 = vpop.f32.mrb[8].mxu1  ;;  %v1283_v53 = vld [vmem:[#allocation2 + $0xaa] sm:$0xff]  ;;  %v1282_v55 = vld [vmem:[#allocation2 + $0xa2] sm:$0xff] }
  0xfd   : > { %585 = vst.msk [vmem:[#allocation2 + $0x50] sm:$0xff] %vm574_vm2, %v3837_v40  ;;  %v447_v41 = vpop.f32.mrb[9].mxu0  ;;  %605 = vst.msk [vmem:[#allocation2 + $0xf0] sm:$0xff] %vm574_vm2, %v3857_v42  ;;  %v527_v44 = vpop.f32.mrb[9].mxu1  ;;  %v634_v56 = vld [vmem:[#allocation2 + $0x20] sm:$0xff] }
  0xfe   : > { %856 = vrot.lane.b32.xlu0 %v632_v29, %s4648_s27  ;;  %583 = vst.msk [vmem:[#allocation2 + $0x40] sm:$0xff] %vm574_vm2, %v447_v41  ;;  %v3838_v43 = vpop.f32.mrb[10].mxu0  ;;  %603 = vst.msk [vmem:[#allocation2 + $0xe0] sm:$0xff] %vm574_vm2, %v527_v44  ;;  %v3858_v46 = vpop.f32.mrb[10].mxu1  ;;  %v644_v59 = vld [vmem:[#allocation2 + $0xc0] sm:$0xff] }
  0xff   : > { %v450_v45 = vpop.f32.mrb[11].mxu0  ;;  %v530_v47 = vpop.f32.mrb[11].mxu1  ;;  %v635_v61 = vld [vmem:[#allocation2 + $0x28] sm:$0xff] }
 0x100   : > { %584 = vst.msk [vmem:[#allocation2 + $0x48] sm:$0xff] %vm574_vm2, %v450_v45  ;;  %878 = vrot.lane.b32.xlu1 %v643_v36, %s4648_s27  ;;  %604 = vst.msk [vmem:[#allocation2 + $0xe8] sm:$0xff] %vm574_vm2, %v530_v47  ;;  %v645_v0 = vld [vmem:[#allocation2 + $0xc8] sm:$0xff] }
 0x101   : > { %v4825_v6 = vld [vmem:[#allocation2 + $0x29] sm:$0xff]  ;;  %v4840_v8 = vld [vmem:[#allocation2 + $0x21] sm:$0xff] }
 0x102   : > { %876 = vrot.lane.b32.xlu0 %v642_v38, %s4648_s27  ;;  %v4830_v7 = vld [vmem:[#allocation2 + $0xc9] sm:$0xff]  ;;  %v4845_v10 = vld [vmem:[#allocation2 + $0xc1] sm:$0xff] }
 0x103   : > { %v1275_v9 = vld [vmem:[#allocation2 + $0x2a] sm:$0xff]  ;;  %v1274_v14 = vld [vmem:[#allocation2 + $0x22] sm:$0xff] }
 0x104   : > { %970 = vrot.lane.b32.xlu1 %v937_v48, %s4647_s26  ;;  %v3841_v57 = vpop.f32.mrb[12].mxu0  ;;  %v3861_v2 = vpop.f32.mrb[12].mxu1  ;;  %v1285_v11 = vld [vmem:[#allocation2 + $0xca] sm:$0xff]  ;;  %v1284_v17 = vld [vmem:[#allocation2 + $0xc2] sm:$0xff] }
 0x105   : > { %589 = vst.msk [vmem:[#allocation2 + $0x70] sm:$0xff] %vm574_vm2, %v3841_v57  ;;  %v463_v58 = vpop.f32.mrb[13].mxu0  ;;  %609 = vst.msk [vmem:[#allocation2 + $0x110] sm:$0xff] %vm574_vm2, %v3861_v2  ;;  %v543_v3 = vpop.f32.mrb[13].mxu1  ;;  %v636_v22 = vld [vmem:[#allocation2 + $0x40] sm:$0xff] }
 0x106   : > { %1656 = vrot.lane.b32.xlu0 %v642_v38, %s4647_s26  ;;  %587 = vst.msk [vmem:[#allocation2 + $0x60] sm:$0xff] %vm574_vm2, %v463_v58  ;;  %v3842_v60 = vpop.f32.mrb[14].mxu0  ;;  %607 = vst.msk [vmem:[#allocation2 + $0x100] sm:$0xff] %vm574_vm2, %v543_v3  ;;  %v3862_v4 = vpop.f32.mrb[14].mxu1  ;;  %v646_v25 = vld [vmem:[#allocation2 + $0xe0] sm:$0xff] }
 0x107   : > { %v466_v62 = vpop.f32.mrb[15].mxu0  ;;  %v546_v5 = vpop.f32.mrb[15].mxu1  ;;  %v4886_v27 = vld [vmem:[#allocation2 + $0x48] sm:$0xff] }
 0x108   : > { %990 = vrot.lane.b32.xlu1 %v4779_v49, %s4647_s26  ;;  %588 = vst.msk [vmem:[#allocation2 + $0x68] sm:$0xff] %vm574_vm2, %v466_v62  ;;  %608 = vst.msk [vmem:[#allocation2 + $0x108] sm:$0xff] %vm574_vm2, %v546_v5  ;;  %v4895_v30 = vld [vmem:[#allocation2 + $0xe8] sm:$0xff] }
 0x109   : > { %v4918_v37 = vld [vmem:[#allocation2 + $0x49] sm:$0xff]  ;;  %v4945_v45 = vld [vmem:[#allocation2 + $0x41] sm:$0xff] }
 0x10a   : > { %1880 = vrot.lane.b32.xlu0 %v642_v38, %s4649_s28  ;;  %v4927_v40 = vld [vmem:[#allocation2 + $0xe9] sm:$0xff] }
 0x10b   : > { %v1286_v62 = vld [vmem:[#allocation2 + $0xe2] sm:$0xff] }
 0x10c   : > { %1194 = vrot.lane.b32.xlu1 %v937_v48, %s4650_s29  ;;  %v3845_v12 = vpop.f32.mrb[16].mxu0  ;;  %v1277_v48 = vld [vmem:[#allocation2 + $0x4a] sm:$0xff] }
 0x10d   : > { %593 = vst.msk [vmem:[#allocation2 + $0x90] sm:$0xff] %vm574_vm2, %v3845_v12  ;;  %v479_v13 = vpop.f32.mrb[17].mxu0 }
 0x10e   : > { %666 = vrot.lane.b32.xlu0 %v633_v39, %s4647_s26  ;;  %591 = vst.msk [vmem:[#allocation2 + $0x80] sm:$0xff] %vm574_vm2, %v479_v13  ;;  %v3846_v15 = vpop.f32.mrb[18].mxu0 }
 0x10f   : > { %v482_v16 = vpop.f32.mrb[19].mxu0 }
 0x110   : > { %1214 = vrot.lane.b32.xlu1 %v4779_v49, %s4650_s29  ;;  %592 = vst.msk [vmem:[#allocation2 + $0x88] sm:$0xff] %vm574_vm2, %v482_v16 }
 0x112   : > { %968 = vrot.lane.b32.xlu0 %v936_v50, %s4647_s26 }
 0x114   : > { %1306 = vrot.lane.b32.xlu1 %v1273_v51, %s4647_s26 }
 0x116   : > { %988 = vrot.lane.b32.xlu0 %v4790_v52, %s4647_s26 }
 0x118   : > { %1326 = vrot.lane.b32.xlu1 %v1283_v53, %s4647_s26 }
 0x11a   : > { %1192 = vrot.lane.b32.xlu0 %v936_v50, %s4650_s29  ;;  %v4954_v50 = vld [vmem:[#allocation2 + $0xe1] sm:$0xff] }
 0x11c   : > { %1530 = vrot.lane.b32.xlu1 %v1273_v51, %s4651_s30 }
 0x11e   : > { %1212 = vrot.lane.b32.xlu0 %v4790_v52, %s4650_s29 }
 0x120   : > { %1550 = vrot.lane.b32.xlu1 %v1283_v53, %s4651_s30 }
 0x122   : > { %1304 = vrot.lane.b32.xlu0 %v1272_v54, %s4647_s26 }
 0x124   : > { %1658 = vrot.lane.b32.xlu1 %v643_v36, %s4647_s26 }
 0x126   : > { %1324 = vrot.lane.b32.xlu0 %v1282_v55, %s4647_s26 }
 0x128   : > { %1882 = vrot.lane.b32.xlu1 %v643_v36, %s4649_s28 }
 0x12a   : > { %1528 = vrot.lane.b32.xlu0 %v1272_v54, %s4651_s30  ;;  %v1287_v54 = vld [vmem:[#allocation2 + $0xea] sm:$0xff] }
 0x12c   : > { %668 = vrot.lane.b32.xlu1 %v634_v56, %s4647_s26 }
 0x12e   : > { %1548 = vrot.lane.b32.xlu0 %v1282_v55, %s4651_s30 }
 0x130   : > { %670 = vrot.lane.b32.xlu1 %v635_v61, %s4647_s26 }
 0x132   : > { %688 = vrot.lane.b32.xlu0 %v644_v59, %s4647_s26 }
 0x134   : > { %690 = vrot.lane.b32.xlu1 %v645_v0, %s4647_s26 }
 0x136   : > { %860 = vrot.lane.b32.xlu0 %v634_v56, %s4648_s27 }
 0x138   : > { %862 = vrot.lane.b32.xlu1 %v635_v61, %s4648_s27 }
 0x13a   : > { %880 = vrot.lane.b32.xlu0 %v644_v59, %s4648_s27 }
 0x13c   : > { %882 = vrot.lane.b32.xlu1 %v645_v0, %s4648_s27 }
 0x13e   : > { %1640 = vrot.lane.b32.xlu0 %v634_v56, %s4647_s26 }
 0x140   : > { %974 = vrot.lane.b32.xlu1 %v4825_v6, %s4647_s26 }
 0x142   : > { %1660 = vrot.lane.b32.xlu0 %v644_v59, %s4647_s26 }
 0x144   : > { %994 = vrot.lane.b32.xlu1 %v4830_v7, %s4647_s26 }
 0x146   : > { %1864 = vrot.lane.b32.xlu0 %v634_v56, %s4649_s28 }
 0x148   : > { %1198 = vrot.lane.b32.xlu1 %v4825_v6, %s4650_s29 }
 0x14a   : > { %1884 = vrot.lane.b32.xlu0 %v644_v59, %s4649_s28  ;;  %v1276_v59 = vld [vmem:[#allocation2 + $0x42] sm:$0xff] }
 0x14c   : > { %1218 = vrot.lane.b32.xlu1 %v4830_v7, %s4650_s29 }
 0x14e   : > { %972 = vrot.lane.b32.xlu0 %v4840_v8, %s4647_s26 }
 0x150   : > { %1310 = vrot.lane.b32.xlu1 %v1275_v9, %s4647_s26 }
 0x152   : > { %992 = vrot.lane.b32.xlu0 %v4845_v10, %s4647_s26 }
 0x154   : > { %1330 = vrot.lane.b32.xlu1 %v1285_v11, %s4647_s26 }
 0x156   : > { %1196 = vrot.lane.b32.xlu0 %v4840_v8, %s4650_s29 }
 0x158   : > { %1534 = vrot.lane.b32.xlu1 %v1275_v9, %s4651_s30  ;;  %v638_v9 = vld [vmem:[#allocation2 + $0x60] sm:$0xff] }
 0x15a   : > { %1216 = vrot.lane.b32.xlu0 %v4845_v10, %s4650_s29 }
 0x15c   : > { %1554 = vrot.lane.b32.xlu1 %v1285_v11, %s4651_s30 }
 0x15e   : > { %1308 = vrot.lane.b32.xlu0 %v1274_v14, %s4647_s26 }
 0x160   : > { %1642 = vrot.lane.b32.xlu1 %v635_v61, %s4647_s26 }
 0x162   : > { %1328 = vrot.lane.b32.xlu0 %v1284_v17, %s4647_s26 }
 0x164   : > { %1662 = vrot.lane.b32.xlu1 %v645_v0, %s4647_s26 }
 0x166   : > { %1532 = vrot.lane.b32.xlu0 %v1274_v14, %s4651_s30  ;;  %v5018_v14 = vld [vmem:[#allocation2 + $0x68] sm:$0xff] }
 0x168   : > { %v4864_v18 = vpop.permute.xlu0 %664  ;;  %1866 = vrot.lane.b32.xlu1 %v635_v61, %s4649_s28 }
 0x16a   : > { %1552 = vrot.lane.b32.xlu0 %v1284_v17, %s4651_s30  ;;  %v4868_v19 = vpop.permute.xlu1 %686 }
 0x16c   : > { %v4870_v20 = vpop.permute.xlu0 %684  ;;  %1886 = vrot.lane.b32.xlu1 %v645_v0, %s4649_s28 }
 0x16e   : > { %1960 = vrot.lane.b32.xlu0 %v4840_v8, %s4647_s26  ;;  %v4875_v21 = vpop.permute.xlu1 %858 }
 0x170   : > { %v4877_v23 = vpop.permute.xlu0 %856  ;;  %1962 = vrot.lane.b32.xlu1 %v4825_v6, %s4647_s26 }
 0x172   : > { %672 = vrot.lane.b32.xlu0 %v636_v22, %s4647_s26  ;;  %v4882_v24 = vpop.permute.xlu1 %878 }
 0x174   : > { %v4884_v26 = vpop.permute.xlu0 %876  ;;  %674 = vrot.lane.b32.xlu1 %v4886_v27, %s4647_s26 }
 0x176   : > { %692 = vrot.lane.b32.xlu0 %v646_v25, %s4647_s26  ;;  %v4891_v28 = vpop.permute.xlu1 %970 }
 0x178   : > { %v4893_v29 = vpop.permute.xlu0 %1656  ;;  %694 = vrot.lane.b32.xlu1 %v4895_v30, %s4647_s26 }
 0x17a   : > { %864 = vrot.lane.b32.xlu0 %v636_v22, %s4648_s27  ;;  %v4900_v31 = vpop.permute.xlu1 %990 }
 0x17c   : > { %v4902_v32 = vpop.permute.xlu0 %1880  ;;  %866 = vrot.lane.b32.xlu1 %v4886_v27, %s4648_s27 }
 0x17d   : > { %8924 = vst [vmem:[#allocation3_spill] sm:$0xff] %v4902_v32 }
 0x17e   : > { %884 = vrot.lane.b32.xlu0 %v646_v25, %s4648_s27  ;;  %v4907_v33 = vpop.permute.xlu1 %1194 }
 0x180   : > { %v4909_v34 = vpop.permute.xlu0 %666  ;;  %886 = vrot.lane.b32.xlu1 %v4895_v30, %s4648_s27 }
 0x182   : > { %1644 = vrot.lane.b32.xlu0 %v636_v22, %s4647_s26  ;;  %v4914_v35 = vpop.permute.xlu1 %1214 }
 0x184   : > { %v4916_v36 = vpop.permute.xlu0 %968  ;;  %978 = vrot.lane.b32.xlu1 %v4918_v37, %s4647_s26 }
 0x186   : > { %1664 = vrot.lane.b32.xlu0 %v646_v25, %s4647_s26  ;;  %v4923_v38 = vpop.permute.xlu1 %1306 }
 0x188   : > { %v4925_v39 = vpop.permute.xlu0 %988  ;;  %998 = vrot.lane.b32.xlu1 %v4927_v40, %s4647_s26 }
 0x18a   : > { %1868 = vrot.lane.b32.xlu0 %v636_v22, %s4649_s28  ;;  %v4932_v41 = vpop.permute.xlu1 %1326  ;;  %v1622_v22 = vld [vmem:[#allocation2 + $0x100] sm:$0xff] }
 0x18c   : > { %v4934_v42 = vpop.permute.xlu0 %1192  ;;  %1202 = vrot.lane.b32.xlu1 %v4918_v37, %s4650_s29 }
 0x18e   : > { %1888 = vrot.lane.b32.xlu0 %v646_v25, %s4649_s28  ;;  %v4939_v43 = vpop.permute.xlu1 %1530  ;;  %v5034_v25 = vmul.f32 %v4825_v6, %v4909_v34  ;;  %v1027_v34 = vmul.f32 %v4900_v31, %v4830_v7 }
 0x190   : > { %v4941_v44 = vpop.permute.xlu0 %1212  ;;  %1222 = vrot.lane.b32.xlu1 %v4927_v40, %s4650_s29  ;;  %v777_v32 = vsub.f32 %v5034_v25, %v5034_v25 }
 0x192   : > { %976 = vrot.lane.b32.xlu0 %v4945_v45, %s4647_s26  ;;  %v4949_v46 = vpop.permute.xlu1 %1550 }
 0x194   : > { %v4951_v47 = vpop.permute.xlu0 %1304  ;;  %1314 = vrot.lane.b32.xlu1 %v1277_v48, %s4647_s26 }
 0x196   : > { %996 = vrot.lane.b32.xlu0 %v4954_v50, %s4647_s26  ;;  %v4958_v51 = vpop.permute.xlu1 %1658 }
 0x198   : > { %v4960_v53 = vpop.permute.xlu0 %1324  ;;  %1334 = vrot.lane.b32.xlu1 %v1287_v54, %s4647_s26 }
 0x19a   : > { %1200 = vrot.lane.b32.xlu0 %v4945_v45, %s4650_s29  ;;  %v4965_v55 = vpop.permute.xlu1 %1882 }
 0x19b   : > { %8925 = vst [vmem:[#allocation4_spill] sm:$0xff] %v4965_v55 }
 0x19c   : > { %v4967_v56 = vpop.permute.xlu0 %1528  ;;  %1538 = vrot.lane.b32.xlu1 %v1277_v48, %s4651_s30  ;;  %v5044_v48 = vmul.f32 %v4840_v8, %v4864_v18 }
 0x19d   : > { %8926 = vst [vmem:[#allocation5_spill] sm:$0xff] %v4967_v56 }
 0x19e   : > { %1220 = vrot.lane.b32.xlu0 %v4954_v50, %s4650_s29  ;;  %v4972_v57 = vpop.permute.xlu1 %668  ;;  %v776_v18 = vsub.f32 %v5044_v48, %v5044_v48 }
 0x1a0   : > { %v4974_v58 = vpop.permute.xlu0 %1548  ;;  %1558 = vrot.lane.b32.xlu1 %v1287_v54, %s4651_s30  ;;  %v723_v54 = vmul.f32 %v4830_v7, %v4868_v19  ;;  %v5064_v19 = vmul.f32 %v4845_v10, %v4870_v20  ;;  %v1016_v20 = vmul.f32 %v4916_v36, %v4840_v8  ;;  %v1353_v36 = vmul.f32 %v4923_v38, %v4825_v6 }
 0x1a1   : > { %8927 = vst [vmem:[#allocation6_spill] sm:$0xff] %v4974_v58  ;;  %v794_v58 = vmul.f32 1.442695, %v777_v32 }
 0x1a2   : > { %1312 = vrot.lane.b32.xlu0 %v1276_v59, %s4647_s26  ;;  %v4978_v60 = vpop.permute.xlu1 %670  ;;  %v787_v31 = vsub.f32 %v723_v54, %v723_v54 }
 0x1a4   : > { %v4980_v61 = vpop.permute.xlu0 %688  ;;  %1646 = vrot.lane.b32.xlu1 %v4886_v27, %s4647_s26 }
 0x1a6   : > { %1332 = vrot.lane.b32.xlu0 %v1286_v62, %s4647_s26  ;;  %v4985_v63 = vpop.permute.xlu1 %690 }
 0x1a8   : > { %v4987_v0 = vpop.permute.xlu0 %860  ;;  %1666 = vrot.lane.b32.xlu1 %v4895_v30, %s4647_s26 }
 0x1a9   : > { %8928 = vst [vmem:[#allocation7_spill] sm:$0xff] %v4987_v0  ;;  %v728_v0 = vsub.f32 -inf, %v5044_v48 }
 0x1aa   : > { %1536 = vrot.lane.b32.xlu0 %v1276_v59, %s4651_s30  ;;  %v4992_v1 = vpop.permute.xlu1 %862 }
 0x1ab   : > { %8929 = vst [vmem:[#allocation8_spill] sm:$0xff] %v4992_v1  ;;  %v1279_v1 = vld [vmem:[#allocation2 + $0x6a] sm:$0xff] }
 0x1ac   : > { %v4994_v2 = vpop.permute.xlu0 %880  ;;  %1870 = vrot.lane.b32.xlu1 %v4886_v27, %s4649_s28 }
 0x1ad   : > { %8930 = vst [vmem:[#allocation9_spill] sm:$0xff] %v4994_v2 }
 0x1ae   : > { %1556 = vrot.lane.b32.xlu0 %v1286_v62, %s4651_s30  ;;  %v4999_v3 = vpop.permute.xlu1 %882  ;;  %v729_v62 = vsub.f32 -inf, %v5034_v25 }
 0x1af   : > { %8931 = vst [vmem:[#allocation10_spill] sm:$0xff] %v4999_v3 }
 0x1b0   : > { %v5001_v4 = vpop.permute.xlu0 %1640  ;;  %1890 = vrot.lane.b32.xlu1 %v4895_v30, %s4649_s28  ;;  %v5038_v30 = vld [vmem:[#allocation2 + $0x69] sm:$0xff]  ;;  %v746_v2 = vmul.f32 1.442695, %v729_v62  ;;  %v814_v62 = vmul.f32 1.442695, %v787_v31  ;;  %v5096_v31 = vld [vmem:[#allocation2 + $0x61] sm:$0xff] }
 0x1b1   : > { %8937 = vst [vmem:[#allocation16_spill] sm:$0xff] %v5038_v30  ;;  %8944 = vst [vmem:[#allocation23_spill] sm:$0xff] %v5096_v31 }
 0x1b2   : > { %1964 = vrot.lane.b32.xlu0 %v4945_v45, %s4647_s26  ;;  %v5007_v5 = vpop.permute.xlu1 %974  ;;  %3942 = vpow2.f32 %v746_v2 }
 0x1b3   : > { %3944 = vpow2.f32 %v794_v58 }
 0x1b4   : > { %v5009_v11 = vpop.permute.xlu0 %1660  ;;  %1966 = vrot.lane.b32.xlu1 %v4918_v37, %s4647_s26 }
 0x1b6   : > { %676 = vrot.lane.b32.xlu0 %v638_v9, %s4647_s26  ;;  %v5014_v12 = vpop.permute.xlu1 %994 }
 0x1b8   : > { %v5016_v13 = vpop.permute.xlu0 %1864  ;;  %678 = vrot.lane.b32.xlu1 %v5018_v14, %s4647_s26 }
 0x1b9   : > { %8932 = vst [vmem:[#allocation11_spill] sm:$0xff] %v5016_v13  ;;  %v5071_v13 = vmax.f32 %v723_v54, %v1027_v34 }
 0x1ba   : > { %868 = vrot.lane.b32.xlu0 %v638_v9, %s4648_s27  ;;  %v5023_v15 = vpop.permute.xlu1 %1198 }
 0x1bb   : > { %8933 = vst [vmem:[#allocation12_spill] sm:$0xff] %v5023_v15  ;;  %v1017_v15 = vmul.f32 %v4891_v28, %v4825_v6  ;;  %v1059_v32 = vsub.f32 %v723_v54, %v5071_v13  ;;  %v1026_v6 = vmul.f32 %v4925_v39, %v4845_v10 }
 0x1bc   : > { %v5025_v16 = vpop.permute.xlu0 %1884  ;;  %870 = vrot.lane.b32.xlu1 %v5018_v14, %s4648_s27 }
 0x1bd   : > { %8934 = vst [vmem:[#allocation13_spill] sm:$0xff] %v5025_v16  ;;  %v739_v16 = vsub.f32 -inf, %v723_v54  ;;  %v1033_v28 = vmax.f32 %v5034_v25, %v1017_v15  ;;  %v1086_v54 = vmul.f32 1.442695, %v1059_v32 }
 0x1be   : > { %1648 = vrot.lane.b32.xlu0 %v638_v9, %s4647_s26  ;;  %v5030_v17 = vpop.permute.xlu1 %1218 }
 0x1bf   : > { %8935 = vst [vmem:[#allocation14_spill] sm:$0xff] %v5030_v17  ;;  %v766_v56 = vmul.f32 1.442695, %v739_v16  ;;  %v1049_v2 = vsub.f32 %v5034_v25, %v1033_v28  ;;  %v1097_v58 = vsub.f32 %v1017_v15, %v1033_v28 }
 0x1c0   : > { %v5036_v27 = vpop.permute.xlu0 %972  ;;  %982 = vrot.lane.b32.xlu1 %v5038_v30, %s4647_s26 }
 0x1c1   : > { %8936 = vst [vmem:[#allocation15_spill] sm:$0xff] %v5036_v27  ;;  %v1107_v27 = vsub.f32 %v1027_v34, %v5071_v13  ;;  %v1066_v39 = vmul.f32 1.442695, %v1049_v2  ;;  %v1278_v2 = vld [vmem:[#allocation2 + $0x62] sm:$0xff] }
 0x1c2   : > { %1668 = vrot.lane.b32.xlu0 %v1622_v22, %s4647_s26  ;;  %v5049_v59 = vpop.permute.xlu1 %1310 }
 0x1c3   : > { %8938 = vst [vmem:[#allocation17_spill] sm:$0xff] %v5049_v59  ;;  %v744_v59 = vmul.f32 1.442695, %v728_v0 }
 0x1c4   : > { %v5054_v55 = vpop.permute.xlu0 %992  ;;  %1206 = vrot.lane.b32.xlu1 %v5038_v30, %s4650_s29 }
 0x1c5   : > { %8939 = vst [vmem:[#allocation18_spill] sm:$0xff] %v5054_v55 }
 0x1c6   : > { %1872 = vrot.lane.b32.xlu0 %v638_v9, %s4649_s28  ;;  %v5067_v17 = vpop.permute.xlu1 %1330  ;;  %v792_v9 = vmul.f32 1.442695, %v776_v18 }
 0x1c7   : > { %8940 = vst [vmem:[#allocation19_spill] sm:$0xff] %v5067_v17  ;;  %v786_v17 = vsub.f32 %v5064_v19, %v5064_v19 }
 0x1c8   : > { %v5073_v3 = vpop.permute.xlu0 %1196  ;;  %1318 = vrot.lane.b32.xlu1 %v1279_v1, %s4647_s26  ;;  %3946 = vpow2.f32 %v792_v9 }
 0x1c9   : > { %8941 = vst [vmem:[#allocation20_spill] sm:$0xff] %v5073_v3  ;;  %v738_v3 = vsub.f32 -inf, %v5064_v19  ;;  %v812_v16 = vmul.f32 1.442695, %v786_v17  ;;  %3948 = vpow2.f32 %v814_v62  ;;  %v1134_v17 = vmul.f32 1.442695, %v1107_v27 }
 0x1ca   : > { %1892 = vrot.lane.b32.xlu0 %v1622_v22, %s4649_s28  ;;  %v5084_v55 = vpop.permute.xlu1 %1534  ;;  %v5093_v22 = vmax.f32 %v5044_v48, %v1016_v20  ;;  %3950 = vpow2.f32 %v766_v56  ;;  %v1114_v56 = vmul.f32 1.442695, %v1097_v58  ;;  %v1623_v62 = vld [vmem:[#allocation2 + $0x108] sm:$0xff] }
 0x1cb   : > { %8942 = vst [vmem:[#allocation21_spill] sm:$0xff] %v5084_v55  ;;  %v764_v38 = vmul.f32 1.442695, %v738_v3  ;;  %3952 = vpow2.f32 %v744_v59  ;;  %v5114_v3 = vmax.f32 %v5064_v19, %v1026_v6 }
 0x1cc   : > { %v5089_v18 = vpop.permute.xlu0 %1216  ;;  %1542 = vrot.lane.b32.xlu1 %v1279_v1, %s4651_s30  ;;  %v5105_v1 = vmax.f32 %v1033_v28, %v1353_v36  ;;  %v1048_v25 = vsub.f32 %v5044_v48, %v5093_v22  ;;  %3954 = vpow2.f32 %v812_v16  ;;  %v1096_v15 = vsub.f32 %v1016_v20, %v5093_v22  ;;  %v3943_v20 = vpop.eup %3942 }
 0x1cd   : > { %8943 = vst [vmem:[#allocation22_spill] sm:$0xff] %v5089_v18  ;;  %3956 = vpow2.f32 %v764_v38  ;;  %v5124_v48 = vmul.f32 %v4932_v41, %v4830_v7  ;;  %v1058_v38 = vsub.f32 %v5064_v19, %v5114_v3  ;;  %v1106_v41 = vsub.f32 %v1026_v6, %v5114_v3 }
 0x1ce   : > { %980 = vrot.lane.b32.xlu0 %v5096_v31, %s4647_s26  ;;  %v5103_v0 = vpop.permute.xlu1 %1554  ;;  %3958 = vpow2.f32 %v1086_v54  ;;  %v1385_v27 = vsub.f32 %v1033_v28, %v5105_v1  ;;  %v1064_v32 = vmul.f32 1.442695, %v1048_v25  ;;  %v1433_v16 = vsub.f32 %v1353_v36, %v5105_v1  ;;  %v3945_v28 = vpop.eup %3944 }
 0x1cf   : > { %8945 = vst [vmem:[#allocation24_spill] sm:$0xff] %v5103_v0  ;;  %3960 = vpow2.f32 %v1134_v17  ;;  %v1112_v7 = vmul.f32 1.442695, %v1096_v15  ;;  %v5138_v36 = vmax.f32 %v5071_v13, %v5124_v48  ;;  %v825_v0 = vmul.f32 0.0, %v3943_v20 }
 0x1d0   : > { %v5107_v34 = vpop.permute.xlu0 %1308  ;;  %1650 = vrot.lane.b32.xlu1 %v5018_v14, %s4647_s26  ;;  %3962 = vpow2.f32 %v1066_v39  ;;  %v1402_v17 = vmul.f32 1.442695, %v1385_v27  ;;  %v1450_v19 = vmul.f32 1.442695, %v1433_v16  ;;  %v1084_v15 = vmul.f32 1.442695, %v1058_v38 }
 0x1d1   : > { %3964 = vpow2.f32 %v1114_v56  ;;  %v905_v6 = vmul.f32 %v3945_v28, %v4875_v21  ;;  %v1132_v18 = vmul.f32 1.442695, %v1106_v41  ;;  %v5152_v16 = vmul.f32 %v4951_v47, %v4840_v8 }
 0x1d2   : > { %1204 = vrot.lane.b32.xlu0 %v5096_v31, %s4650_s29  ;;  %v5119_v59 = vpop.permute.xlu1 %1642  ;;  %v3947_v54 = vpop.eup %3946  ;;  %3966 = vpow2.f32 %v1064_v32  ;;  %v1395_v32 = vsub.f32 %v5071_v13, %v5138_v36  ;;  %v841_v38 = vadd.f32 %v3945_v28, %v825_v0  ;;  %v1443_v13 = vsub.f32 %v5124_v48, %v5138_v36 }
 0x1d3   : > { %v3949_v39 = vpop.eup %3948  ;;  %3968 = vpow2.f32 %v1112_v7 }
 0x1d4   : > { %v5126_v9 = vpop.permute.xlu0 %1328  ;;  %1670 = vrot.lane.b32.xlu1 %v1623_v62, %s4647_s26  ;;  %v3951_v56 = vpop.eup %3950  ;;  %3970 = vpow2.f32 %v1402_v17  ;;  %v921_v17 = vadd.f32 %v905_v6, %v825_v0  ;;  %v1422_v28 = vmul.f32 1.442695, %v1395_v32  ;;  %v904_v0 = vmul.f32 %v3947_v54, %v4877_v23 }
 0x1d5   : > { %v3953_v27 = vpop.eup %3952  ;;  %v835_v21 = vmul.f32 0.0, %v3951_v56  ;;  %3972 = vpow2.f32 %v1450_v19  ;;  %v5164_v56 = vld [vmem:[#allocation2 + $0x80] sm:$0xff]  ;;  %v5177_v32 = vmul.f32 %v4960_v53, %v4845_v10 }
 0x1d6   : > { %1316 = vrot.lane.b32.xlu0 %v1278_v2, %s4647_s26  ;;  %v5134_v58 = vpop.permute.xlu1 %1662  ;;  %v824_v41 = vmul.f32 0.0, %v3953_v27  ;;  %3974 = vpow2.f32 %v1084_v15 }
 0x1d7   : > { %8946 = vst [vmem:[#allocation25_spill] sm:$0xff] %v5134_v58  ;;  %v3955_v58 = vpop.eup %3954  ;;  %3976 = vpow2.f32 %v1132_v18  ;;  %v851_v48 = vadd.f32 %v3949_v39, %v835_v21 }
 0x1d8   : > { %v5140_v25 = vpop.permute.xlu0 %1532  ;;  %1874 = vrot.lane.b32.xlu1 %v5018_v14, %s4649_s28  ;;  %v3957_v20 = vpop.eup %3956  ;;  %v840_v18 = vadd.f32 %v3947_v54, %v824_v41  ;;  %v914_v23 = vmul.f32 %v3955_v58, %v4884_v26  ;;  %3978 = vpow2.f32 %v1422_v28  ;;  %v5194_v26 = vmul.f32 %v4893_v29, %v4790_v52 }
 0x1d9   : > { %8947 = vst [vmem:[#allocation26_spill] sm:$0xff] %v5140_v25  ;;  %v3959_v7 = vpop.eup %3958 }
 0x1da   : > { %1540 = vrot.lane.b32.xlu0 %v1278_v2, %s4651_s30  ;;  %v5146_v55 = vpop.permute.xlu1 %1866  ;;  %v915_v2 = vmul.f32 %v3949_v39, %v4882_v24  ;;  %v3961_v47 = vpop.eup %3960  ;;  %v1155_v39 = vmul.f32 %v3959_v7, %v851_v48  ;;  %8952 = vst [vmem:[#allocation31_spill] sm:$0xff] %v5194_v26  ;;  %v920_v48 = vadd.f32 %v904_v0, %v824_v41 }
 0x1db   : > { %8948 = vst [vmem:[#allocation27_spill] sm:$0xff] %v5146_v55  ;;  %v3963_v24 = vpop.eup %3962 }
 0x1dc   : > { %v5154_v14 = vpop.permute.xlu0 %1552  ;;  %1894 = vrot.lane.b32.xlu1 %v1623_v62, %s4649_s28  ;;  %v5168_v62 = vmax.f32 %v5093_v22, %v5152_v16  ;;  %v3965_v15 = vpop.eup %3964  ;;  %v931_v6 = vadd.f32 %v915_v2, %v835_v21  ;;  %v1145_v27 = vmul.f32 %v3963_v24, %v841_v38  ;;  %v1177_v55 = vmul.f32 %v3963_v24, %v921_v17  ;;  %v5190_v17 = vld [vmem:[#allocation2 + $0x88] sm:$0xff] }
 0x1dd   : > { %8949 = vst [vmem:[#allocation28_spill] sm:$0xff] %v5154_v14  ;;  %v3967_v25 = vpop.eup %3966  ;;  %v1251_v38 = vmul.f32 %v3961_v47, %v4914_v35  ;;  %v1241_v54 = vmul.f32 %v3965_v15, %v4907_v33 }
 0x1de   : > { %1968 = vrot.lane.b32.xlu0 %v5096_v31, %s4647_s26  ;;  %v5162_v14 = vpop.permute.xlu1 %1886  ;;  %v834_v31 = vmul.f32 0.0, %v3957_v20  ;;  %v1187_v21 = vmul.f32 %v3959_v7, %v931_v6  ;;  %v1384_v53 = vsub.f32 %v5093_v22, %v5168_v62  ;;  %v3969_v24 = vpop.eup %3968  ;;  %v1161_v20 = vadd.f32 %v3965_v15, %v1145_v27 }
 0x1df   : > { %8950 = vst [vmem:[#allocation29_spill] sm:$0xff] %v5162_v14  ;;  %v1470_v14 = vmul.f32 1.442695, %v1443_v13  ;;  %v3971_v35 = vpop.eup %3970  ;;  %v1144_v7 = vmul.f32 %v3967_v25, %v840_v18  ;;  %v1257_v33 = vadd.f32 %v1241_v54, %v1177_v55  ;;  %v5200_v22 = vmax.f32 %v5114_v3, %v5177_v32 }
 0x1e0   : > { %v5170_v19 = vpop.permute.xlu0 %1960  ;;  %1970 = vrot.lane.b32.xlu1 %v5038_v30, %s4647_s26  ;;  %v3973_v28 = vpop.eup %3972  ;;  %v850_v6 = vadd.f32 %v3955_v58, %v834_v31  ;;  %v930_v52 = vadd.f32 %v914_v23, %v834_v31  ;;  %v1432_v29 = vsub.f32 %v5152_v16, %v5168_v62  ;;  %v1171_v18 = vadd.f32 %v3961_v47, %v1155_v39 }
 0x1e1   : > { %3980 = vpow2.f32 %v1470_v14  ;;  %v3975_v27 = vpop.eup %3974  ;;  %v1267_v14 = vadd.f32 %v1251_v38, %v1187_v21  ;;  %v1400_v55 = vmul.f32 1.442695, %v1384_v53  ;;  %v5210_v54 = vmul.f32 %v4945_v45, %v4972_v57  ;;  %v5241_v38 = vld [vmem:[#allocation2 + $0x89] sm:$0xff] }
 0x1e2   : > { %680 = vrot.lane.b32.xlu0 %v5164_v56, %s4647_s26  ;;  %v5182_v2 = vpop.permute.xlu1 %1962  ;;  %v3977_v30 = vpop.eup %3976  ;;  %v1176_v41 = vmul.f32 %v3967_v25, %v920_v48  ;;  %v1240_v31 = vmul.f32 %v3969_v24, %v4934_v42  ;;  %v5217_v58 = vmul.f32 %v4958_v51, %v4779_v49  ;;  %v5221_v16 = vadd.f32 %v3969_v24, %v1144_v7 }
 0x1e3   : > { %v1513_v47 = vmul.f32 %v3971_v35, %v1257_v33  ;;  %v1577_v57 = vmul.f32 %v3973_v28, %v4939_v43  ;;  %v1394_v0 = vsub.f32 %v5114_v3, %v5200_v22  ;;  %v1154_v25 = vmul.f32 %v3975_v27, %v850_v6 }
 0x1e4   : > { %v5188_v13 = vpop.permute.xlu0 %672  ;;  %682 = vrot.lane.b32.xlu1 %v5190_v17, %s4647_s26  ;;  %8953 = vst [vmem:[#allocation32_spill] sm:$0xff] %v5217_v58  ;;  %v1448_v42 = vmul.f32 1.442695, %v1432_v29  ;;  %v1442_v49 = vsub.f32 %v5177_v32, %v5200_v22  ;;  %v5232_v51 = vmul.f32 %v4918_v37, %v4978_v60  ;;  %v1186_v39 = vmul.f32 %v3975_v27, %v930_v52 }
 0x1e5   : > { %8951 = vst [vmem:[#allocation30_spill] sm:$0xff] %v5188_v13  ;;  %v1481_v13 = vmul.f32 %v3971_v35, %v1161_v20  ;;  %v1250_v43 = vmul.f32 %v3977_v30, %v4941_v44  ;;  %3982 = vpow2.f32 %v1400_v55  ;;  %v778_v3 = vsub.f32 %v5210_v54, %v5210_v54  ;;  %v3979_v44 = vpop.eup %3978 }
 0x1e6   : > { %872 = vrot.lane.b32.xlu0 %v5164_v56, %s4648_s27  ;;  %v5206_v15 = vpop.permute.xlu1 %674  ;;  %v5245_v32 = vadd.f32 %v1240_v31, %v1176_v41  ;;  %v5249_v60 = vmul.f32 %v4954_v50, %v4980_v61  ;;  %v730_v24 = vsub.f32 -inf, %v5210_v54  ;;  %v5254_v20 = vadd.f32 %v1577_v57, %v1513_v47  ;;  %v5284_v41 = vld [vmem:[#allocation2 + $0x81] sm:$0xff] }
 0x1e7   : > { %v5243_v53 = vadd.f32 %v3973_v28, %v1481_v13  ;;  %v1420_v35 = vmul.f32 1.442695, %v1394_v0  ;;  %v5258_v7 = vmul.f32 %v4927_v40, %v4985_v63  ;;  %v5262_v13 = vmul.f32 %v5001_v4, %v4840_v8 }
 0x1e8   : > { %v5212_v26 = vpop.permute.xlu0 %692  ;;  %874 = vrot.lane.b32.xlu1 %v5190_v17, %s4648_s27  ;;  %v5266_v61 = vadd.f32 %v3977_v30, %v1154_v25  ;;  %3984 = vpow2.f32 %v1448_v42  ;;  %v1468_v33 = vmul.f32 1.442695, %v1442_v49  ;;  %v779_v28 = vsub.f32 %v5232_v51, %v5232_v51 }
 0x1e9   : > { %v5272_v52 = vadd.f32 %v1250_v43, %v1186_v39  ;;  %v796_v63 = vmul.f32 1.442695, %v778_v3  ;;  %v731_v29 = vsub.f32 -inf, %v5232_v51  ;;  %v5277_v8 = vmul.f32 %v5007_v5, %v4918_v37  ;;  %v5312_v39 = vld [vmem:[#allocation2 + $0x8a] sm:$0xff] }
 0x1ea   : > { %1652 = vrot.lane.b32.xlu0 %v5164_v56, %s4647_s26  ;;  %v5234_v23 = vpop.permute.xlu1 %694  ;;  %v1491_v30 = vmul.f32 %v3979_v44, %v1171_v18  ;;  %v748_v27 = vmul.f32 1.442695, %v730_v24  ;;  %v740_v55 = vsub.f32 -inf, %v5249_v60  ;;  %3986 = vpow2.f32 %v1420_v35  ;;  %8958 = vst [vmem:[#allocation37_spill] sm:$0xff] %v5312_v39 }
 0x1eb   : > { %v3981_v6 = vpop.eup %3980  ;;  %v789_v31 = vsub.f32 %v5258_v7, %v5258_v7  ;;  %v5290_v5 = vmax.f32 %v5168_v62, %v5262_v13  ;;  %v5294_v18 = vmul.f32 %v5009_v11, %v4845_v10  ;;  %3988 = vpow2.f32 %v1468_v33  ;;  %v8960_v33 = vld [vmem:[#allocation15_spill] sm:$0xff] }
 0x1ec   : > { %v5239_v21 = vpop.permute.xlu0 %864  ;;  %986 = vrot.lane.b32.xlu1 %v5241_v38, %s4647_s26  ;;  %v798_v47 = vmul.f32 1.442695, %v779_v28  ;;  %v741_v57 = vsub.f32 -inf, %v5258_v7  ;;  %3990 = vpow2.f32 %v796_v63  ;;  %v750_v25 = vmul.f32 1.442695, %v731_v29 }
 0x1ed   : > { %8954 = vst [vmem:[#allocation33_spill] sm:$0xff] %v5239_v21  ;;  %v5304_v42 = vmax.f32 %v5232_v51, %v5277_v8  ;;  %v5308_v11 = vmul.f32 %v5014_v12, %v4927_v40  ;;  %v788_v43 = vsub.f32 %v5249_v60, %v5249_v60  ;;  %3992 = vpow2.f32 %v748_v27 }
 0x1ee   : > { %1876 = vrot.lane.b32.xlu0 %v5164_v56, %s4649_s28  ;;  %v5270_v48 = vpop.permute.xlu1 %866  ;;  %v1523_v56 = vmul.f32 %v3979_v44, %v1267_v14  ;;  %v1587_v14 = vmul.f32 %v3981_v6, %v4949_v46  ;;  %v5314_v46 = vadd.f32 %v3981_v6, %v1491_v30  ;;  %v768_v3 = vmul.f32 1.442695, %v740_v55  ;;  %v8962_v55 = vld [vmem:[#allocation17_spill] sm:$0xff] }
 0x1ef   : > { %8955 = vst [vmem:[#allocation34_spill] sm:$0xff] %v5270_v48  ;;  %v3983_v24 = vpop.eup %3982  ;;  %v818_v44 = vmul.f32 1.442695, %v789_v31  ;;  %v1720_v12 = vsub.f32 %v5168_v62, %v5290_v5  ;;  %v5324_v35 = vmax.f32 %v5200_v22, %v5294_v18  ;;  %v5328_v28 = vmul.f32 %v8960_v33, %v4945_v45 }
 0x1f0   : > { %v5279_v4 = vpop.permute.xlu0 %884  ;;  %1210 = vrot.lane.b32.xlu1 %v5241_v38, %s4650_s29  ;;  %v5332_v6 = vadd.f32 %v1587_v14, %v1523_v56  ;;  %3994 = vpow2.f32 %v798_v47  ;;  %v770_v63 = vmul.f32 1.442695, %v741_v57  ;;  %v1768_v29 = vsub.f32 %v5262_v13, %v5290_v5 }
 0x1f1   : > { %8956 = vst [vmem:[#allocation35_spill] sm:$0xff] %v5279_v4  ;;  %8959 = vst [vmem:[#allocation38_spill] sm:$0xff] %v5324_v35  ;;  %3996 = vpow2.f32 %v750_v25  ;;  %v1051_v62 = vsub.f32 %v5232_v51, %v5304_v42  ;;  %v5342_v27 = vmax.f32 %v5258_v7, %v5308_v11  ;;  %v5346_v31 = vmul.f32 %v8962_v55, %v4918_v37  ;;  %v5355_v51 = vld [vmem:[#allocation2 + $0x82] sm:$0xff] }
 0x1f2   : > { %984 = vrot.lane.b32.xlu0 %v5284_v41, %s4647_s26  ;;  %v5300_v0 = vpop.permute.xlu1 %886  ;;  %8961 = vst [vmem:[#allocation15_spill] sm:$0xff] %v5332_v6  ;;  %v3985_v14 = vpop.eup %3984  ;;  %v1480_v47 = vmul.f32 %v3983_v24, %v5221_v16  ;;  %v816_v13 = vmul.f32 1.442695, %v788_v43  ;;  %3998 = vpow2.f32 %v768_v3  ;;  %v1099_v57 = vsub.f32 %v5277_v8, %v5304_v42  ;;  %8963 = vst [vmem:[#allocation17_spill] sm:$0xff] %v5355_v51  ;;  %v5486_v6 = vld [vmem:[#allocation2 + $0xc9] sm:$0xff] }
 0x1f3   : > { %8957 = vst [vmem:[#allocation36_spill] sm:$0xff] %v5300_v0  ;;  %4000 = vpow2.f32 %v818_v44  ;;  %v1736_v25 = vmul.f32 1.442695, %v1720_v12  ;;  %v1730_v37 = vsub.f32 %v5200_v22, %v5324_v35  ;;  %v5361_v33 = vmax.f32 %v5210_v54, %v5328_v28  ;;  %v8964_v12 = vld [vmem:[#allocation5_spill] sm:$0xff] }
 0x1f4   : > { %v5310_v49 = vpop.permute.xlu0 %1644  ;;  %1322 = vrot.lane.b32.xlu1 %v5312_v39, %s4647_s26  ;;  %v1512_v16 = vmul.f32 %v3983_v24, %v5245_v32  ;;  %4002 = vpow2.f32 %v770_v63  ;;  %v1784_v8 = vmul.f32 1.442695, %v1768_v29  ;;  %v1778_v43 = vsub.f32 %v5294_v18, %v5324_v35  ;;  %v3987_v44 = vpop.eup %3986  ;;  %v8967_v63 = vld [vmem:[#allocation18_spill] sm:$0xff]  ;;  %v8968_v35 = vld [vmem:[#allocation19_spill] sm:$0xff] }
 0x1f5   : > { %v1576_v55 = vmul.f32 %v3985_v14, %v8964_v12  ;;  %v1070_v22 = vmul.f32 1.442695, %v1051_v62  ;;  %v1061_v58 = vsub.f32 %v5258_v7, %v5342_v27  ;;  %v3989_v32 = vpop.eup %3988  ;;  %4004 = vpow2.f32 %v816_v13 }
 0x1f6   : > { %1208 = vrot.lane.b32.xlu0 %v5284_v41, %s4650_s29  ;;  %v5336_v30 = vpop.permute.xlu1 %978  ;;  %v1118_v24 = vmul.f32 1.442695, %v1099_v57  ;;  %v1109_v18 = vsub.f32 %v5308_v11, %v5342_v27  ;;  %v5383_v29 = vmul.f32 %v8967_v63, %v4954_v50  ;;  %v5387_v7 = vpop.eup %3990  ;;  %v5389_v62 = vadd.f32 %v3985_v14, %v1480_v47 }
 0x1f7   : > { %4006 = vpow2.f32 %v1736_v25  ;;  %v1756_v12 = vmul.f32 1.442695, %v1730_v37  ;;  %v1050_v13 = vsub.f32 %v5210_v54, %v5361_v33  ;;  %v3993_v11 = vpop.eup %3992  ;;  %v1804_v57 = vmul.f32 1.442695, %v1778_v43 }
 0x1f8   : > { %v5348_v56 = vpop.permute.xlu0 %1664  ;;  %1546 = vrot.lane.b32.xlu1 %v5312_v39, %s4651_s30  ;;  %v5375_v39 = vmax.f32 %v5304_v42, %v5346_v31  ;;  %4008 = vpow2.f32 %v1784_v8  ;;  %v1098_v63 = vsub.f32 %v5328_v28, %v5361_v33  ;;  %v1490_v47 = vmul.f32 %v3987_v44, %v5266_v61 }
 0x1f9   : > { %4010 = vpow2.f32 %v1070_v22  ;;  %v1090_v25 = vmul.f32 1.442695, %v1061_v58  ;;  %v5408_v43 = vadd.f32 %v1576_v55, %v1512_v16  ;;  %v1138_v28 = vmul.f32 1.442695, %v1109_v18  ;;  %v8971_v55 = vld [vmem:[#allocation6_spill] sm:$0xff] }
 0x1fa   : > { %1320 = vrot.lane.b32.xlu0 %v5355_v51, %s4647_s26  ;;  %v5368_v3 = vpop.permute.xlu1 %998  ;;  %8965 = vst [vmem:[#allocation5_spill] sm:$0xff] %v5375_v39  ;;  %v1387_v54 = vsub.f32 %v5304_v42, %v5375_v39  ;;  %v3995_v8 = vpop.eup %3994  ;;  %4012 = vpow2.f32 %v1118_v24  ;;  %v1522_v58 = vmul.f32 %v3987_v44, %v5272_v52  ;;  %v1068_v22 = vmul.f32 1.442695, %v1050_v13 }
 0x1fb   : > { %v3997_v61 = vpop.eup %3996  ;;  %4014 = vpow2.f32 %v1756_v12  ;;  %v1435_v42 = vsub.f32 %v5346_v31, %v5375_v39  ;;  %v1586_v24 = vmul.f32 %v3989_v32, %v8971_v55  ;;  %v1116_v18 = vmul.f32 1.442695, %v1098_v63  ;;  %v8974_v12 = vld [vmem:[#allocation7_spill] sm:$0xff] }
 0x1fc   : > { %v5377_v0 = vpop.permute.xlu0 %1868  ;;  %1654 = vrot.lane.b32.xlu1 %v5190_v17, %s4647_s26  ;;  %v3999_v16 = vpop.eup %3998  ;;  %4016 = vpow2.f32 %v1804_v57  ;;  %v5428_v44 = vadd.f32 %v3989_v32, %v1490_v47  ;;  %v906_v31 = vmul.f32 %v5387_v7, %v8974_v12  ;;  %v1406_v13 = vmul.f32 1.442695, %v1387_v54  ;;  %v8975_v57 = vld [vmem:[#allocation8_spill] sm:$0xff] }
 0x1fd   : > { %8966 = vst [vmem:[#allocation39_spill] sm:$0xff] %v5377_v0  ;;  %v5399_v0 = vmul.f32 %v8968_v35, %v4927_v40  ;;  %v5412_v35 = vmax.f32 %v5249_v60, %v5383_v29  ;;  %v4001_v52 = vpop.eup %4000  ;;  %4018 = vpow2.f32 %v1090_v25  ;;  %v826_v55 = vmul.f32 0.0, %v3993_v11  ;;  %v5441_v54 = vld [vmem:[#allocation2 + $0xa1] sm:$0xff] }
 0x1fe   : > { %1544 = vrot.lane.b32.xlu0 %v5355_v51, %s4651_s30  ;;  %v5401_v14 = vpop.permute.xlu1 %1202  ;;  %v907_v63 = vmul.f32 %v3995_v8, %v8975_v57  ;;  %4020 = vpow2.f32 %v1138_v28  ;;  %v827_v32 = vmul.f32 0.0, %v3997_v61  ;;  %v1454_v47 = vmul.f32 1.442695, %v1435_v42  ;;  %v8976_v42 = vld [vmem:[#allocation10_spill] sm:$0xff] }
 0x1ff   : > { %8969 = vst [vmem:[#allocation18_spill] sm:$0xff] %v5401_v14  ;;  %v4003_v14 = vpop.eup %4002  ;;  %v1060_v51 = vsub.f32 %v5249_v60, %v5412_v35  ;;  %4022 = vpow2.f32 %v1068_v22  ;;  %v1108_v25 = vsub.f32 %v5383_v29, %v5412_v35  ;;  %v5445_v12 = vmul.f32 0.0, %v3999_v16 }
 0x200   : > { %v5406_v37 = vpop.permute.xlu0 %1888  ;;  %1878 = vrot.lane.b32.xlu1 %v5190_v17, %s4649_s28  ;;  %v4005_v11 = vpop.eup %4004  ;;  %4024 = vpow2.f32 %v1116_v18  ;;  %v5451_v28 = vmul.f32 %v5107_v34, %v4945_v45  ;;  %v837_v29 = vmul.f32 0.0, %v4003_v14  ;;  %v917_v57 = vmul.f32 %v4001_v52, %v8976_v42  ;;  %v5465_v34 = vld [vmem:[#allocation2 + $0xa9] sm:$0xff] }
 0x201   : > { %8970 = vst [vmem:[#allocation19_spill] sm:$0xff] %v5406_v37  ;;  %v5424_v37 = vmax.f32 %v5342_v27, %v5399_v0  ;;  %v4007_v22 = vpop.eup %4006  ;;  %4026 = vpow2.f32 %v1406_v13  ;;  %v1602_v4 = vadd.f32 %v1586_v24, %v1522_v58  ;;  %v5463_v48 = vadd.f32 %v906_v31, %v826_v55  ;;  %v8978_v42 = vld [vmem:[#allocation9_spill] sm:$0xff] }
 0x202   : > { %1972 = vrot.lane.b32.xlu0 %v5284_v41, %s4647_s26  ;;  %v5426_v17 = vpop.permute.xlu1 %1222  ;;  %v4009_v18 = vpop.eup %4008  ;;  %v1088_v45 = vmul.f32 1.442695, %v1060_v51  ;;  %v843_v13 = vadd.f32 %v3995_v8, %v827_v32  ;;  %v916_v21 = vmul.f32 %v4005_v11, %v8978_v42  ;;  %4028 = vpow2.f32 %v1454_v47 }
 0x203   : > { %8972 = vst [vmem:[#allocation6_spill] sm:$0xff] %v5424_v37  ;;  %8973 = vst [vmem:[#allocation40_spill] sm:$0xff] %v5426_v17  ;;  %v1397_v60 = vsub.f32 %v5342_v27, %v5424_v37  ;;  %v1445_v17 = vsub.f32 %v5399_v0, %v5424_v37  ;;  %v5461_v27 = vadd.f32 %v5387_v7, %v826_v55  ;;  %v4011_v14 = vpop.eup %4010  ;;  %v1136_v0 = vmul.f32 1.442695, %v1108_v25 }
 0x204   : > { %v5432_v39 = vpop.permute.xlu0 %976  ;;  %1974 = vrot.lane.b32.xlu1 %v5241_v38, %s4647_s26  ;;  %v4013_v58 = vpop.eup %4012  ;;  %v923_v7 = vadd.f32 %v907_v63, %v827_v32  ;;  %v5473_v24 = vadd.f32 %v4005_v11, %v5445_v12  ;;  %v5477_v31 = vmax.f32 %v5361_v33, %v5451_v28  ;;  %v853_v37 = vadd.f32 %v4001_v52, %v837_v29  ;;  %v8981_v11 = vld [vmem:[#allocation11_spill] sm:$0xff] }
 0x205   : > { %v1426_v51 = vmul.f32 1.442695, %v1397_v60  ;;  %v4015_v8 = vpop.eup %4014  ;;  %v933_v42 = vadd.f32 %v917_v57, %v837_v29  ;;  %v1816_v47 = vmul.f32 %v4007_v22, %v5389_v62  ;;  %v1474_v25 = vmul.f32 1.442695, %v1445_v17  ;;  %v8982_v29 = vld [vmem:[#allocation12_spill] sm:$0xff] }
 0x206   : > { %1976 = vrot.lane.b32.xlu0 %v5441_v54, %s4647_s26  ;;  %v5453_v61 = vpop.permute.xlu1 %1314  ;;  %v1147_v63 = vmul.f32 %v4011_v14, %v843_v13  ;;  %v1848_v32 = vmul.f32 %v4007_v22, %v5408_v43  ;;  %v1912_v60 = vmul.f32 %v4009_v18, %v8981_v11  ;;  %4030 = vpow2.f32 %v1088_v45  ;;  %v5491_v62 = vld [vmem:[#allocation2 + $0x29] sm:$0xff] }
 0x207   : > { %v1179_v52 = vmul.f32 %v4011_v14, %v923_v7  ;;  %v1243_v57 = vmul.f32 %v4013_v58, %v8982_v29  ;;  %4032 = vpow2.f32 %v1136_v0  ;;  %v5495_v17 = vmul.f32 %v5491_v62, %v5119_v59  ;;  %v8984_v7 = vld [vmem:[#allocation13_spill] sm:$0xff] }
 0x208   : > { %v5458_v16 = vpop.permute.xlu0 %996  ;;  %1978 = vrot.lane.b32.xlu1 %v5465_v34, %s4647_s26  ;;  %v1826_v22 = vmul.f32 %v4015_v8, %v5428_v44  ;;  %v1858_v45 = vmul.f32 %v4015_v8, %v1602_v4  ;;  %4034 = vpow2.f32 %v1426_v51  ;;  %v1386_v14 = vsub.f32 %v5361_v33, %v5477_v31  ;;  %v3865_v4 = vpop.f32.mrb[16].mxu1 }
 0x209   : > { %8977 = vst [vmem:[#allocation7_spill] sm:$0xff] %v5458_v16  ;;  %4036 = vpow2.f32 %v1474_v25  ;;  %v1434_v59 = vsub.f32 %v5451_v28, %v5477_v31  ;;  %v5509_v29 = vmul.f32 %v5126_v9, %v4954_v50  ;;  %v932_v51 = vadd.f32 %v916_v21, %v5445_v12  ;;  %613 = vst.msk [vmem:[#allocation2 + $0x130] sm:$0xff] %vm574_vm2, %v3865_v4  ;;  %v8988_v25 = vld [vmem:[#allocation14_spill] sm:$0xff]  ;;  %v8989_v12 = vld [vmem:[#allocation25_spill] sm:$0xff] }
 0x20a   : > { %1980 = vrot.lane.b32.xlu0 %v4845_v10, %s4647_s26  ;;  %v5479_v55 = vpop.permute.xlu1 %1334  ;;  %v4017_v10 = vpop.eup %4016  ;;  %v5514_v33 = vadd.f32 %v4009_v18, %v1816_v47  ;;  %v5526_v21 = vmax.f32 %v5105_v1, %v5495_v17  ;;  %v1163_v18 = vadd.f32 %v4013_v58, %v1147_v63 }
 0x20b   : > { %8979 = vst [vmem:[#allocation8_spill] sm:$0xff] %v5479_v55  ;;  %v4019_v55 = vpop.eup %4018  ;;  %v1922_v11 = vmul.f32 %v4017_v10, %v8984_v7  ;;  %v5518_v7 = vld [vmem:[#allocation2 + $0x101] sm:$0xff]  ;;  %v5535_v47 = vadd.f32 %v4017_v10, %v1826_v22 }
 0x20c   : > { %v5482_v16 = vpop.permute.xlu0 %1200  ;;  %1982 = vrot.lane.b32.xlu1 %v5486_v6, %s4647_s26  ;;  %v4021_v43 = vpop.eup %4020  ;;  %8986 = vst [vmem:[#allocation12_spill] sm:$0xff] %v5514_v33  ;;  %v1157_v8 = vmul.f32 %v4019_v55, %v853_v37  ;;  %v1189_v28 = vmul.f32 %v4019_v55, %v933_v42  ;;  %v5530_v37 = vmul.f32 %v5486_v6, %v8989_v12  ;;  %v1404_v42 = vmul.f32 1.442695, %v1386_v14  ;;  %v4554_v22 = vld [vmem:[#allocation2 + $0x21] sm:$0xff] }
 0x20d   : > { %8980 = vst [vmem:[#allocation10_spill] sm:$0xff] %v5482_v16  ;;  %v4023_v0 = vpop.eup %4022  ;;  %8990 = vst [vmem:[#allocation14_spill] sm:$0xff] %v5535_v47  ;;  %v1259_v55 = vadd.f32 %v1243_v57, %v1179_v52  ;;  %v5544_v33 = vmax.f32 %v5412_v35, %v5509_v29  ;;  %v8993_v52 = vld [vmem:[#allocation20_spill] sm:$0xff] }
 0x20e   : > { %1984 = vrot.lane.b32.xlu0 %v4954_v50, %s4647_s26  ;;  %v5502_v13 = vpop.permute.xlu1 %1538  ;;  %v4025_v44 = vpop.eup %4024  ;;  %v1146_v12 = vmul.f32 %v4023_v0, %v5461_v27  ;;  %v1178_v63 = vmul.f32 %v4023_v0, %v5463_v48  ;;  %v1173_v27 = vadd.f32 %v4021_v43, %v1157_v8  ;;  %4038 = vpow2.f32 %v1404_v42  ;;  %v5615_v47 = vld [vmem:[#allocation2 + $0x49] sm:$0xff] }
 0x20f   : > { %8983 = vst [vmem:[#allocation9_spill] sm:$0xff] %v5502_v13  ;;  %v5516_v13 = vadd.f32 %v1912_v60, %v1848_v32  ;;  %v559_v50 = vpop.f32.mrb[17].mxu1  ;;  %v4027_v9 = vpop.eup %4026  ;;  %v1242_v57 = vmul.f32 %v4025_v44, %v8993_v52  ;;  %v1444_v8 = vsub.f32 %v5509_v29, %v5544_v33 }
 0x210   : > { %v5511_v16 = vpop.permute.xlu0 %1220  ;;  %1986 = vrot.lane.b32.xlu1 %v4927_v40, %s4647_s26  ;;  %611 = vst.msk [vmem:[#allocation2 + $0x120] sm:$0xff] %vm574_vm2, %v559_v50  ;;  %v3866_v40 = vpop.f32.mrb[18].mxu1  ;;  %v5546_v50 = vld [vmem:[#allocation2 + $0x109] sm:$0xff]  ;;  %v1483_v10 = vmul.f32 %v4027_v9, %v1163_v18  ;;  %v1515_v0 = vmul.f32 %v4027_v9, %v1259_v55  ;;  %v1769_v18 = vsub.f32 %v5495_v17, %v5526_v21 }
 0x211   : > { %8985 = vst [vmem:[#allocation11_spill] sm:$0xff] %v5511_v16  ;;  %8987 = vst [vmem:[#allocation13_spill] sm:$0xff] %v5516_v13  ;;  %v1253_v16 = vmul.f32 %v4021_v43, %v8988_v25  ;;  %v562_v60 = vpop.f32.mrb[19].mxu1  ;;  %v4029_v4 = vpop.eup %4028  ;;  %v5539_v25 = vadd.f32 %v1922_v11, %v1858_v45  ;;  %v1452_v13 = vmul.f32 1.442695, %v1434_v59  ;;  %v5554_v45 = vmul.f32 %v4554_v22, %v5170_v19  ;;  %v8995_v40 = vld [vmem:[#allocation21_spill] sm:$0xff] }
 0x212   : > { %1988 = vrot.lane.b32.xlu0 %v5518_v7, %s4647_s26  ;;  %v5537_v32 = vpop.permute.xlu1 %1558  ;;  %8992 = vst [vmem:[#allocation41_spill] sm:$0xff] %v5546_v50  ;;  %612 = vst.msk [vmem:[#allocation2 + $0x128] sm:$0xff] %vm574_vm2, %v562_v60  ;;  %v1721_v11 = vsub.f32 %v5105_v1, %v5526_v21  ;;  %v5562_v59 = vmax.f32 %v5138_v36, %v5530_v37  ;;  %v4031_v48 = vpop.eup %4030  ;;  %v1579_v19 = vmul.f32 %v4029_v4, %v8995_v40  ;;  %v5591_v40 = vld [vmem:[#allocation2 + $0x41] sm:$0xff] }
 0x213   : > { %8991 = vst [vmem:[#allocation25_spill] sm:$0xff] %v5539_v25  ;;  %v1269_v14 = vadd.f32 %v1253_v16, %v1189_v28  ;;  %v4033_v16 = vpop.eup %4032  ;;  %4040 = vpow2.f32 %v1452_v13  ;;  %v1396_v1 = vsub.f32 %v5412_v35, %v5544_v33  ;;  %v5576_v28 = vmul.f32 %v5491_v62, %v5182_v2  ;;  %v9004_v25 = vld [vmem:[#allocation24_spill] sm:$0xff] }
 0x214   : > { %v5548_v58 = vpop.permute.xlu0 %1312  ;;  %1990 = vrot.lane.b32.xlu1 %v5546_v50, %s4647_s26  ;;  %8994 = vst [vmem:[#allocation20_spill] sm:$0xff] %v5562_v59  ;;  %v4035_v55 = vpop.eup %4034  ;;  %v1162_v42 = vadd.f32 %v4025_v44, %v1146_v12  ;;  %v5580_v60 = vadd.f32 %v4029_v4, %v1483_v10  ;;  %v1258_v17 = vadd.f32 %v1242_v57, %v1178_v63  ;;  %v1738_v2 = vmul.f32 1.442695, %v1721_v11  ;;  %v9000_v10 = vld [vmem:[#allocation23_spill] sm:$0xff] }
 0x215   : > { %v5584_v13 = vmax.f32 %v5290_v5, %v5554_v45  ;;  %v4037_v35 = vpop.eup %4036  ;;  %v1156_v29 = vmul.f32 %v4031_v48, %v5473_v24  ;;  %v1188_v52 = vmul.f32 %v4031_v48, %v932_v51  ;;  %v5595_v44 = vadd.f32 %v1579_v19, %v1515_v0  ;;  %v9001_v51 = vld [vmem:[#allocation22_spill] sm:$0xff] }
 0x216   : > { %2184 = vrot.lane.b32.xlu0 %v4554_v22, %s4652_s3  ;;  %v5568_v43 = vpop.permute.xlu1 %1646  ;;  %8996 = vst [vmem:[#allocation21_spill] sm:$0xff] %v5580_v60  ;;  %v1731_v22 = vsub.f32 %v5138_v36, %v5562_v59  ;;  %v1786_v4 = vmul.f32 1.442695, %v1769_v18  ;;  %v1779_v12 = vsub.f32 %v5530_v37, %v5562_v59  ;;  %v1252_v57 = vmul.f32 %v4033_v16, %v9001_v51 }
 0x217   : > { %8997 = vst [vmem:[#allocation42_spill] sm:$0xff] %v5584_v13  ;;  %8998 = vst [vmem:[#allocation43_spill] sm:$0xff] %v5595_v44  ;;  %v1424_v36 = vmul.f32 1.442695, %v1396_v1  ;;  %v1472_v11 = vmul.f32 1.442695, %v1444_v8  ;;  %v5608_v48 = vmax.f32 %v5526_v21, %v5576_v28  ;;  %v1493_v19 = vmul.f32 %v4035_v55, %v1173_v27 }
 0x218   : > { %v5578_v9 = vpop.permute.xlu0 %1332  ;;  %2186 = vrot.lane.b32.xlu1 %v5491_v62, %s4652_s3  ;;  %v8999_v62 = vld [vmem:[#allocation30_spill] sm:$0xff]  ;;  %v1525_v18 = vmul.f32 %v4035_v55, %v1269_v14  ;;  %v1589_v37 = vmul.f32 %v4037_v35, %v9004_v25  ;;  %v5619_v1 = vadd.f32 %v4033_v16, %v1156_v29  ;;  %4042 = vpow2.f32 %v1738_v2  ;;  %v9005_v27 = vld [vmem:[#allocation16_spill] sm:$0xff] }
 0x219   : > { %v5601_v63 = vmul.f32 %v9000_v10, %v8999_v62  ;;  %9002 = vst [vmem:[#allocation30_spill] sm:$0xff] %v5608_v48  ;;  %v2040_v62 = vsub.f32 %v5290_v5, %v5584_v13  ;;  %v1758_v8 = vmul.f32 1.442695, %v1731_v22  ;;  %v2088_v51 = vsub.f32 %v5554_v45, %v5584_v13  ;;  %v4039_v22 = vpop.eup %4038 }
 0x21a   : > { %2188 = vrot.lane.b32.xlu0 %v5591_v40, %s4652_s3  ;;  %v5603_v24 = vpop.permute.xlu1 %1666  ;;  %4044 = vpow2.f32 %v1786_v4  ;;  %v1806_v25 = vmul.f32 1.442695, %v1779_v12  ;;  %v5629_v14 = vmul.f32 %v9005_v27, %v5206_v15  ;;  %v5633_v16 = vadd.f32 %v1252_v57, %v1188_v52 }
 0x21b   : > { %v780_v5 = vsub.f32 %v5601_v63, %v5601_v63  ;;  %4046 = vpow2.f32 %v1424_v36  ;;  %v2041_v45 = vsub.f32 %v5526_v21, %v5608_v48  ;;  %v5639_v29 = vmul.f32 %v5212_v26, %v5518_v7 }
 0x21c   : > { %v5610_v0 = vpop.permute.xlu0 %1536  ;;  %2190 = vrot.lane.b32.xlu1 %v5615_v47, %s4652_s3  ;;  %v5643_v4 = vadd.f32 %v4037_v35, %v1493_v19  ;;  %v5645_v12 = vadd.f32 %v1589_v37, %v1525_v18  ;;  %4048 = vpow2.f32 %v1472_v11  ;;  %v2056_v15 = vmul.f32 1.442695, %v2040_v62 }
 0x21d   : > { %9003 = vst [vmem:[#allocation23_spill] sm:$0xff] %v5610_v0  ;;  %v4041_v52 = vpop.eup %4040  ;;  %4050 = vpow2.f32 %v1758_v8  ;;  %v2089_v21 = vsub.f32 %v5576_v28, %v5608_v48  ;;  %v5653_v26 = vmul.f32 %v5591_v40, %v5310_v49  ;;  %v800_v35 = vmul.f32 1.442695, %v780_v5 }
 0x21e   : > { %2192 = vrot.lane.b32.xlu0 %v9000_v10, %s4652_s3  ;;  %v5631_v55 = vpop.permute.xlu1 %1870  ;;  %9008 = vst [vmem:[#allocation16_spill] sm:$0xff] %v5643_v4  ;;  %9009 = vst [vmem:[#allocation44_spill] sm:$0xff] %v5645_v12  ;;  %v2104_v10 = vmul.f32 1.442695, %v2088_v51  ;;  %4052 = vpow2.f32 %v1806_v25  ;;  %v781_v57 = vsub.f32 %v5629_v14, %v5629_v14  ;;  %v5661_v36 = vmul.f32 %v5234_v23, %v5546_v50  ;;  %v5671_v51 = vld [vmem:[#allocation2 + $0x69] sm:$0xff]  ;;  %v9024_v4 = vld [vmem:[#allocation7_spill] sm:$0xff] }
 0x21f   : > { %9006 = vst [vmem:[#allocation22_spill] sm:$0xff] %v5631_v55  ;;  %v1482_v19 = vmul.f32 %v4039_v22, %v1162_v42  ;;  %v1514_v28 = vmul.f32 %v4039_v22, %v1258_v17  ;;  %v2058_v18 = vmul.f32 1.442695, %v2041_v45  ;;  %v790_v49 = vsub.f32 %v5639_v29, %v5639_v29 }
 0x220   : > { %v5641_v2 = vpop.permute.xlu0 %1556  ;;  %2194 = vrot.lane.b32.xlu1 %v9005_v27, %s4652_s3  ;;  %4054 = vpow2.f32 %v2056_v15  ;;  %v732_v8 = vsub.f32 -inf, %v5601_v63  ;;  %v5675_v23 = vmul.f32 %v5671_v51, %v5336_v30  ;;  %v2106_v42 = vmul.f32 1.442695, %v2089_v21  ;;  %v4558_v27 = vld [vmem:[#allocation2 + $0xe1] sm:$0xff] }
 0x221   : > { %9007 = vst [vmem:[#allocation24_spill] sm:$0xff] %v5641_v2  ;;  %4056 = vpow2.f32 %v2104_v10  ;;  %v733_v17 = vsub.f32 -inf, %v5629_v14  ;;  %v5682_v25 = vmax.f32 %v5477_v31, %v5653_v26  ;;  %v802_v5 = vmul.f32 1.442695, %v781_v57 }
 0x222   : > { %2196 = vrot.lane.b32.xlu0 %v5284_v41, %s4652_s3  ;;  %v5663_v11 = vpop.permute.xlu1 %1890  ;;  %v9011_v41 = vld [vmem:[#allocation26_spill] sm:$0xff]  ;;  %4058 = vpow2.f32 %v800_v35  ;;  %v791_v30 = vsub.f32 %v5661_v36, %v5661_v36  ;;  %v5689_v45 = vmul.f32 %v4558_v27, %v5348_v56  ;;  %v4043_v22 = vpop.eup %4042  ;;  %v5693_v15 = vadd.f32 %v4041_v52, %v1482_v19 }
 0x223   : > { %9010 = vst [vmem:[#allocation45_spill] sm:$0xff] %v5663_v11  ;;  %v1578_v62 = vmul.f32 %v4041_v52, %v9011_v41  ;;  %9012 = vst [vmem:[#allocation26_spill] sm:$0xff] %v5671_v51  ;;  %4060 = vpow2.f32 %v2058_v18  ;;  %v820_v10 = vmul.f32 1.442695, %v790_v49  ;;  %v742_v21 = vsub.f32 -inf, %v5639_v29 }
 0x224   : > { %v5667_v37 = vpop.permute.xlu0 %1964  ;;  %2198 = vrot.lane.b32.xlu1 %v5241_v38, %s4652_s3  ;;  %v752_v35 = vmul.f32 1.442695, %v732_v8  ;;  %v743_v57 = vsub.f32 -inf, %v5661_v36  ;;  %v5701_v48 = vmax.f32 %v5629_v14, %v5675_v23  ;;  %v5705_v56 = vmul.f32 %v5368_v3, %v5546_v50  ;;  %v4559_v8 = vld [vmem:[#allocation2 + $0xc1] sm:$0xff] }
 0x225   : > { %v5709_v19 = vadd.f32 %v1578_v62, %v1514_v28  ;;  %4062 = vpow2.f32 %v2106_v42  ;;  %v754_v18 = vmul.f32 1.442695, %v733_v17  ;;  %v1722_v49 = vsub.f32 %v5477_v31, %v5682_v25 }
 0x226   : > { %2200 = vrot.lane.b32.xlu0 %v5441_v54, %s4652_s3  ;;  %v5691_v38 = vpop.permute.xlu1 %1966  ;;  %v4045_v54 = vpop.eup %4044  ;;  %v1817_v59 = vmul.f32 %v4043_v22, %v5243_v53  ;;  %4064 = vpow2.f32 %v802_v5  ;;  %v822_v3 = vmul.f32 1.442695, %v791_v30  ;;  %v1849_v42 = vmul.f32 %v4043_v22, %v5254_v20  ;;  %v9015_v20 = vld [vmem:[#allocation27_spill] sm:$0xff] }
 0x227   : > { %v4047_v52 = vpop.eup %4046  ;;  %4066 = vpow2.f32 %v820_v10  ;;  %v772_v31 = vmul.f32 1.442695, %v742_v21  ;;  %v1770_v17 = vsub.f32 %v5653_v26, %v5682_v25  ;;  %v774_v53 = vmul.f32 1.442695, %v743_v57  ;;  %v5746_v57 = vld [vmem:[#allocation2 + $0x61] sm:$0xff] }
 0x228   : > { %v5696_v41 = vpop.permute.xlu0 %676  ;;  %2202 = vrot.lane.b32.xlu1 %v5465_v34, %s4652_s3  ;;  %v5714_v13 = vpop.eup %4048  ;;  %v5719_v34 = vmax.f32 %v5544_v33, %v5689_v45  ;;  %4068 = vpow2.f32 %v752_v35  ;;  %v1053_v5 = vsub.f32 %v5629_v14, %v5701_v48  ;;  %v5734_v30 = vmax.f32 %v5661_v36, %v5705_v56 }
 0x229   : > { %v4051_v62 = vpop.eup %4050  ;;  %v1913_v22 = vmul.f32 %v4045_v54, %v9015_v20  ;;  %4070 = vpow2.f32 %v754_v18  ;;  %v1740_v26 = vmul.f32 1.442695, %v1722_v49  ;;  %v1101_v10 = vsub.f32 %v5675_v23, %v5701_v48 }
 0x22a   : > { %2204 = vrot.lane.b32.xlu0 %v4559_v8, %s4652_s3  ;;  %9013 = vst [vmem:[#allocation46_spill] sm:$0xff] %v5719_v34  ;;  %v5721_v28 = vpop.permute.xlu1 %678  ;;  %v5728_v11 = vpop.eup %4052  ;;  %v1833_v35 = vadd.f32 %v4045_v54, %v1817_v59  ;;  %4072 = vpow2.f32 %v822_v3  ;;  %v1732_v14 = vsub.f32 %v5544_v33, %v5719_v34  ;;  %v1492_v23 = vmul.f32 %v4047_v52, %v5619_v1 }
 0x22b   : > { %v5742_v21 = vpop.eup %4054  ;;  %4074 = vpow2.f32 %v772_v31  ;;  %v1780_v59 = vsub.f32 %v5689_v45, %v5719_v34  ;;  %v1074_v3 = vmul.f32 1.442695, %v1053_v5  ;;  %v5767_v20 = vmul.f32 %v5671_v51, %v5453_v61 }
 0x22c   : > { %v5726_v8 = vpop.permute.xlu0 %868  ;;  %2206 = vrot.lane.b32.xlu1 %v5486_v6, %s4652_s3  ;;  %v5750_v6 = vmul.f32 %v5746_v57, %v5432_v39  ;;  %v5754_v49 = vpop.eup %4056  ;;  %4076 = vpow2.f32 %v774_v53  ;;  %v1063_v39 = vsub.f32 %v5661_v36, %v5734_v30  ;;  %v1929_v45 = vadd.f32 %v1913_v22, %v1849_v42  ;;  %v9018_v53 = vld [vmem:[#allocation28_spill] sm:$0xff] }
 0x22d   : > { %9014 = vst [vmem:[#allocation47_spill] sm:$0xff] %v5726_v8  ;;  %9017 = vst [vmem:[#allocation48_spill] sm:$0xff] %v5754_v49  ;;  %v5761_v33 = vpop.eup %4058  ;;  %4078 = vpow2.f32 %v1740_v26  ;;  %v1122_v31 = vmul.f32 1.442695, %v1101_v10  ;;  %v1524_v36 = vmul.f32 %v4047_v52, %v5633_v16  ;;  %v1588_v61 = vmul.f32 %v5714_v13, %v9018_v53  ;;  %v9021_v52 = vld [vmem:[#allocation29_spill] sm:$0xff] }
 0x22e   : > { %2208 = vrot.lane.b32.xlu0 %v4558_v27, %s4652_s3  ;;  %v5752_v18 = vpop.permute.xlu1 %870  ;;  %v1788_v27 = vmul.f32 1.442695, %v1770_v17  ;;  %v4061_v1 = vpop.eup %4060  ;;  %v1111_v17 = vsub.f32 %v5705_v56, %v5734_v30  ;;  %v1760_v5 = vmul.f32 1.442695, %v1732_v14  ;;  %v5782_v34 = vmax.f32 %v5601_v63, %v5750_v6  ;;  %v9020_v56 = vld [vmem:[#allocation15_spill] sm:$0xff] }
 0x22f   : > { %9016 = vst [vmem:[#allocation27_spill] sm:$0xff] %v5752_v18  ;;  %v5769_v18 = vld [vmem:[#allocation2 + $0xe9] sm:$0xff]  ;;  %v5786_v42 = vpop.eup %4062  ;;  %v1827_v22 = vmul.f32 %v4051_v62, %v5314_v46  ;;  %v1859_v26 = vmul.f32 %v4051_v62, %v9020_v56  ;;  %v1808_v10 = vmul.f32 1.442695, %v1780_v59  ;;  %v1923_v14 = vmul.f32 %v5728_v11, %v9021_v52 }
 0x230   : > { %v5759_v54 = vpop.permute.xlu0 %1648  ;;  %2210 = vrot.lane.b32.xlu1 %v5769_v18, %s4652_s3  ;;  %9019 = vst [vmem:[#allocation28_spill] sm:$0xff] %v5786_v42  ;;  %4080 = vpow2.f32 %v1788_v27  ;;  %v5792_v16 = vpop.eup %4064  ;;  %v1094_v53 = vmul.f32 1.442695, %v1063_v39  ;;  %v5798_v12 = vmax.f32 %v5701_v48, %v5767_v20  ;;  %v5802_v46 = vld [vmem:[#allocation2 + $0x22] sm:$0xff]  ;;  %v5807_v27 = vadd.f32 %v5714_v13, %v1492_v23 }
 0x231   : > { %4082 = vpow2.f32 %v1074_v3  ;;  %v5804_v62 = vpop.eup %4066  ;;  %v9023_v59 = vld [vmem:[#allocation12_spill] sm:$0xff]  ;;  %v1142_v3 = vmul.f32 1.442695, %v1111_v17  ;;  %v5813_v52 = vadd.f32 %v1588_v61, %v1524_v36  ;;  %v1052_v2 = vsub.f32 %v5601_v63, %v5782_v34 }
 0x232   : > { %2212 = vrot.lane.b32.xlu0 %v5518_v7, %s4652_s3  ;;  %v5784_v8 = vpop.permute.xlu1 %982  ;;  %9022 = vst [vmem:[#allocation15_spill] sm:$0xff] %v5798_v12  ;;  %v2136_v56 = vmul.f32 %v5742_v21, %v9023_v59  ;;  %4084 = vpow2.f32 %v1122_v31  ;;  %v4069_v39 = vpop.eup %4068  ;;  %v5819_v55 = vmul.f32 %v9024_v4, %v5518_v7  ;;  %v5824_v31 = vadd.f32 %v5728_v11, %v1827_v22  ;;  %v5838_v11 = vld [vmem:[#allocation2 + $0x42] sm:$0xff] }
 0x233   : > { %4086 = vpow2.f32 %v1760_v5  ;;  %v4071_v23 = vpop.eup %4070  ;;  %v2137_v17 = vmul.f32 %v4061_v1, %v1833_v35  ;;  %v1100_v36 = vsub.f32 %v5750_v6, %v5782_v34  ;;  %v5830_v5 = vld [vmem:[#allocation2 + $0x2a] sm:$0xff]  ;;  %v5832_v59 = vadd.f32 %v1923_v14, %v1859_v26 }
 0x234   : > { %v5790_v51 = vpop.permute.xlu0 %1668  ;;  %2214 = vrot.lane.b32.xlu1 %v5546_v50, %s4652_s3  ;;  %9026 = vst [vmem:[#allocation12_spill] sm:$0xff] %v5824_v31  ;;  %4088 = vpow2.f32 %v1808_v10  ;;  %v4073_v63 = vpop.eup %4072  ;;  %v1389_v4 = vsub.f32 %v5701_v48, %v5798_v12  ;;  %v9029_v35 = vld [vmem:[#allocation13_spill] sm:$0xff]  ;;  %v5845_v10 = vadd.f32 %v5754_v49, %v2136_v56  ;;  %v828_v31 = vmul.f32 0.0, %v4069_v39 }
 0x235   : > { %9028 = vst [vmem:[#allocation49_spill] sm:$0xff] %v5832_v59  ;;  %4090 = vpow2.f32 %v1094_v53  ;;  %v5842_v22 = vmul.f32 %v5742_v21, %v9029_v35  ;;  %v4075_v6 = vpop.eup %4074  ;;  %v9032_v26 = vld [vmem:[#allocation33_spill] sm:$0xff]  ;;  %v1072_v53 = vmul.f32 1.442695, %v1052_v2  ;;  %v1437_v59 = vsub.f32 %v5767_v20, %v5798_v12 }
 0x236   : > { %2296 = vrot.lane.b32.xlu0 %v5802_v46, %s4647_s26  ;;  %v5821_v13 = vpop.permute.xlu1 %1206  ;;  %9031 = vst [vmem:[#allocation50_spill] sm:$0xff] %v5845_v10  ;;  %v908_v14 = vmul.f32 %v5761_v33, %v9032_v26  ;;  %4092 = vpow2.f32 %v1142_v3  ;;  %v4077_v48 = vpop.eup %4076  ;;  %v5855_v21 = vmax.f32 %v5639_v29, %v5819_v55  ;;  %v5859_v56 = vmul.f32 %v4061_v1, %v1929_v45  ;;  %v5870_v20 = vld [vmem:[#allocation2 + $0x4a] sm:$0xff]  ;;  %v9039_v1 = vld [vmem:[#allocation35_spill] sm:$0xff] }
 0x237   : > { %9025 = vst [vmem:[#allocation29_spill] sm:$0xff] %v5821_v13  ;;  %9030 = vst [vmem:[#allocation13_spill] sm:$0xff] %v5842_v22  ;;  %v4079_v39 = vpop.eup %4078  ;;  %v5862_v26 = vadd.f32 %v5786_v42, %v2137_v17  ;;  %v829_v3 = vmul.f32 0.0, %v4071_v23  ;;  %v1120_v10 = vmul.f32 1.442695, %v1100_v36  ;;  %v9036_v22 = vld [vmem:[#allocation8_spill] sm:$0xff]  ;;  %v918_v45 = vmul.f32 %v5804_v62, %v9039_v1 }
 0x238   : > { %v5828_v61 = vpop.permute.xlu0 %1872  ;;  %2298 = vrot.lane.b32.xlu1 %v5830_v5, %s4647_s26  ;;  %9034 = vst [vmem:[#allocation51_spill] sm:$0xff] %v5859_v56  ;;  %v5866_v2 = vmul.f32 %v9036_v22, %v5546_v50  ;;  %v9038_v13 = vld [vmem:[#allocation34_spill] sm:$0xff]  ;;  %v838_v12 = vmul.f32 0.0, %v4075_v6  ;;  %v1410_v56 = vmul.f32 1.442695, %v1389_v4  ;;  %v5879_v17 = vadd.f32 %v5761_v33, %v828_v31 }
 0x239   : > { %9027 = vst [vmem:[#allocation7_spill] sm:$0xff] %v5828_v61  ;;  %9035 = vst [vmem:[#allocation52_spill] sm:$0xff] %v5862_v26  ;;  %v909_v61 = vmul.f32 %v5792_v16, %v9038_v13  ;;  %v5881_v36 = vadd.f32 %v908_v14, %v828_v31  ;;  %v839_v22 = vmul.f32 0.0, %v4077_v48  ;;  %v9040_v26 = vld [vmem:[#allocation36_spill] sm:$0xff]  ;;  %v1818_v4 = vmul.f32 %v4079_v39, %v5693_v15 }
 0x23a   : > { %2300 = vrot.lane.b32.xlu0 %v5838_v11, %s4647_s26  ;;  %v5857_v35 = vpop.permute.xlu1 %1318  ;;  %v4081_v23 = vpop.eup %4080  ;;  %v919_v42 = vmul.f32 %v4073_v63, %v9040_v26  ;;  %4094 = vpow2.f32 %v1072_v53  ;;  %v1458_v6 = vmul.f32 1.442695, %v1437_v59  ;;  %v1062_v1 = vsub.f32 %v5639_v29, %v5855_v21  ;;  %v5904_v59 = vld [vmem:[#allocation2 + $0x6a] sm:$0xff] }
 0x23b   : > { %9033 = vst [vmem:[#allocation33_spill] sm:$0xff] %v5857_v35  ;;  %v4083_v13 = vpop.eup %4082  ;;  %v845_v14 = vadd.f32 %v5792_v16, %v829_v3  ;;  %4096 = vpow2.f32 %v1120_v10  ;;  %v5896_v48 = vmax.f32 %v5734_v30, %v5866_v2  ;;  %v5900_v26 = vmul.f32 %v5746_v57, %v5548_v58  ;;  %9044 = vst [vmem:[#allocation53_spill] sm:$0xff] %v5904_v59  ;;  %v9045_v35 = vld [vmem:[#allocation17_spill] sm:$0xff] }
 0x23c   : > { %v5868_v49 = vpop.permute.xlu0 %1892  ;;  %2302 = vrot.lane.b32.xlu1 %v5870_v20, %s4647_s26  ;;  %v4085_v31 = vpop.eup %4084  ;;  %v925_v29 = vadd.f32 %v909_v61, %v829_v3  ;;  %4098 = vpow2.f32 %v1410_v56  ;;  %v1110_v16 = vsub.f32 %v5819_v55, %v5855_v21  ;;  %v5913_v50 = vadd.f32 %v918_v45, %v838_v12  ;;  %v9046_v56 = vld [vmem:[#allocation39_spill] sm:$0xff] }
 0x23d   : > { %9037 = vst [vmem:[#allocation8_spill] sm:$0xff] %v5868_v49  ;;  %v5884_v49 = vld [vmem:[#allocation2 + $0x62] sm:$0xff]  ;;  %9042 = vst [vmem:[#allocation35_spill] sm:$0xff] %v5896_v48  ;;  %v4087_v53 = vpop.eup %4086  ;;  %v855_v58 = vadd.f32 %v4073_v63, %v839_v22  ;;  %v935_v44 = vadd.f32 %v919_v42, %v839_v22  ;;  %v1914_v3 = vmul.f32 %v4081_v23, %v9046_v56  ;;  %4100 = vpow2.f32 %v1458_v6 }
 0x23e   : > { %2304 = vrot.lane.b32.xlu0 %v5884_v49, %s4647_s26  ;;  %v5891_v33 = vpop.permute.xlu1 %1542  ;;  %v4089_v10 = vpop.eup %4088  ;;  %v1092_v55 = vmul.f32 1.442695, %v1062_v1  ;;  %v1149_v0 = vmul.f32 %v4083_v13, %v845_v14  ;;  %v5931_v42 = vmul.f32 %v5615_v47, %v5568_v43  ;;  %v1447_v22 = vsub.f32 %v5866_v2, %v5896_v48  ;;  %v9050_v43 = vld [vmem:[#allocation19_spill] sm:$0xff] }
 0x23f   : > { %9041 = vst [vmem:[#allocation34_spill] sm:$0xff] %v5891_v33  ;;  %v5907_v33 = vadd.f32 %v5804_v62, %v838_v12  ;;  %v4091_v61 = vpop.eup %4090  ;;  %v5918_v62 = vadd.f32 %v4081_v23, %v1818_v4  ;;  %v1399_v12 = vsub.f32 %v5734_v30, %v5896_v48  ;;  %v1140_v23 = vmul.f32 1.442695, %v1110_v16  ;;  %v9049_v4 = vld [vmem:[#allocation37_spill] sm:$0xff]  ;;  %v5940_v30 = vld [vmem:[#allocation2 + $0xa2] sm:$0xff] }
 0x240   : > { %v5902_v15 = vpop.permute.xlu0 %980  ;;  %2306 = vrot.lane.b32.xlu1 %v5904_v59, %s4647_s26  ;;  %v4093_v59 = vpop.eup %4092  ;;  %v1828_v6 = vmul.f32 %v4087_v53, %v5807_v27  ;;  %v1860_v1 = vmul.f32 %v4087_v53, %v5813_v52  ;;  %v1924_v14 = vmul.f32 %v4089_v10, %v9050_v43  ;;  %v1191_v2 = vmul.f32 %v4091_v61, %v935_v44  ;;  %v9051_v16 = vld [vmem:[#allocation40_spill] sm:$0xff]  ;;  %v9052_v52 = vld [vmem:[#allocation5_spill] sm:$0xff] }
 0x241   : > { %9043 = vst [vmem:[#allocation36_spill] sm:$0xff] %v5902_v15  ;;  %v1850_v15 = vmul.f32 %v4079_v39, %v5709_v19  ;;  %v5927_v19 = vmax.f32 %v5782_v34, %v5900_v26  ;;  %v9048_v39 = vld [vmem:[#allocation18_spill] sm:$0xff]  ;;  %v1255_v56 = vmul.f32 %v4093_v59, %v9051_v16  ;;  %4102 = vpow2.f32 %v1092_v55  ;;  %v5966_v44 = vld [vmem:[#allocation2 + $0xaa] sm:$0xff] }
 0x242   : > { %2308 = vrot.lane.b32.xlu0 %v9045_v35, %s4647_s26  ;;  %v5921_v60 = vpop.permute.xlu1 %1650  ;;  %v1181_v35 = vmul.f32 %v4083_v13, %v925_v29  ;;  %v1245_v45 = vmul.f32 %v4085_v31, %v9048_v39  ;;  %v5947_v13 = vmul.f32 %v5578_v9, %v5518_v7  ;;  %v1159_v29 = vmul.f32 %v4091_v61, %v855_v58 }
 0x243   : > { %v1388_v27 = vsub.f32 %v5782_v34, %v5927_v19  ;;  %v5958_v53 = vmax.f32 %v9052_v52, %v5931_v42  ;;  %v5962_v9 = vmul.f32 %v5769_v18, %v5603_v24  ;;  %v1165_v61 = vadd.f32 %v4085_v31, %v1149_v0  ;;  %v5972_v34 = vld [vmem:[#allocation2 + $0xc2] sm:$0xff] }
 0x244   : > { %v5933_v63 = vpop.permute.xlu0 %1204  ;;  %2310 = vrot.lane.b32.xlu1 %v9049_v4, %s4647_s26  ;;  %v1430_v4 = vmul.f32 1.442695, %v1399_v12  ;;  %v4095_v58 = vpop.eup %4094  ;;  %v5968_v55 = vadd.f32 %v1914_v3, %v1850_v15  ;;  %4104 = vpow2.f32 %v1140_v23  ;;  %v1478_v12 = vmul.f32 1.442695, %v1447_v22  ;;  %v9056_v22 = vld [vmem:[#allocation6_spill] sm:$0xff] }
 0x245   : > { %9047 = vst [vmem:[#allocation17_spill] sm:$0xff] %v5933_v63  ;;  %v4097_v16 = vpop.eup %4096  ;;  %v5974_v63 = vadd.f32 %v4089_v10, %v1828_v6  ;;  %v1261_v24 = vadd.f32 %v1245_v45, %v1181_v35  ;;  %v5976_v18 = vadd.f32 %v1924_v14, %v1860_v1  ;;  %v5980_v48 = vmax.f32 %v5855_v21, %v5947_v13  ;;  %v6004_v1 = vld [vmem:[#allocation2 + $0xca] sm:$0xff] }
 0x246   : > { %2312 = vrot.lane.b32.xlu0 %v5940_v30, %s4647_s26  ;;  %v5952_v39 = vpop.permute.xlu1 %1670  ;;  %v4099_v0 = vpop.eup %4098  ;;  %v5984_v31 = vadd.f32 %v4093_v59, %v1159_v29  ;;  %v5986_v15 = vadd.f32 %v1255_v56, %v1191_v2  ;;  %v1436_v3 = vsub.f32 %v5900_v26, %v5927_v19  ;;  %v5992_v10 = vmul.f32 %v5591_v40, %v5667_v37  ;;  %v6015_v29 = vld [vmem:[#allocation2 + $0xe2] sm:$0xff] }
 0x247   : > { %9053 = vst [vmem:[#allocation39_spill] sm:$0xff] %v5974_v63  ;;  %9054 = vst [vmem:[#allocation18_spill] sm:$0xff] %v5976_v18  ;;  %4106 = vpow2.f32 %v1430_v4  ;;  %v1408_v45 = vmul.f32 1.442695, %v1388_v27  ;;  %v1723_v23 = vsub.f32 %v9052_v52, %v5958_v53  ;;  %v6000_v59 = vmax.f32 %v9056_v22, %v5962_v9  ;;  %v4101_v26 = vpop.eup %4100  ;;  %v9059_v4 = vld [vmem:[#allocation10_spill] sm:$0xff] }
 0x248   : > { %v5964_v43 = vpop.permute.xlu0 %1316  ;;  %2314 = vrot.lane.b32.xlu1 %v5966_v44, %s4647_s26  ;;  %v1148_v14 = vmul.f32 %v4095_v58, %v5879_v17  ;;  %4108 = vpow2.f32 %v1478_v12  ;;  %v1771_v40 = vsub.f32 %v5931_v42, %v5958_v53  ;;  %v6011_v37 = vmul.f32 %v5615_v47, %v5691_v38 }
 0x249   : > { %9057 = vst [vmem:[#allocation19_spill] sm:$0xff] %v6000_v59  ;;  %v1485_v2 = vmul.f32 %v4099_v0, %v1165_v61  ;;  %v1180_v56 = vmul.f32 %v4095_v58, %v5881_v36  ;;  %v1244_v27 = vmul.f32 %v4097_v16, %v9059_v4  ;;  %v1398_v17 = vsub.f32 %v5855_v21, %v5980_v48  ;;  %v9062_v36 = vld [vmem:[#allocation9_spill] sm:$0xff] }
 0x24a   : > { %2316 = vrot.lane.b32.xlu0 %v5972_v34, %s4647_s26  ;;  %v5994_v35 = vpop.permute.xlu1 %1874  ;;  %v1517_v42 = vmul.f32 %v4099_v0, %v1261_v24  ;;  %v1456_v52 = vmul.f32 1.442695, %v1436_v3  ;;  %v1446_v47 = vsub.f32 %v5947_v13, %v5980_v48  ;;  %v6027_v38 = vmax.f32 %v5682_v25, %v5992_v10  ;;  %v6036_v24 = vld [vmem:[#allocation2 + $0xea] sm:$0xff] }
 0x24b   : > { %9055 = vst [vmem:[#allocation37_spill] sm:$0xff] %v5994_v35  ;;  %v1581_v58 = vmul.f32 %v4101_v26, %v9062_v36  ;;  %4110 = vpow2.f32 %v1408_v45  ;;  %v1742_v12 = vmul.f32 1.442695, %v1723_v23  ;;  %v1733_v21 = vsub.f32 %v9056_v22, %v6000_v59  ;;  %v4103_v0 = vpop.eup %4102  ;;  %v6048_v45 = vld [vmem:[#allocation2 + $0x102] sm:$0xff] }
 0x24c   : > { %v6002_v6 = vpop.permute.xlu0 %1540  ;;  %2318 = vrot.lane.b32.xlu1 %v6004_v1, %s4647_s26  ;;  %9060 = vst [vmem:[#allocation5_spill] sm:$0xff] %v6027_v38  ;;  %v6038_v3 = vadd.f32 %v4097_v16, %v1148_v14  ;;  %v1790_v13 = vmul.f32 1.442695, %v1771_v40  ;;  %v1781_v18 = vsub.f32 %v5962_v9, %v6000_v59  ;;  %v6044_v63 = vmax.f32 %v5958_v53, %v6011_v37  ;;  %v6054_v16 = vld [vmem:[#allocation2 + $0x81] sm:$0xff] }
 0x24d   : > { %9058 = vst [vmem:[#allocation40_spill] sm:$0xff] %v6002_v6  ;;  %v6050_v23 = vadd.f32 %v4101_v26, %v1485_v2  ;;  %v6052_v22 = vadd.f32 %v1244_v27, %v1180_v56  ;;  %v1428_v36 = vmul.f32 1.442695, %v1398_v17  ;;  %v6058_v14 = vmul.f32 %v6054_v16, %v5696_v41  ;;  %v6075_v6 = vld [vmem:[#allocation2 + $0x10a] sm:$0xff] }
 0x24e   : > { %2320 = vrot.lane.b32.xlu0 %v6015_v29, %s4647_s26  ;;  %v6029_v61 = vpop.permute.xlu1 %1894  ;;  %9063 = vst [vmem:[#allocation10_spill] sm:$0xff] %v6044_v63  ;;  %v4105_v9 = vpop.eup %4104  ;;  %4112 = vpow2.f32 %v1456_v52  ;;  %v1476_v40 = vmul.f32 1.442695, %v1446_v47  ;;  %v2042_v59 = vsub.f32 %v5682_v25, %v6027_v38  ;;  %v6066_v26 = vmul.f32 %v5746_v57, %v5759_v54  ;;  %v6079_v47 = vld [vmem:[#allocation2 + $0x89] sm:$0xff] }
 0x24f   : > { %9061 = vst [vmem:[#allocation6_spill] sm:$0xff] %v6029_v61  ;;  %v1158_v56 = vmul.f32 %v4103_v0, %v5907_v33  ;;  %v6071_v27 = vadd.f32 %v1581_v58, %v1517_v42  ;;  %4114 = vpow2.f32 %v1742_v12  ;;  %v1762_v41 = vmul.f32 1.442695, %v1733_v21  ;;  %9064 = vst [vmem:[#allocation9_spill] sm:$0xff] %v6079_v47  ;;  %v9065_v58 = vld [vmem:[#allocation11_spill] sm:$0xff] }
 0x250   : > { %v6034_v4 = vpop.permute.xlu0 %1968  ;;  %2322 = vrot.lane.b32.xlu1 %v6036_v24, %s4647_s26  ;;  %4116 = vpow2.f32 %v1790_v13  ;;  %v1810_v52 = vmul.f32 1.442695, %v1781_v18  ;;  %v2043_v25 = vsub.f32 %v5958_v53, %v6044_v63  ;;  %v6083_v54 = vmul.f32 %v6079_v47, %v5721_v28 }
 0x251   : > { %v4107_v33 = vpop.eup %4106  ;;  %v1190_v42 = vmul.f32 %v4103_v0, %v5913_v50  ;;  %v1254_v12 = vmul.f32 %v4105_v9, %v9065_v58  ;;  %4118 = vpow2.f32 %v1428_v36  ;;  %v782_v18 = vsub.f32 %v6058_v14, %v6058_v14 }
 0x252   : > { %2324 = vrot.lane.b32.xlu0 %v6048_v45, %s4647_s26  ;;  %v6068_v2 = vpop.permute.xlu1 %1970  ;;  %v4109_v53 = vpop.eup %4108  ;;  %4120 = vpow2.f32 %v1476_v40  ;;  %v2060_v28 = vmul.f32 1.442695, %v2042_v59  ;;  %v734_v21 = vsub.f32 -inf, %v6058_v14  ;;  %v6096_v13 = vmax.f32 %v5927_v19, %v6066_v26 }
 0x253   : > { %v6100_v0 = vadd.f32 %v4105_v9, %v1158_v56  ;;  %4122 = vpow2.f32 %v1762_v41  ;;  %v2090_v36 = vsub.f32 %v5992_v10, %v6027_v38  ;;  %v1495_v59 = vmul.f32 %v4107_v33, %v5984_v31  ;;  %v9077_v38 = vld [vmem:[#allocation36_spill] sm:$0xff] }
 0x254   : > { %v6073_v17 = vpop.permute.xlu0 %680  ;;  %2326 = vrot.lane.b32.xlu1 %v6075_v6, %s4647_s26  ;;  %4124 = vpow2.f32 %v1810_v52  ;;  %v2062_v58 = vmul.f32 1.442695, %v2043_v25  ;;  %v735_v61 = vsub.f32 -inf, %v6083_v54  ;;  %v1527_v56 = vmul.f32 %v4107_v33, %v5986_v15 }
 0x255   : > { %v4111_v9 = vpop.eup %4110  ;;  %v1591_v10 = vmul.f32 %v4109_v53, %v5537_v32  ;;  %v804_v41 = vmul.f32 1.442695, %v782_v18  ;;  %4126 = vpow2.f32 %v2060_v28  ;;  %v756_v31 = vmul.f32 1.442695, %v734_v21 }
 0x256   : > { %2520 = vrot.lane.b32.xlu0 %v5802_v46, %s4653_s4  ;;  %v6098_v50 = vpop.permute.xlu1 %682  ;;  %v6106_v46 = vmul.f32 %v6079_v47, %v5784_v8  ;;  %v783_v8 = vsub.f32 %v6083_v54, %v6083_v54  ;;  %v1724_v52 = vsub.f32 %v5927_v19, %v6096_v13  ;;  %v1270_v15 = vadd.f32 %v1254_v12, %v1190_v42 }
 0x257   : > { %v2108_v32 = vmul.f32 1.442695, %v2090_v36  ;;  %v2091_v33 = vsub.f32 %v6011_v37, %v6044_v63  ;;  %v6136_v21 = vadd.f32 %v4109_v53, %v1495_v59  ;;  %v1484_v19 = vmul.f32 %v4111_v9, %v6038_v3  ;;  %v9075_v63 = vld [vmem:[#allocation53_spill] sm:$0xff] }
 0x258   : > { %v6108_v40 = vpop.permute.xlu0 %872  ;;  %2522 = vrot.lane.b32.xlu1 %v5830_v5, %s4653_s4  ;;  %v6124_v5 = vmul.f32 %v5790_v51, %v5518_v7  ;;  %v6132_v18 = vmax.f32 %v6083_v54, %v6106_v46  ;;  %v4113_v28 = vpop.eup %4112  ;;  %4128 = vpow2.f32 %v2062_v58  ;;  %v758_v7 = vmul.f32 1.442695, %v735_v61  ;;  %v9071_v58 = vld [vmem:[#allocation23_spill] sm:$0xff] }
 0x259   : > { %9066 = vst [vmem:[#allocation11_spill] sm:$0xff] %v6108_v40  ;;  %9068 = vst [vmem:[#allocation55_spill] sm:$0xff] %v6136_v21  ;;  %v4115_v51 = vpop.eup %4114  ;;  %v6141_v42 = vadd.f32 %v1591_v10, %v1527_v56  ;;  %v1516_v37 = vmul.f32 %v4111_v9, %v6052_v22  ;;  %4130 = vpow2.f32 %v804_v41  ;;  %v806_v12 = vmul.f32 1.442695, %v783_v8  ;;  %v9081_v40 = vld [vmem:[#allocation24_spill] sm:$0xff] }
 0x25a   : > { %2524 = vrot.lane.b32.xlu0 %v5838_v11, %s4653_s4  ;;  %v6126_v25 = vpop.permute.xlu1 %874  ;;  %v4117_v36 = vpop.eup %4116  ;;  %4132 = vpow2.f32 %v756_v31  ;;  %v1744_v53 = vmul.f32 1.442695, %v1724_v52  ;;  %v1772_v3 = vsub.f32 %v6066_v26, %v6096_v13  ;;  %v6150_v61 = vmax.f32 %v5980_v48, %v6124_v5  ;;  %v9073_v26 = vld [vmem:[#allocation21_spill] sm:$0xff] }
 0x25b   : > { %9067 = vst [vmem:[#allocation54_spill] sm:$0xff] %v6126_v25  ;;  %9069 = vst [vmem:[#allocation56_spill] sm:$0xff] %v6141_v42  ;;  %v4119_v59 = vpop.eup %4118  ;;  %v1580_v22 = vmul.f32 %v4113_v28, %v9071_v58  ;;  %4134 = vpow2.f32 %v2108_v32  ;;  %v2110_v9 = vmul.f32 1.442695, %v2091_v33  ;;  %v6159_v41 = vadd.f32 %v4113_v28, %v1484_v19  ;;  %v9074_v31 = vld [vmem:[#allocation33_spill] sm:$0xff]  ;;  %v9076_v33 = vld [vmem:[#allocation43_spill] sm:$0xff] }
 0x25c   : > { %v6134_v11 = vpop.permute.xlu0 %1652  ;;  %2526 = vrot.lane.b32.xlu1 %v5870_v20, %s4653_s4  ;;  %9070 = vst [vmem:[#allocation57_spill] sm:$0xff] %v6150_v61  ;;  %v4121_v10 = vpop.eup %4120  ;;  %v1819_v8 = vmul.f32 %v4115_v51, %v9073_v26  ;;  %4136 = vpow2.f32 %v758_v7  ;;  %v6164_v52 = vmul.f32 %v6079_v47, %v9074_v31  ;;  %v1851_v58 = vmul.f32 %v4115_v51, %v9076_v33  ;;  %v4565_v19 = vld [vmem:[#allocation2 + $0x82] sm:$0xff]  ;;  %v9078_v26 = vld [vmem:[#allocation22_spill] sm:$0xff] }
 0x25d   : > { %v4123_v32 = vpop.eup %4122  ;;  %4138 = vpow2.f32 %v806_v12  ;;  %v6173_v28 = vmul.f32 %v6054_v16, %v9077_v38  ;;  %v1915_v31 = vmul.f32 %v4117_v36, %v9078_v26  ;;  %v1494_v12 = vmul.f32 %v4119_v59, %v6100_v0  ;;  %v9080_v25 = vld [vmem:[#allocation16_spill] sm:$0xff] }
 0x25e   : > { %2528 = vrot.lane.b32.xlu0 %v5884_v49, %s4653_s4  ;;  %v6152_v20 = vpop.permute.xlu1 %986  ;;  %v1055_v49 = vsub.f32 %v6083_v54, %v6132_v18  ;;  %v1103_v54 = vsub.f32 %v6106_v46, %v6132_v18  ;;  %v4125_v7 = vpop.eup %4124  ;;  %4140 = vpow2.f32 %v1744_v53  ;;  %v1526_v46 = vmul.f32 %v4119_v59, %v1270_v15  ;;  %v9082_v0 = vld [vmem:[#allocation44_spill] sm:$0xff]  ;;  %v9083_v59 = vld [vmem:[#allocation45_spill] sm:$0xff] }
 0x25f   : > { %4142 = vpow2.f32 %v2110_v9  ;;  %v4127_v47 = vpop.eup %4126  ;;  %v1590_v42 = vmul.f32 %v4121_v10, %v9081_v40  ;;  %v1782_v53 = vsub.f32 %v6124_v5, %v6150_v61  ;;  %v1861_v15 = vmul.f32 %v4123_v32, %v9082_v0 }
 0x260   : > { %v6157_v56 = vpop.permute.xlu0 %1876  ;;  %2530 = vrot.lane.b32.xlu1 %v9075_v63, %s4653_s4  ;;  %v1734_v63 = vsub.f32 %v5980_v48, %v6150_v61  ;;  %v1078_v33 = vmul.f32 1.442695, %v1055_v49  ;;  %v6190_v48 = vmax.f32 %v6132_v18, %v6164_v52  ;;  %v1925_v9 = vmul.f32 %v4125_v7, %v9083_v59 }
 0x261   : > { %9072 = vst [vmem:[#allocation23_spill] sm:$0xff] %v6157_v56  ;;  %v1792_v56 = vmul.f32 1.442695, %v1772_v3  ;;  %v4566_v3 = vld [vmem:[#allocation2 + $0x8a] sm:$0xff]  ;;  %v1126_v49 = vmul.f32 1.442695, %v1103_v54  ;;  %v1835_v5 = vadd.f32 %v4117_v36, %v1819_v8  ;;  %v6201_v26 = vadd.f32 %v1580_v22, %v1516_v37 }
 0x262   : > { %2532 = vrot.lane.b32.xlu0 %v4565_v19, %s4653_s4  ;;  %v6179_v51 = vpop.permute.xlu1 %1210  ;;  %v1829_v19 = vmul.f32 %v4123_v32, %v9080_v25  ;;  %v6197_v25 = vmax.f32 %v6058_v14, %v6173_v28  ;;  %v4129_v40 = vpop.eup %4128  ;;  %v1764_v61 = vmul.f32 1.442695, %v1734_v63  ;;  %v6205_v32 = vadd.f32 %v4121_v10, %v1494_v12  ;;  %v9084_v36 = vld [vmem:[#allocation26_spill] sm:$0xff]  ;;  %v9090_v12 = vld [vmem:[#allocation47_spill] sm:$0xff] }
 0x263   : > { %9079 = vst [vmem:[#allocation21_spill] sm:$0xff] %v6179_v51  ;;  %4144 = vpow2.f32 %v1792_v56  ;;  %v1931_v0 = vadd.f32 %v1915_v31, %v1851_v58  ;;  %v2138_v54 = vmul.f32 %v4127_v47, %v5918_v62  ;;  %v6210_v35 = vadd.f32 %v1590_v42, %v1526_v46 }
 0x264   : > { %v6182_v38 = vpop.permute.xlu0 %984  ;;  %2534 = vrot.lane.b32.xlu1 %v4566_v3, %s4653_s4  ;;  %v4131_v3 = vpop.eup %4130  ;;  %4146 = vpow2.f32 %v1078_v33  ;;  %v1391_v37 = vsub.f32 %v6132_v18, %v6190_v48  ;;  %v6216_v22 = vmul.f32 %v9084_v36, %v5921_v60  ;;  %v6222_v62 = vadd.f32 %v4125_v7, %v1829_v19  ;;  %v9092_v19 = vld [vmem:[#allocation15_spill] sm:$0xff] }
 0x265   : > { %v4133_v21 = vpop.eup %4132  ;;  %v6224_v10 = vadd.f32 %v1925_v9, %v1861_v15  ;;  %4148 = vpow2.f32 %v1126_v49  ;;  %v1054_v42 = vsub.f32 %v6058_v14, %v6197_v25  ;;  %v2139_v8 = vmul.f32 %v4129_v40, %v1835_v5  ;;  %v9096_v49 = vld [vmem:[#allocation27_spill] sm:$0xff] }
 0x266   : > { %2536 = vrot.lane.b32.xlu0 %v5940_v30, %s4653_s4  ;;  %v6203_v51 = vpop.permute.xlu1 %1322  ;;  %v1812_v30 = vmul.f32 1.442695, %v1782_v53  ;;  %v6220_v56 = vpop.eup %4134  ;;  %9086 = vst [vmem:[#allocation53_spill] sm:$0xff] %v6222_v62  ;;  %4150 = vpow2.f32 %v1764_v61  ;;  %v1439_v60 = vsub.f32 %v6164_v52, %v6190_v48  ;;  %v830_v14 = vmul.f32 0.0, %v4133_v21 }
 0x267   : > { %9085 = vst [vmem:[#allocation33_spill] sm:$0xff] %v6220_v56  ;;  %9087 = vst [vmem:[#allocation43_spill] sm:$0xff] %v6224_v10  ;;  %v4137_v18 = vpop.eup %4136  ;;  %v6239_v63 = vadd.f32 %v6220_v56, %v2138_v54  ;;  %v910_v46 = vmul.f32 %v4131_v3, %v9090_v12  ;;  %v6245_v61 = vmul.f32 %v4127_v47, %v5968_v55  ;;  %v1414_v52 = vmul.f32 1.442695, %v1391_v37 }
 0x268   : > { %v6208_v59 = vpop.permute.xlu0 %1208  ;;  %2538 = vrot.lane.b32.xlu1 %v5966_v44, %s4653_s4  ;;  %v9088_v44 = vld [vmem:[#allocation41_spill] sm:$0xff]  ;;  %v4139_v31 = vpop.eup %4138  ;;  %4152 = vpow2.f32 %v1812_v30  ;;  %v6251_v53 = vmax.f32 %v9092_v19, %v6216_v22  ;;  %v831_v15 = vmul.f32 0.0, %v4137_v18  ;;  %v1076_v9 = vmul.f32 1.442695, %v1054_v42 }
 0x269   : > { %v6234_v58 = vmul.f32 %v5952_v39, %v9088_v44  ;;  %9089 = vst [vmem:[#allocation36_spill] sm:$0xff] %v6239_v63  ;;  %9091 = vst [vmem:[#allocation22_spill] sm:$0xff] %v6245_v61  ;;  %v4141_v33 = vpop.eup %4140  ;;  %v1102_v39 = vsub.f32 %v6173_v28, %v6197_v25  ;;  %v6259_v55 = vmul.f32 %v6054_v16, %v5964_v43  ;;  %v1462_v54 = vmul.f32 1.442695, %v1439_v60 }
 0x26a   : > { %2540 = vrot.lane.b32.xlu0 %v5972_v34, %s4653_s4  ;;  %v6236_v7 = vpop.permute.xlu1 %1546  ;;  %v6255_v21 = vpop.eup %4142  ;;  %v6263_v47 = vmul.f32 %v4129_v40, %v1931_v0  ;;  %v911_v5 = vmul.f32 %v4139_v31, %v9096_v49  ;;  %v6275_v42 = vadd.f32 %v4131_v3, %v830_v14  ;;  %v6277_v43 = vadd.f32 %v910_v46, %v830_v14 }
 0x26b   : > { %9093 = vst [vmem:[#allocation16_spill] sm:$0xff] %v6255_v21  ;;  %v6266_v28 = vadd.f32 %v6255_v21, %v2139_v8  ;;  %v6282_v40 = vmul.f32 %v5746_v57, %v6034_v4  ;;  %4154 = vpow2.f32 %v1414_v52  ;;  %v1124_v8 = vmul.f32 1.442695, %v1102_v39 }
 0x26c   : > { %v6242_v34 = vpop.permute.xlu0 %1320  ;;  %2542 = vrot.lane.b32.xlu1 %v6004_v1, %s4653_s4  ;;  %9094 = vst [vmem:[#allocation24_spill] sm:$0xff] %v6263_v47  ;;  %v9097_v1 = vld [vmem:[#allocation35_spill] sm:$0xff]  ;;  %v1725_v60 = vsub.f32 %v9092_v19, %v6251_v53  ;;  %v6290_v3 = vmul.f32 %v9084_v36, %v6068_v2  ;;  %v847_v44 = vadd.f32 %v4139_v31, %v831_v15  ;;  %4156 = vpow2.f32 %v1076_v9 }
 0x26d   : > { %9095 = vst [vmem:[#allocation44_spill] sm:$0xff] %v6266_v28  ;;  %v6271_v30 = vmax.f32 %v9097_v1, %v6234_v58  ;;  %v4145_v18 = vpop.eup %4144  ;;  %v1773_v57 = vsub.f32 %v6216_v22, %v6251_v53  ;;  %v6298_v4 = vmax.f32 %v6197_v25, %v6259_v55  ;;  %v927_v14 = vadd.f32 %v911_v5, %v831_v15  ;;  %v9101_v22 = vld [vmem:[#allocation7_spill] sm:$0xff] }
 0x26e   : > { %2544 = vrot.lane.b32.xlu0 %v6015_v29, %s4653_s4  ;;  %v6273_v37 = vpop.permute.xlu1 %1654  ;;  %v1820_v29 = vmul.f32 %v4141_v33, %v6159_v41  ;;  %v4147_v41 = vpop.eup %4146  ;;  %v1852_v2 = vmul.f32 %v4141_v33, %v6201_v26  ;;  %4158 = vpow2.f32 %v1462_v54  ;;  %v1916_v46 = vmul.f32 %v4145_v18, %v9101_v22  ;;  %v6324_v9 = vld [vmem:[#allocation2 + $0x40] sm:$0xff] }
 0x26f   : > { %9098 = vst [vmem:[#allocation45_spill] sm:$0xff] %v6271_v30  ;;  %v4149_v31 = vpop.eup %4148  ;;  %v1783_v52 = vsub.f32 %v6234_v58, %v6271_v30  ;;  %v1151_v33 = vmul.f32 %v4147_v41, %v847_v44  ;;  %4160 = vpow2.f32 %v1124_v8  ;;  %v1746_v19 = vmul.f32 1.442695, %v1725_v60  ;;  %v6328_v54 = vld [vmem:[#allocation2 + $0xa1] sm:$0xff] }
 0x270   : > { %v6284_v0 = vpop.permute.xlu0 %1544  ;;  %2546 = vrot.lane.b32.xlu1 %v6036_v24, %s4653_s4  ;;  %v1735_v24 = vsub.f32 %v9097_v1, %v6271_v30  ;;  %v6307_v12 = vadd.f32 %v4145_v18, %v1820_v29  ;;  %v4151_v26 = vpop.eup %4150  ;;  %v6320_v15 = vmax.f32 %v6251_v53, %v6290_v3  ;;  %v1183_v58 = vmul.f32 %v4147_v41, %v927_v14  ;;  %v9104_v18 = vld [vmem:[#allocation29_spill] sm:$0xff] }
 0x271   : > { %9099 = vst [vmem:[#allocation26_spill] sm:$0xff] %v6284_v0  ;;  %v1794_v49 = vmul.f32 1.442695, %v1773_v57  ;;  %v1390_v5 = vsub.f32 %v6197_v25, %v6298_v4  ;;  %v6332_v1 = vmul.f32 %v6328_v54, %v6073_v17  ;;  %v1247_v8 = vmul.f32 %v4149_v31, %v9104_v18  ;;  %v6339_v41 = vld [vmem:[#allocation2 + $0xa9] sm:$0xff]  ;;  %v9116_v0 = vld [vmem:[#allocation55_spill] sm:$0xff] }
 0x272   : > { %2548 = vrot.lane.b32.xlu0 %v6048_v45, %s4653_s4  ;;  %v6305_v36 = vpop.permute.xlu1 %1878  ;;  %v6314_v45 = vmax.f32 %v6096_v13, %v6282_v40  ;;  %9103 = vst [vmem:[#allocation15_spill] sm:$0xff] %v6320_v15  ;;  %v4153_v29 = vpop.eup %4152  ;;  %v1438_v60 = vsub.f32 %v6259_v55, %v6298_v4  ;;  %v6343_v25 = vmul.f32 %v6339_v41, %v6098_v50  ;;  %v1814_v14 = vmul.f32 1.442695, %v1783_v52 }
 0x273   : > { %9100 = vst [vmem:[#allocation41_spill] sm:$0xff] %v6305_v36  ;;  %v1830_v17 = vmul.f32 %v4151_v26, %v6205_v32  ;;  %v6348_v57 = vadd.f32 %v1916_v46, %v1852_v2  ;;  %v1862_v55 = vmul.f32 %v4151_v26, %v6210_v35  ;;  %4162 = vpow2.f32 %v1746_v19  ;;  %v6365_v32 = vld [vmem:[#allocation2 + $0x60] sm:$0xff] }
 0x274   : > { %9102 = vst [vmem:[#allocation47_spill] sm:$0xff] %v6314_v45  ;;  %v6316_v39 = vpop.permute.xlu0 %1972  ;;  %2550 = vrot.lane.b32.xlu1 %v6075_v6, %s4653_s4  ;;  %v1766_v6 = vmul.f32 1.442695, %v1735_v24  ;;  %v2044_v22 = vsub.f32 %v6096_v13, %v6314_v45  ;;  %v6352_v24 = vld [vmem:[#allocation2 + $0x48] sm:$0xff]  ;;  %v2045_v50 = vsub.f32 %v6251_v53, %v6320_v15  ;;  %v6361_v28 = vmul.f32 %v6054_v16, %v6134_v11 }
 0x275   : > { %v9105_v13 = vld [vmem:[#allocation8_spill] sm:$0xff]  ;;  %4164 = vpow2.f32 %v1794_v49  ;;  %v1412_v46 = vmul.f32 1.442695, %v1390_v5  ;;  %v784_v35 = vsub.f32 %v6332_v1, %v6332_v1  ;;  %v4155_v53 = vpop.eup %4154  ;;  %v1167_v52 = vadd.f32 %v4149_v31, %v1151_v33 }
 0x276   : > { %2633 = vrot.lane.b32.xlu0 %v6324_v9, %s4647_s26  ;;  %v6345_v44 = vpop.permute.xlu1 %1974  ;;  %v1926_v2 = vmul.f32 %v4153_v29, %v9105_v13  ;;  %4166 = vpow2.f32 %v1766_v6  ;;  %v1460_v11 = vmul.f32 1.442695, %v1438_v60  ;;  %v785_v26 = vsub.f32 %v6343_v25, %v6343_v25  ;;  %v4157_v63 = vpop.eup %4156  ;;  %v6377_v13 = vld [vmem:[#allocation2 + $0x68] sm:$0xff] }
 0x277   : > { %v1263_v10 = vadd.f32 %v1247_v8, %v1183_v58  ;;  %4168 = vpow2.f32 %v1814_v14  ;;  %v2064_v49 = vmul.f32 1.442695, %v2044_v22  ;;  %v736_v5 = vsub.f32 -inf, %v6332_v1  ;;  %v6394_v8 = vld [vmem:[#allocation2 + $0x80] sm:$0xff] }
 0x278   : > { %v6354_v18 = vpop.permute.xlu0 %1976  ;;  %2635 = vrot.lane.b32.xlu1 %v6352_v24, %s4647_s26  ;;  %v6381_v47 = vpop.eup %4158  ;;  %v2066_v31 = vmul.f32 1.442695, %v2045_v50  ;;  %v737_v33 = vsub.f32 -inf, %v6343_v25  ;;  %v6386_v6 = vmax.f32 %v6298_v4, %v6361_v28  ;;  %v6390_v58 = vmul.f32 %v6339_v41, %v6152_v20 }
 0x279   : > { %v6396_v60 = vadd.f32 %v4153_v29, %v1830_v17  ;;  %v6398_v14 = vadd.f32 %v1926_v2, %v1862_v55  ;;  %4170 = vpow2.f32 %v1412_v46  ;;  %v808_v22 = vmul.f32 1.442695, %v784_v35  ;;  %v4161_v50 = vpop.eup %4160  ;;  %v6413_v2 = vld [vmem:[#allocation2 + $0x88] sm:$0xff] }
 0x27a   : > { %2637 = vrot.lane.b32.xlu0 %v6365_v32, %s4647_s26  ;;  %v6374_v19 = vpop.permute.xlu1 %1978  ;;  %v1150_v61 = vmul.f32 %v4157_v63, %v6275_v42  ;;  %4172 = vpow2.f32 %v1460_v11  ;;  %v2092_v20 = vsub.f32 %v6282_v40, %v6314_v45  ;;  %v810_v21 = vmul.f32 1.442695, %v785_v26  ;;  %v9108_v11 = vld [vmem:[#allocation17_spill] sm:$0xff] }
 0x27b   : > { %9106 = vst [vmem:[#allocation27_spill] sm:$0xff] %v6396_v60  ;;  %9107 = vst [vmem:[#allocation35_spill] sm:$0xff] %v6398_v14  ;;  %4174 = vpow2.f32 %v2064_v49  ;;  %v2093_v29 = vsub.f32 %v6290_v3, %v6320_v15  ;;  %v760_v17 = vmul.f32 1.442695, %v736_v5  ;;  %v6411_v55 = vmul.f32 %v6328_v54, %v6182_v38  ;;  %v6425_v3 = vld [vmem:[#allocation2 + $0xa0] sm:$0xff] }
 0x27c   : > { %v6379_v62 = vpop.permute.xlu0 %1980  ;;  %2639 = vrot.lane.b32.xlu1 %v6377_v13, %s4647_s26  ;;  %4176 = vpow2.f32 %v2066_v31  ;;  %v762_v42 = vmul.f32 1.442695, %v737_v33  ;;  %v1726_v40 = vsub.f32 %v6298_v4, %v6386_v6  ;;  %v6421_v35 = vmax.f32 %v6343_v25, %v6390_v58 }
 0x27d   : > { %v1182_v38 = vmul.f32 %v4157_v63, %v6277_v43  ;;  %v1246_v26 = vmul.f32 %v4161_v50, %v9108_v11  ;;  %4178 = vpow2.f32 %v808_v22  ;;  %v1774_v49 = vsub.f32 %v6361_v28, %v6386_v6  ;;  %v4163_v4 = vpop.eup %4162  ;;  %v6443_v43 = vld [vmem:[#allocation2 + $0xa8] sm:$0xff] }
 0x27e   : > { %2641 = vrot.lane.b32.xlu0 %v6394_v8, %s4647_s26  ;;  %v6405_v56 = vpop.permute.xlu1 %1982  ;;  %v1487_v5 = vmul.f32 %v4155_v53, %v1167_v52  ;;  %v1519_v31 = vmul.f32 %v4155_v53, %v1263_v10  ;;  %v2112_v33 = vmul.f32 1.442695, %v2092_v20  ;;  %4180 = vpow2.f32 %v810_v21  ;;  %9110 = vst [vmem:[#allocation29_spill] sm:$0xff] %v6443_v43  ;;  %v9112_v53 = vld [vmem:[#allocation34_spill] sm:$0xff] }
 0x27f   : > { %v4165_v45 = vpop.eup %4164  ;;  %v2114_v14 = vmul.f32 1.442695, %v2093_v29  ;;  %4182 = vpow2.f32 %v760_v17  ;;  %v6437_v63 = vmax.f32 %v6332_v1, %v6411_v55  ;;  %v6441_v28 = vmul.f32 %v6339_v41, %v6203_v51  ;;  %v6453_v29 = vld [vmem:[#allocation2 + $0xc0] sm:$0xff] }
 0x280   : > { %v6415_v46 = vpop.permute.xlu0 %1984  ;;  %2643 = vrot.lane.b32.xlu1 %v6413_v2, %s4647_s26  ;;  %v4167_v10 = vpop.eup %4166  ;;  %v1583_v21 = vmul.f32 %v6381_v47, %v9112_v53  ;;  %4184 = vpow2.f32 %v762_v42  ;;  %v1748_v52 = vmul.f32 1.442695, %v1726_v40  ;;  %v1057_v20 = vsub.f32 %v6343_v25, %v6421_v35  ;;  %9113 = vst [vmem:[#allocation17_spill] sm:$0xff] %v6453_v29  ;;  %v9114_v25 = vld [vmem:[#allocation37_spill] sm:$0xff] }
 0x281   : > { %v4169_v51 = vpop.eup %4168  ;;  %v1166_v17 = vadd.f32 %v4161_v50, %v1150_v61  ;;  %v1262_v11 = vadd.f32 %v1246_v26, %v1182_v38  ;;  %v1796_v60 = vmul.f32 1.442695, %v1774_v49  ;;  %v1105_v36 = vsub.f32 %v6390_v58, %v6421_v35  ;;  %v6471_v38 = vld [vmem:[#allocation2 + $0xc8] sm:$0xff] }
 0x282   : > { %2645 = vrot.lane.b32.xlu0 %v6425_v3, %s4647_s26  ;;  %v6433_v15 = vpop.permute.xlu1 %1986  ;;  %v1821_v42 = vmul.f32 %v4163_v4, %v6050_v23  ;;  %v1853_v40 = vmul.f32 %v4163_v4, %v6071_v27  ;;  %v1917_v53 = vmul.f32 %v4165_v45, %v9114_v25  ;;  %4186 = vpow2.f32 %v2112_v33  ;;  %9117 = vst [vmem:[#allocation37_spill] sm:$0xff] %v6471_v38  ;;  %v9120_v4 = vld [vmem:[#allocation56_spill] sm:$0xff]  ;;  %v9121_v25 = vld [vmem:[#allocation6_spill] sm:$0xff] }
 0x283   : > { %9109 = vst [vmem:[#allocation7_spill] sm:$0xff] %v6433_v15  ;;  %v1831_v61 = vmul.f32 %v4167_v10, %v9116_v0  ;;  %4188 = vpow2.f32 %v2114_v14  ;;  %v1056_v50 = vsub.f32 %v6332_v1, %v6437_v63  ;;  %v6469_v58 = vmax.f32 %v6421_v35, %v6441_v28  ;;  %v6483_v1 = vld [vmem:[#allocation2 + $0xe0] sm:$0xff] }
 0x284   : > { %v6445_v22 = vpop.permute.xlu0 %1988  ;;  %2647 = vrot.lane.b32.xlu1 %v6443_v43, %s4647_s26  ;;  %4190 = vpow2.f32 %v1748_v52  ;;  %v1082_v26 = vmul.f32 1.442695, %v1057_v20  ;;  %v1104_v49 = vsub.f32 %v6411_v55, %v6437_v63  ;;  %v6479_v0 = vmul.f32 %v6328_v54, %v6242_v34  ;;  %9119 = vst [vmem:[#allocation58_spill] sm:$0xff] %v6483_v1 }
 0x285   : > { %9111 = vst [vmem:[#allocation8_spill] sm:$0xff] %v6445_v22  ;;  %v4171_v22 = vpop.eup %4170  ;;  %v1863_v33 = vmul.f32 %v4167_v10, %v9120_v4  ;;  %4192 = vpow2.f32 %v1796_v60  ;;  %v1130_v52 = vmul.f32 1.442695, %v1105_v36  ;;  %v6490_v20 = vadd.f32 %v6381_v47, %v1487_v5  ;;  %v9122_v10 = vld [vmem:[#allocation40_spill] sm:$0xff] }
 0x286   : > { %2649 = vrot.lane.b32.xlu0 %v6453_v29, %s4647_s26  ;;  %v6462_v30 = vpop.permute.xlu1 %1990  ;;  %v4173_v27 = vpop.eup %4172  ;;  %v6492_v34 = vadd.f32 %v1583_v21, %v1519_v31  ;;  %v1518_v43 = vmul.f32 %v4171_v22, %v1262_v11  ;;  %v1393_v36 = vsub.f32 %v6421_v35, %v6469_v58  ;;  %v6499_v60 = vld [vmem:[#allocation2 + $0xe8] sm:$0xff]  ;;  %v1933_v5 = vadd.f32 %v1917_v53, %v1853_v40 }
 0x287   : > { %9115 = vst [vmem:[#allocation34_spill] sm:$0xff] %v6462_v30  ;;  %v4175_v14 = vpop.eup %4174  ;;  %v1837_v30 = vadd.f32 %v4165_v45, %v1821_v42  ;;  %v1582_v4 = vmul.f32 %v4173_v27, %v9122_v10  ;;  %4194 = vpow2.f32 %v1082_v26  ;;  %v1128_v31 = vmul.f32 1.442695, %v1104_v49  ;;  %v9125_v26 = vld [vmem:[#allocation32_spill] sm:$0xff] }
 0x288   : > { %v6473_v23 = vpop.permute.xlu0 %2184  ;;  %2651 = vrot.lane.b32.xlu1 %v6471_v38, %s4647_s26  ;;  %v4177_v55 = vpop.eup %4176  ;;  %v1486_v38 = vmul.f32 %v4171_v22, %v1166_v17  ;;  %v6505_v45 = vmax.f32 %v6437_v63, %v6479_v0  ;;  %v6509_v22 = vld [vmem:[#allocation2 + $0x100] sm:$0xff]  ;;  %v6511_v17 = vadd.f32 %v4169_v51, %v1831_v61  ;;  %v2140_v11 = vmul.f32 %v4175_v14, %v6307_v12 }
 0x289   : > { %9118 = vst [vmem:[#allocation55_spill] sm:$0xff] %v6473_v23  ;;  %v1927_v23 = vmul.f32 %v4169_v51, %v9121_v25  ;;  %v4179_v15 = vpop.eup %4178  ;;  %v1080_v25 = vmul.f32 1.442695, %v1056_v50  ;;  %4196 = vpow2.f32 %v1130_v52  ;;  %v2141_v53 = vmul.f32 %v4177_v55, %v1837_v30  ;;  %v6526_v61 = vld [vmem:[#allocation2 + $0x120] sm:$0xff] }
 0x28a   : > { %2653 = vrot.lane.b32.xlu0 %v6483_v1, %s4647_s26  ;;  %v6494_v29 = vpop.permute.xlu1 %2186  ;;  %v4181_v47 = vpop.eup %4180  ;;  %9123 = vst [vmem:[#allocation56_spill] sm:$0xff] %v6511_v17  ;;  %v1502_v40 = vadd.f32 %v4173_v27, %v1486_v38  ;;  %v1441_v50 = vsub.f32 %v6441_v28, %v6469_v58  ;;  %v6522_v49 = vmax.f32 %v6469_v58, %v9125_v26  ;;  %v1418_v12 = vmul.f32 1.442695, %v1393_v36  ;;  %v9127_v27 = vld [vmem:[#allocation11_spill] sm:$0xff]  ;;  %v9131_v36 = vld [vmem:[#allocation9_spill] sm:$0xff] }
 0x28b   : > { %v4183_v21 = vpop.eup %4182  ;;  %v6513_v35 = vadd.f32 %v1927_v23, %v1863_v33  ;;  %v1598_v23 = vadd.f32 %v1582_v4, %v1518_v43  ;;  %4198 = vpow2.f32 %v1080_v25  ;;  %v6528_v33 = vld [vmem:[#allocation2 + $0x108] sm:$0xff]  ;;  %v6531_v52 = vmul.f32 %v4175_v14, %v6348_v57  ;;  %v9130_v14 = vld [vmem:[#allocation54_spill] sm:$0xff] }
 0x28c   : > { %v6501_v1 = vpop.permute.xlu0 %2188  ;;  %2655 = vrot.lane.b32.xlu1 %v6499_v60, %s4647_s26  ;;  %v4185_v42 = vpop.eup %4184  ;;  %v832_v28 = vmul.f32 0.0, %v4183_v21  ;;  %v912_v10 = vmul.f32 %v4179_v15, %v9127_v27  ;;  %4200 = vpow2.f32 %v1128_v31  ;;  %v913_v25 = vmul.f32 %v4181_v47, %v9130_v14 }
 0x28d   : > { %9124 = vst [vmem:[#allocation6_spill] sm:$0xff] %v6513_v35  ;;  %9126 = vst [vmem:[#allocation40_spill] sm:$0xff] %v6531_v52  ;;  %v6535_v38 = vpop.eup %4186  ;;  %v1392_v35 = vsub.f32 %v6437_v63, %v6505_v45  ;;  %v833_v57 = vmul.f32 0.0, %v4185_v42  ;;  %v6550_v21 = vmul.f32 %v9131_v36, %v6273_v37  ;;  %v1466_v27 = vmul.f32 1.442695, %v1441_v50  ;;  %v6575_v50 = vld [vmem:[#allocation2 + $0x128] sm:$0xff] }
 0x28e   : > { %2657 = vrot.lane.b32.xlu0 %v6509_v22, %s4647_s26  ;;  %v6524_v51 = vpop.permute.xlu1 %2190  ;;  %v6542_v43 = vpop.eup %4188  ;;  %v6545_v4 = vadd.f32 %v6535_v38, %v2140_v11  ;;  %v1729_v17 = vsub.f32 %v6469_v58, %v6522_v49  ;;  %v6559_v11 = vmul.f32 %v4177_v55, %v1933_v5  ;;  %4202 = vpow2.f32 %v1418_v12 }
 0x28f   : > { %9128 = vst [vmem:[#allocation32_spill] sm:$0xff] %v6542_v43  ;;  %v4191_v31 = vpop.eup %4190  ;;  %v6555_v63 = vadd.f32 %v6542_v43, %v2141_v53  ;;  %v1440_v37 = vsub.f32 %v6479_v0, %v6505_v45  ;;  %v6573_v53 = vmul.f32 %v6054_v16, %v6316_v39  ;;  %v848_v55 = vadd.f32 %v4179_v15, %v832_v28 }
 0x290   : > { %v6533_v30 = vpop.permute.xlu0 %2192  ;;  %2659 = vrot.lane.b32.xlu1 %v6528_v33, %s4647_s26  ;;  %9129 = vst [vmem:[#allocation11_spill] sm:$0xff] %v6545_v4  ;;  %9133 = vst [vmem:[#allocation9_spill] sm:$0xff] %v6559_v11  ;;  %v6563_v14 = vpop.eup %4192  ;;  %v9134_v4 = vld [vmem:[#allocation31_spill] sm:$0xff]  ;;  %v928_v5 = vadd.f32 %v912_v10, %v832_v28  ;;  %v1777_v12 = vsub.f32 %v9125_v26, %v6522_v49  ;;  %v849_v0 = vadd.f32 %v4181_v47, %v833_v57 }
 0x291   : > { %9132 = vst [vmem:[#allocation54_spill] sm:$0xff] %v6555_v63  ;;  %v6569_v52 = vmax.f32 %v6505_v45, %v9134_v4  ;;  %v1416_v63 = vmul.f32 1.442695, %v1392_v35  ;;  %v929_v11 = vadd.f32 %v913_v25, %v833_v57  ;;  %v6583_v43 = vmul.f32 %v4191_v31, %v1502_v40  ;;  %v4195_v39 = vpop.eup %4194  ;;  %v9135_v26 = vld [vmem:[#allocation23_spill] sm:$0xff] }
 0x292   : > { %2661 = vrot.lane.b32.xlu0 %v6526_v61, %s4647_s26  ;;  %v6561_v42 = vpop.permute.xlu1 %2194  ;;  %v6587_v16 = vmax.f32 %v6190_v48, %v6550_v21  ;;  %v6591_v15 = vmul.f32 %v4191_v31, %v1598_v23  ;;  %v6595_v35 = vmul.f32 %v6563_v14, %v9135_v26  ;;  %4204 = vpow2.f32 %v1466_v27 }
 0x293   : > { %v1754_v47 = vmul.f32 1.442695, %v1729_v17  ;;  %v4197_v40 = vpop.eup %4196  ;;  %v1464_v10 = vmul.f32 1.442695, %v1440_v37  ;;  %v1728_v57 = vsub.f32 %v6505_v45, %v6569_v52  ;;  %v6603_v25 = vmax.f32 %v6386_v6, %v6573_v53 }
 0x294   : > { %v6577_v58 = vpop.permute.xlu0 %2196  ;;  %2663 = vrot.lane.b32.xlu1 %v6575_v50, %s4647_s26  ;;  %v1802_v31 = vmul.f32 1.442695, %v1777_v12  ;;  %4206 = vpow2.f32 %v1416_v63  ;;  %v1776_v17 = vsub.f32 %v9134_v4, %v6569_v52  ;;  %v6615_v27 = vmul.f32 %v6328_v54, %v6354_v18  ;;  %v9136_v63 = vld [vmem:[#allocation21_spill] sm:$0xff]  ;;  %v6630_v18 = vld [vmem:[#allocation2 + $0xc1] sm:$0xff] }
 0x295   : > { %v4199_v45 = vpop.eup %4198  ;;  %v1153_v37 = vmul.f32 %v4195_v39, %v849_v0  ;;  %v1185_v26 = vmul.f32 %v4195_v39, %v929_v11  ;;  %v1249_v54 = vmul.f32 %v4197_v40, %v9136_v63  ;;  %4208 = vpow2.f32 %v1754_v47  ;;  %9137 = vst [vmem:[#allocation31_spill] sm:$0xff] %v6630_v18  ;;  %v9141_v63 = vld [vmem:[#allocation38_spill] sm:$0xff] }
 0x296   : > { %2857 = vrot.lane.b32.xlu0 %v6324_v9, %s4654_s5  ;;  %v6597_v28 = vpop.permute.xlu1 %2198  ;;  %v6607_v9 = vmul.f32 %v9131_v36, %v6345_v44  ;;  %v1727_v44 = vsub.f32 %v6190_v48, %v6587_v16  ;;  %v6623_v36 = vmul.f32 %v6339_v41, %v6374_v19  ;;  %v4201_v4 = vpop.eup %4200  ;;  %v6634_v11 = vmul.f32 %v6630_v18, %v6379_v62 }
 0x297   : > { %4210 = vpow2.f32 %v1464_v10  ;;  %v1752_v41 = vmul.f32 1.442695, %v1728_v57  ;;  %v1800_v0 = vmul.f32 1.442695, %v1776_v17  ;;  %v6648_v62 = vmax.f32 %v6569_v52, %v6615_v27 }
 0x298   : > { %v6609_v23 = vpop.permute.xlu0 %2200  ;;  %2859 = vrot.lane.b32.xlu1 %v6352_v24, %s4654_s5  ;;  %v1775_v24 = vsub.f32 %v6550_v21, %v6587_v16  ;;  %v6642_v19 = vmax.f32 %v6587_v16, %v6607_v9  ;;  %v1152_v21 = vmul.f32 %v4199_v45, %v848_v55  ;;  %4212 = vpow2.f32 %v1802_v31  ;;  %v4203_v39 = vpop.eup %4202 }
 0x299   : > { %9139 = vst [vmem:[#allocation21_spill] sm:$0xff] %v6648_v62  ;;  %v1184_v47 = vmul.f32 %v4199_v45, %v928_v5  ;;  %v1750_v10 = vmul.f32 1.442695, %v1727_v44  ;;  %v6655_v57 = vmax.f32 %v6522_v49, %v6623_v36  ;;  %v1169_v55 = vadd.f32 %v4197_v40, %v1153_v37  ;;  %v6673_v37 = vld [vmem:[#allocation2 + $0xc9] sm:$0xff] }
 0x29a   : > { %2861 = vrot.lane.b32.xlu0 %v6365_v32, %s4654_s5  ;;  %v6636_v48 = vpop.permute.xlu1 %2202  ;;  %v2046_v32 = vsub.f32 %v6386_v6, %v6603_v25  ;;  %9138 = vst [vmem:[#allocation23_spill] sm:$0xff] %v6642_v19  ;;  %v1248_v6 = vmul.f32 %v4201_v4, %v6208_v59  ;;  %v1798_v31 = vmul.f32 1.442695, %v1775_v24  ;;  %v2094_v17 = vsub.f32 %v6573_v53, %v6603_v25 }
 0x29b   : > { %9140 = vst [vmem:[#allocation59_spill] sm:$0xff] %v6655_v57  ;;  %v1265_v59 = vadd.f32 %v1249_v54, %v1185_v26  ;;  %4214 = vpow2.f32 %v1752_v41  ;;  %v2047_v44 = vsub.f32 %v6587_v16, %v6642_v19  ;;  %v1489_v40 = vmul.f32 %v4203_v39, %v1169_v55  ;;  %9143 = vst [vmem:[#allocation60_spill] sm:$0xff] %v6673_v37  ;;  %v9145_v55 = vld [vmem:[#allocation20_spill] sm:$0xff] }
 0x29c   : > { %v6644_v12 = vpop.permute.xlu0 %2204  ;;  %2863 = vrot.lane.b32.xlu1 %v6377_v13, %s4654_s5  ;;  %v6663_v13 = vmax.f32 %v9141_v63, %v6634_v11  ;;  %v2068_v45 = vmul.f32 1.442695, %v2046_v32  ;;  %4216 = vpow2.f32 %v1800_v0  ;;  %v2048_v53 = vsub.f32 %v6569_v52, %v6648_v62 }
 0x29d   : > { %v6677_v24 = vmul.f32 %v6673_v37, %v6405_v56  ;;  %v1168_v26 = vadd.f32 %v4201_v4, %v1152_v21  ;;  %v1264_v54 = vadd.f32 %v1248_v6, %v1184_v47  ;;  %4218 = vpow2.f32 %v1750_v10  ;;  %v6691_v21 = vld [vmem:[#allocation2 + $0xe1] sm:$0xff]  ;;  %v9152_v37 = vld [vmem:[#allocation26_spill] sm:$0xff] }
 0x29e   : > { %2865 = vrot.lane.b32.xlu0 %v6394_v8, %s4654_s5  ;;  %9142 = vst [vmem:[#allocation38_spill] sm:$0xff] %v6663_v13  ;;  %v6665_v5 = vpop.permute.xlu1 %2206  ;;  %v4205_v8 = vpop.eup %4204  ;;  %v2049_v16 = vsub.f32 %v6522_v49, %v6655_v57  ;;  %v1521_v52 = vmul.f32 %v4203_v39, %v1265_v59  ;;  %4220 = vpow2.f32 %v1798_v31  ;;  %v2116_v32 = vmul.f32 1.442695, %v2094_v17  ;;  %9144 = vst [vmem:[#allocation61_spill] sm:$0xff] %v6691_v21 }
 0x29f   : > { %v4207_v41 = vpop.eup %4206  ;;  %v2050_v56 = vsub.f32 %v9141_v63, %v6663_v13  ;;  %4222 = vpow2.f32 %v2068_v45  ;;  %v2095_v4 = vsub.f32 %v6607_v9, %v6642_v19  ;;  %v6695_v49 = vmul.f32 %v6691_v21, %v6415_v46  ;;  %v9146_v9 = vld [vmem:[#allocation29_spill] sm:$0xff] }
 0x2a0   : > { %v6669_v18 = vpop.permute.xlu0 %2208  ;;  %2867 = vrot.lane.b32.xlu1 %v6413_v2, %s4654_s5  ;;  %v2070_v2 = vmul.f32 1.442695, %v2047_v44  ;;  %v6699_v39 = vpop.eup %4208  ;;  %v1505_v47 = vadd.f32 %v4205_v8, %v1489_v40  ;;  %v1585_v6 = vmul.f32 %v4205_v8, %v6236_v7  ;;  %v2072_v10 = vmul.f32 1.442695, %v2048_v53  ;;  %v6710_v45 = vld [vmem:[#allocation2 + $0xe9] sm:$0xff]  ;;  %v9148_v44 = vld [vmem:[#allocation7_spill] sm:$0xff] }
 0x2a1   : > { %v6704_v31 = vmax.f32 %v9145_v55, %v6677_v24  ;;  %v4211_v17 = vpop.eup %4210  ;;  %v1488_v63 = vmul.f32 %v4207_v41, %v1168_v26  ;;  %v2096_v46 = vsub.f32 %v6615_v27, %v6648_v62  ;;  %v2074_v59 = vmul.f32 1.442695, %v2049_v16  ;;  %9147 = vst [vmem:[#allocation20_spill] sm:$0xff] %v6710_v45  ;;  %v9149_v7 = vld [vmem:[#allocation17_spill] sm:$0xff]  ;;  %v9160_v62 = vld [vmem:[#allocation34_spill] sm:$0xff] }
 0x2a2   : > { %2869 = vrot.lane.b32.xlu0 %v6425_v3, %s4654_s5  ;;  %v6687_v0 = vpop.permute.xlu1 %2210  ;;  %v6714_v40 = vmul.f32 %v6710_v45, %v9148_v44  ;;  %v6718_v8 = vpop.eup %4212  ;;  %v1520_v53 = vmul.f32 %v4207_v41, %v1264_v54  ;;  %4224 = vpow2.f32 %v2116_v32  ;;  %v2097_v26 = vsub.f32 %v6623_v36, %v6655_v57  ;;  %v9151_v44 = vld [vmem:[#allocation46_spill] sm:$0xff]  ;;  %v6735_v41 = vld [vmem:[#allocation2 + $0x101] sm:$0xff] }
 0x2a3   : > { %4226 = vpow2.f32 %v2070_v2  ;;  %v2118_v27 = vmul.f32 1.442695, %v2095_v4  ;;  %v2098_v16 = vsub.f32 %v6634_v11, %v6663_v13  ;;  %v6728_v45 = vmax.f32 %v9151_v44, %v6695_v49  ;;  %9153 = vst [vmem:[#allocation7_spill] sm:$0xff] %v6735_v41  ;;  %v9154_v32 = vld [vmem:[#allocation8_spill] sm:$0xff]  ;;  %v9155_v11 = vld [vmem:[#allocation37_spill] sm:$0xff]  ;;  %v9156_v57 = vld [vmem:[#allocation19_spill] sm:$0xff] }
 0x2a4   : > { %v6697_v3 = vpop.permute.xlu0 %2212  ;;  %2871 = vrot.lane.b32.xlu1 %v9146_v9, %s4654_s5  ;;  %v2076_v9 = vmul.f32 1.442695, %v2050_v56  ;;  %v1584_v54 = vmul.f32 %v4211_v17, %v9152_v37  ;;  %4228 = vpow2.f32 %v2072_v10  ;;  %v2051_v36 = vsub.f32 %v9145_v55, %v6704_v31  ;;  %v9158_v10 = vld [vmem:[#allocation58_spill] sm:$0xff] }
 0x2a5   : > { %v6739_v56 = vmul.f32 %v6735_v41, %v9154_v32  ;;  %v4215_v2 = vpop.eup %4214  ;;  %v1504_v4 = vadd.f32 %v4211_v17, %v1488_v63  ;;  %v2120_v13 = vmul.f32 1.442695, %v2096_v46  ;;  %4230 = vpow2.f32 %v2074_v59 }
 0x2a6   : > { %2873 = vrot.lane.b32.xlu0 %v9149_v7, %s4654_s5  ;;  %v6722_v21 = vpop.permute.xlu1 %2214  ;;  %v6745_v37 = vmax.f32 %v9156_v57, %v6714_v40  ;;  %v6749_v55 = vpop.eup %4216  ;;  %v1838_v32 = vadd.f32 %v6563_v14, %v6583_v43  ;;  %v6755_v41 = vadd.f32 %v6595_v35, %v6591_v15  ;;  %4232 = vpow2.f32 %v2076_v9 }
 0x2a7   : > { %9150 = vst [vmem:[#allocation29_spill] sm:$0xff] %v6722_v21  ;;  %v4219_v63 = vpop.eup %4218  ;;  %v1601_v46 = vadd.f32 %v1585_v6, %v1521_v52  ;;  %v2124_v59 = vmul.f32 1.442695, %v2098_v16  ;;  %v2052_v21 = vsub.f32 %v9151_v44, %v6728_v45  ;;  %v1825_v15 = vmul.f32 %v6699_v39, %v1505_v47 }
 0x2a8   : > { %v6730_v7 = vpop.permute.xlu0 %2296  ;;  %2875 = vrot.lane.b32.xlu1 %v9155_v11, %s4654_s5  ;;  %9157 = vst [vmem:[#allocation17_spill] sm:$0xff] %v6745_v37  ;;  %v2122_v11 = vmul.f32 1.442695, %v2097_v26  ;;  %v4221_v14 = vpop.eup %4220  ;;  %4234 = vpow2.f32 %v2118_v27  ;;  %v2078_v35 = vmul.f32 1.442695, %v2051_v36  ;;  %v9161_v26 = vld [vmem:[#allocation57_spill] sm:$0xff]  ;;  %v1824_v9 = vmul.f32 %v4215_v2, %v1504_v4 }
 0x2a9   : > { %v6772_v52 = vmax.f32 %v9161_v26, %v6739_v56  ;;  %v6776_v6 = vpop.eup %4222  ;;  %v1600_v16 = vadd.f32 %v1584_v54, %v1520_v53  ;;  %4236 = vpow2.f32 %v2120_v13  ;;  %v1823_v47 = vmul.f32 %v4219_v63, %v6490_v20 }
 0x2aa   : > { %2877 = vrot.lane.b32.xlu0 %v9158_v10, %s4654_s5  ;;  %v6757_v17 = vpop.permute.xlu1 %2298  ;;  %v6761_v10 = vld [vmem:[#allocation2 + $0x109] sm:$0xff]  ;;  %v1855_v27 = vmul.f32 %v4219_v63, %v6492_v34  ;;  %4238 = vpow2.f32 %v2122_v11  ;;  %v2099_v44 = vsub.f32 %v6677_v24, %v6704_v31  ;;  %v2080_v36 = vmul.f32 1.442695, %v2052_v21 }
 0x2ab   : > { %9159 = vst [vmem:[#allocation46_spill] sm:$0xff] %v6761_v10  ;;  %v6765_v19 = vmul.f32 %v6761_v10, %v9160_v62  ;;  %9162 = vst [vmem:[#allocation26_spill] sm:$0xff] %v6772_v52  ;;  %v2053_v62 = vsub.f32 %v9156_v57, %v6745_v37  ;;  %4240 = vpow2.f32 %v2124_v59  ;;  %v2100_v13 = vsub.f32 %v6695_v49, %v6728_v45  ;;  %v9163_v57 = vld [vmem:[#allocation45_spill] sm:$0xff] }
 0x2ac   : > { %v6767_v43 = vpop.permute.xlu0 %2300  ;;  %2879 = vrot.lane.b32.xlu1 %v6499_v60, %s4654_s5  ;;  %v6796_v20 = vpop.eup %4224  ;;  %v9165_v34 = vld [vmem:[#allocation41_spill] sm:$0xff]  ;;  %v2142_v4 = vmul.f32 %v6776_v6, %v1838_v32  ;;  %4242 = vpow2.f32 %v2078_v35  ;;  %v2054_v24 = vsub.f32 %v9161_v26, %v6772_v52  ;;  %v6807_v49 = vmul.f32 %v6699_v39, %v1601_v46 }
 0x2ad   : > { %v6792_v53 = vmax.f32 %v9163_v57, %v6765_v19  ;;  %v1919_v54 = vmul.f32 %v4221_v14, %v9165_v34  ;;  %v6804_v21 = vpop.eup %4226  ;;  %v1841_v11 = vadd.f32 %v6718_v8, %v1825_v15  ;;  %v2082_v63 = vmul.f32 1.442695, %v2053_v62 }
 0x2ae   : > { %2881 = vrot.lane.b32.xlu0 %v6509_v22, %s4654_s5  ;;  %v6786_v60 = vpop.permute.xlu1 %2302  ;;  %v2101_v59 = vsub.f32 %v6714_v40, %v6745_v37  ;;  %v6814_v32 = vpop.eup %4228  ;;  %v1839_v35 = vadd.f32 %v4221_v14, %v1823_v47  ;;  %v6816_v26 = vmul.f32 %v4215_v2, %v1600_v16  ;;  %v2102_v34 = vsub.f32 %v6739_v56, %v6772_v52  ;;  %v6855_v52 = vld [vmem:[#allocation2 + $0x49] sm:$0xff] }
 0x2af   : > { %9164 = vst [vmem:[#allocation8_spill] sm:$0xff] %v6792_v53  ;;  %v6822_v46 = vpop.eup %4230  ;;  %v1840_v15 = vadd.f32 %v6749_v55, %v1824_v9  ;;  %4244 = vpow2.f32 %v2080_v36  ;;  %v2128_v40 = vmul.f32 1.442695, %v2100_v13  ;;  %v6831_v2 = vadd.f32 %v1919_v54, %v1855_v27  ;;  %v6839_v9 = vld [vmem:[#allocation2 + $0x41] sm:$0xff]  ;;  %9171 = vst [vmem:[#allocation19_spill] sm:$0xff] %v6855_v52 }
 0x2b0   : > { %v6794_v22 = vpop.permute.xlu0 %2304  ;;  %2883 = vrot.lane.b32.xlu1 %v6528_v33, %s4654_s5  ;;  %v2126_v33 = vmul.f32 1.442695, %v2099_v44  ;;  %v6829_v14 = vpop.eup %4232  ;;  %v6834_v16 = vadd.f32 %v6796_v20, %v2142_v4  ;;  %v2143_v56 = vmul.f32 %v6804_v21, %v1839_v35  ;;  %v2084_v47 = vmul.f32 1.442695, %v2054_v24  ;;  %v9167_v4 = vld [vmem:[#allocation55_spill] sm:$0xff]  ;;  %v9168_v24 = vld [vmem:[#allocation48_spill] sm:$0xff] }
 0x2b1   : > { %v2144_v44 = vmul.f32 %v6814_v32, %v1840_v15  ;;  %4246 = vpow2.f32 %v2082_v63  ;;  %v2130_v36 = vmul.f32 1.442695, %v2101_v59  ;;  %v2103_v13 = vsub.f32 %v6765_v19, %v6792_v53  ;;  %v9169_v15 = vld [vmem:[#allocation14_spill] sm:$0xff]  ;;  %v9170_v19 = vld [vmem:[#allocation28_spill] sm:$0xff] }
 0x2b2   : > { %2885 = vrot.lane.b32.xlu0 %v6526_v61, %s4654_s5  ;;  %v6820_v39 = vpop.permute.xlu1 %2306  ;;  %v2055_v61 = vsub.f32 %v9163_v57, %v6792_v53  ;;  %9166 = vst [vmem:[#allocation37_spill] sm:$0xff] %v6834_v16  ;;  %v4235_v27 = vpop.eup %4234  ;;  %v2145_v57 = vmul.f32 %v6822_v46, %v1841_v11  ;;  %4248 = vpow2.f32 %v2126_v33  ;;  %v2132_v54 = vmul.f32 1.442695, %v2102_v34  ;;  %v9173_v34 = vld [vmem:[#allocation33_spill] sm:$0xff] }
 0x2b3   : > { %v4237_v16 = vpop.eup %4236  ;;  %v2146_v63 = vmul.f32 %v6829_v14, %v9169_v15  ;;  %4250 = vpow2.f32 %v2128_v40  ;;  %v2233_v53 = vmul.f32 %v9170_v19, %v6494_v29  ;;  %v6859_v33 = vadd.f32 %v4235_v27, %v2143_v56  ;;  %v6867_v40 = vld [vmem:[#allocation2 + $0x61] sm:$0xff] }
 0x2b4   : > { %v6827_v62 = vpop.permute.xlu0 %2308  ;;  %2887 = vrot.lane.b32.xlu1 %v6575_v50, %s4654_s5  ;;  %v2232_v50 = vmul.f32 %v9168_v24, %v9167_v4  ;;  %v2086_v59 = vmul.f32 1.442695, %v2055_v61  ;;  %v4239_v11 = vpop.eup %4238  ;;  %4252 = vpow2.f32 %v2084_v47  ;;  %v2234_v4 = vmul.f32 %v9173_v34, %v6501_v1  ;;  %v9174_v24 = vld [vmem:[#allocation16_spill] sm:$0xff]  ;;  %9175 = vst [vmem:[#allocation34_spill] sm:$0xff] %v6867_v40 }
 0x2b5   : > { %9172 = vst [vmem:[#allocation58_spill] sm:$0xff] %v6859_v33  ;;  %v2235_v37 = vmul.f32 %v9174_v24, %v6524_v51  ;;  %v4241_v29 = vpop.eup %4240  ;;  %v6869_v61 = vadd.f32 %v4237_v16, %v2144_v44  ;;  %4254 = vpow2.f32 %v2130_v36  ;;  %v2134_v15 = vmul.f32 1.442695, %v2103_v13  ;;  %v9178_v51 = vld [vmem:[#allocation13_spill] sm:$0xff]  ;;  %v9179_v34 = vld [vmem:[#allocation32_spill] sm:$0xff]  ;;  %v9181_v13 = vld [vmem:[#allocation51_spill] sm:$0xff] }
 0x2b6   : > { %2969 = vrot.lane.b32.xlu0 %v6839_v9, %s4647_s26  ;;  %v6849_v35 = vpop.permute.xlu1 %2310  ;;  %v2236_v56 = vmul.f32 %v6535_v38, %v6533_v30  ;;  %v4243_v1 = vpop.eup %4242  ;;  %v6875_v47 = vadd.f32 %v4239_v11, %v2145_v57  ;;  %4256 = vpow2.f32 %v2132_v54  ;;  %v6878_v19 = vadd.f32 %v2232_v50, %v9178_v51  ;;  %v6891_v57 = vld [vmem:[#allocation2 + $0x69] sm:$0xff]  ;;  %v9183_v50 = vld [vmem:[#allocation22_spill] sm:$0xff] }
 0x2b7   : > { %9176 = vst [vmem:[#allocation57_spill] sm:$0xff] %v6869_v61  ;;  %v2237_v24 = vmul.f32 %v9179_v34, %v6561_v42  ;;  %v6884_v36 = vadd.f32 %v4241_v29, %v2146_v63  ;;  %4258 = vpow2.f32 %v2086_v59  ;;  %v6887_v30 = vadd.f32 %v2233_v53, %v9181_v13  ;;  %9182 = vst [vmem:[#allocation55_spill] sm:$0xff] %v6891_v57  ;;  %v6906_v53 = vld [vmem:[#allocation2 + $0x81] sm:$0xff]  ;;  %v9198_v33 = vld [vmem:[#allocation42_spill] sm:$0xff] }
 0x2b8   : > { %v6857_v10 = vpop.permute.xlu0 %2312  ;;  %2971 = vrot.lane.b32.xlu1 %v6855_v52, %s4647_s26  ;;  %9177 = vst [vmem:[#allocation45_spill] sm:$0xff] %v6875_v47  ;;  %v2238_v38 = vmul.f32 %v6796_v20, %v6577_v58  ;;  %v6896_v51 = vadd.f32 %v2234_v4, %v9183_v50  ;;  %v9184_v47 = vld [vmem:[#allocation24_spill] sm:$0xff]  ;;  %v2174_v63 = vmul.f32 %v6776_v6, %v6755_v41  ;;  %9185 = vst [vmem:[#allocation48_spill] sm:$0xff] %v6906_v53 }
 0x2b9   : > { %9180 = vst [vmem:[#allocation41_spill] sm:$0xff] %v6884_v36  ;;  %v6899_v42 = vadd.f32 %v2235_v37, %v9184_v47  ;;  %v2239_v59 = vmul.f32 %v4235_v27, %v6597_v28  ;;  %v4245_v58 = vpop.eup %4244  ;;  %v9186_v20 = vld [vmem:[#allocation12_spill] sm:$0xff]  ;;  %4260 = vpow2.f32 %v2134_v15  ;;  %v9188_v28 = vld [vmem:[#allocation9_spill] sm:$0xff]  ;;  %v2175_v6 = vmul.f32 %v6804_v21, %v6831_v2  ;;  %v9189_v27 = vld [vmem:[#allocation3_spill] sm:$0xff] }
 0x2ba   : > { %2973 = vrot.lane.b32.xlu0 %v6867_v40, %s4647_s26  ;;  %v6882_v44 = vpop.permute.xlu1 %2314  ;;  %v2147_v34 = vmul.f32 %v4243_v1, %v9186_v20  ;;  %v9187_v13 = vld [vmem:[#allocation40_spill] sm:$0xff]  ;;  %v6921_v41 = vadd.f32 %v2237_v24, %v9188_v28  ;;  %v1920_v15 = vmul.f32 %v6749_v55, %v9189_v27  ;;  %v2242_v61 = vmul.f32 %v4241_v29, %v6644_v12  ;;  %v9197_v27 = vld [vmem:[#allocation25_spill] sm:$0xff]  ;;  %v9203_v40 = vld [vmem:[#allocation30_spill] sm:$0xff] }
 0x2bb   : > { %v6910_v4 = vadd.f32 %v2236_v56, %v9187_v13  ;;  %v6912_v50 = vld [vmem:[#allocation2 + $0x21] sm:$0xff]  ;;  %v2240_v56 = vmul.f32 %v4237_v16, %v6609_v23  ;;  %v4247_v20 = vpop.eup %4246  ;;  %v6930_v13 = vadd.f32 %v2238_v38, %v2174_v63  ;;  %v6935_v24 = vld [vmem:[#allocation2 + $0x29] sm:$0xff]  ;;  %v6946_v38 = vadd.f32 %v2239_v59, %v2175_v6 }
 0x2bc   : > { %v6893_v54 = vpop.permute.xlu0 %2316  ;;  %2975 = vrot.lane.b32.xlu1 %v6891_v57, %s4647_s26  ;;  %v6916_v37 = vmul.f32 %v6912_v50, %v6730_v7  ;;  %v9191_v7 = vld [vmem:[#allocation4_spill] sm:$0xff]  ;;  %v6939_v21 = vmul.f32 %v6935_v24, %v6757_v17  ;;  %v4249_v23 = vpop.eup %4248  ;;  %v9193_v16 = vld [vmem:[#allocation39_spill] sm:$0xff]  ;;  %v1936_v63 = vadd.f32 %v1920_v15, %v6816_v26  ;;  %v9200_v15 = vld [vmem:[#allocation49_spill] sm:$0xff] }
 0x2bd   : > { %9190 = vst [vmem:[#allocation14_spill] sm:$0xff] %v6930_v13  ;;  %v1921_v36 = vmul.f32 %v6718_v8, %v9191_v7  ;;  %v6941_v2 = vld [vmem:[#allocation2 + $0x89] sm:$0xff]  ;;  %v2148_v28 = vmul.f32 %v4245_v58, %v9193_v16  ;;  %9194 = vst [vmem:[#allocation33_spill] sm:$0xff] %v6946_v38  ;;  %v2241_v8 = vmul.f32 %v4239_v11, %v6636_v48  ;;  %v6952_v12 = vld [vmem:[#allocation2 + $0xa1] sm:$0xff]  ;;  %v4251_v17 = vpop.eup %4250 }
 0x2be   : > { %2977 = vrot.lane.b32.xlu0 %v6906_v53, %s4647_s26  ;;  %v6928_v47 = vpop.permute.xlu1 %2318  ;;  %9192 = vst [vmem:[#allocation28_spill] sm:$0xff] %v6941_v2  ;;  %9195 = vst [vmem:[#allocation16_spill] sm:$0xff] %v6952_v12  ;;  %v6954_v29 = vadd.f32 %v4249_v23, %v2147_v34  ;;  %v2178_v7 = vmul.f32 %v6829_v14, %v9197_v27  ;;  %v6960_v16 = vmax.f32 %v9198_v33, %v6916_v37  ;;  %v6962_v59 = vld [vmem:[#allocation2 + $0x41] sm:$0xff]  ;;  %v4253_v26 = vpop.eup %4252  ;;  %v9199_v11 = vld [vmem:[#allocation53_spill] sm:$0xff] }
 0x2bf   : > { %v6966_v48 = vmul.f32 %v6962_v59, %v6767_v43  ;;  %v2149_v34 = vmul.f32 %v4247_v20, %v9199_v11  ;;  %v2176_v6 = vmul.f32 %v6814_v32, %v1936_v63  ;;  %v1937_v14 = vadd.f32 %v1921_v36, %v6807_v49  ;;  %v9202_v57 = vld [vmem:[#allocation18_spill] sm:$0xff]  ;;  %v6989_v49 = vld [vmem:[#allocation2 + $0xa9] sm:$0xff]  ;;  %v9207_v11 = vld [vmem:[#allocation27_spill] sm:$0xff] }
 0x2c0   : > { %v6943_v55 = vpop.permute.xlu0 %2320  ;;  %2979 = vrot.lane.b32.xlu1 %v6941_v2, %s4647_s26  ;;  %9196 = vst [vmem:[#allocation13_spill] sm:$0xff] %v6954_v29  ;;  %v2179_v27 = vmul.f32 %v4243_v1, %v9200_v15  ;;  %v4255_v2 = vpop.eup %4254  ;;  %v6976_v53 = vadd.f32 %v2242_v61, %v2178_v7  ;;  %v2180_v43 = vmul.f32 %v4245_v58, %v9202_v57  ;;  %9204 = vst [vmem:[#allocation51_spill] sm:$0xff] %v6989_v49  ;;  %v7000_v7 = vld [vmem:[#allocation2 + $0xc1] sm:$0xff] }
 0x2c1   : > { %v6981_v38 = vmax.f32 %v9203_v40, %v6939_v21  ;;  %v4257_v36 = vpop.eup %4256  ;;  %v6993_v63 = vadd.f32 %v4251_v17, %v2148_v28  ;;  %v2177_v61 = vmul.f32 %v6822_v46, %v1937_v14  ;;  %v2243_v57 = vmul.f32 %v4249_v23, %v6665_v5  ;;  %9206 = vst [vmem:[#allocation24_spill] sm:$0xff] %v7000_v7  ;;  %v9208_v28 = vld [vmem:[#allocation5_spill] sm:$0xff]  ;;  %v7009_v46 = vld [vmem:[#allocation2 + $0x61] sm:$0xff] }
 0x2c2   : > { %2981 = vrot.lane.b32.xlu0 %v6952_v12, %s4647_s26  ;;  %v6974_v29 = vpop.permute.xlu1 %2322  ;;  %9201 = vst [vmem:[#allocation32_spill] sm:$0xff] %v6976_v53  ;;  %v6983_v12 = vld [vmem:[#allocation2 + $0x49] sm:$0xff]  ;;  %v2244_v58 = vmul.f32 %v4251_v17, %v6669_v18  ;;  %v2150_v15 = vmul.f32 %v4253_v26, %v9207_v11  ;;  %v2376_v53 = vsub.f32 %v9198_v33, %v6960_v16  ;;  %v9211_v17 = vld [vmem:[#allocation43_spill] sm:$0xff] }
 0x2c3   : > { %v6987_v32 = vmul.f32 %v6983_v12, %v6786_v60  ;;  %9205 = vst [vmem:[#allocation22_spill] sm:$0xff] %v6993_v63  ;;  %v4259_v60 = vpop.eup %4258  ;;  %v7007_v63 = vmax.f32 %v9208_v28, %v6966_v48  ;;  %v7013_v18 = vmul.f32 %v7009_v46, %v6794_v22  ;;  %v7017_v5 = vadd.f32 %v4255_v2, %v2149_v34  ;;  %v9213_v34 = vld [vmem:[#allocation10_spill] sm:$0xff] }
 0x2c4   : > { %v6991_v1 = vpop.permute.xlu0 %2324  ;;  %2983 = vrot.lane.b32.xlu1 %v6989_v49, %s4647_s26  ;;  %v7019_v23 = vadd.f32 %v2240_v56, %v2176_v6  ;;  %v7022_v14 = vmul.f32 %v4247_v20, %v9211_v17  ;;  %v2424_v33 = vsub.f32 %v6916_v37, %v6960_v16  ;;  %v7028_v49 = vpop.eup %4260  ;;  %v7030_v52 = vadd.f32 %v2241_v8, %v2177_v61  ;;  %v7038_v56 = vld [vmem:[#allocation2 + $0x69] sm:$0xff]  ;;  %v9218_v61 = vld [vmem:[#allocation35_spill] sm:$0xff] }
 0x2c5   : > { %9209 = vst [vmem:[#allocation12_spill] sm:$0xff] %v7017_v5  ;;  %v2377_v22 = vsub.f32 %v9203_v40, %v6981_v38  ;;  %v7036_v5 = vmax.f32 %v9213_v34, %v6987_v32  ;;  %9214 = vst [vmem:[#allocation3_spill] sm:$0xff] %v7038_v56  ;;  %v7042_v20 = vmul.f32 %v7038_v56, %v6820_v39  ;;  %v7044_v37 = vld [vmem:[#allocation2 + $0xc9] sm:$0xff] }
 0x2c6   : > { %2985 = vrot.lane.b32.xlu0 %v7000_v7, %s4647_s26  ;;  %9210 = vst [vmem:[#allocation40_spill] sm:$0xff] %v7019_v23  ;;  %v7026_v11 = vpop.permute.xlu1 %2326  ;;  %9212 = vst [vmem:[#allocation9_spill] sm:$0xff] %v7030_v52  ;;  %v7048_v17 = vadd.f32 %v2243_v57, %v2179_v27  ;;  %v7050_v8 = vadd.f32 %v2244_v58, %v2180_v43  ;;  %v7053_v40 = vmul.f32 %v4253_v26, %v9218_v61  ;;  %v7059_v52 = vld [vmem:[#allocation2 + $0xe1] sm:$0xff]  ;;  %v7105_v56 = vld [vmem:[#allocation2 + $0x89] sm:$0xff] }
 0x2c7   : > { %9215 = vst [vmem:[#allocation4_spill] sm:$0xff] %v7044_v37  ;;  %v2425_v7 = vsub.f32 %v6939_v21, %v6981_v38  ;;  %9219 = vst [vmem:[#allocation42_spill] sm:$0xff] %v7059_v52  ;;  %v7061_v39 = vadd.f32 %v4257_v36, %v2150_v15  ;;  %v2392_v23 = vmul.f32 1.442695, %v2376_v53  ;;  %v2378_v27 = vsub.f32 %v9208_v28, %v7007_v63  ;;  %v9221_v43 = vld [vmem:[#allocation47_spill] sm:$0xff]  ;;  %v9222_v26 = vld [vmem:[#allocation56_spill] sm:$0xff] }
 0x2c8   : > { %v7046_v6 = vpop.permute.xlu0 %2520  ;;  %9216 = vst [vmem:[#allocation39_spill] sm:$0xff] %v7048_v17  ;;  %9217 = vst [vmem:[#allocation25_spill] sm:$0xff] %v7050_v8  ;;  %2987 = vrot.lane.b32.xlu1 %v7044_v37, %s4647_s26  ;;  %v7067_v57 = vmax.f32 %v9221_v43, %v7013_v18  ;;  %v2151_v21 = vmul.f32 %v4259_v60, %v9222_v26  ;;  %v2440_v58 = vmul.f32 1.442695, %v2424_v33  ;;  %v7074_v8 = vld [vmem:[#allocation2 + $0x81] sm:$0xff]  ;;  %v7089_v37 = vld [vmem:[#allocation2 + $0xe9] sm:$0xff] }
 0x2c9   : > { %9220 = vst [vmem:[#allocation53_spill] sm:$0xff] %v7061_v39  ;;  %v2426_v61 = vsub.f32 %v6966_v48, %v7007_v63  ;;  %9223 = vst [vmem:[#allocation49_spill] sm:$0xff] %v7074_v8  ;;  %v7078_v53 = vmul.f32 %v7074_v8, %v6827_v62  ;;  %v2245_v28 = vmul.f32 %v4255_v2, %v6687_v0  ;;  %v2394_v39 = vmul.f32 1.442695, %v2377_v22  ;;  %v9224_v26 = vld [vmem:[#allocation15_spill] sm:$0xff]  ;;  %v9226_v62 = vld [vmem:[#allocation6_spill] sm:$0xff] }
 0x2ca   : > { %2989 = vrot.lane.b32.xlu0 %v7059_v52, %s4647_s26  ;;  %v7080_v15 = vpop.permute.xlu1 %2522  ;;  %v2379_v52 = vsub.f32 %v9213_v34, %v7036_v5  ;;  %v7087_v33 = vmax.f32 %v9224_v26, %v7042_v20  ;;  %9225 = vst [vmem:[#allocation18_spill] sm:$0xff] %v7089_v37  ;;  %v2246_v17 = vmul.f32 %v4257_v36, %v6697_v3  ;;  %v2442_v13 = vmul.f32 1.442695, %v2425_v7  ;;  %v7101_v2 = vld [vmem:[#allocation2 + $0x101] sm:$0xff] }
 0x2cb   : > { %v7095_v8 = vmul.f32 %v4259_v60, %v9226_v62  ;;  %v2427_v0 = vsub.f32 %v6987_v32, %v7036_v5  ;;  %9227 = vst [vmem:[#allocation30_spill] sm:$0xff] %v7101_v2  ;;  %4262 = vpow2.f32 %v2392_v23  ;;  %v2396_v22 = vmul.f32 1.442695, %v2378_v27  ;;  %9228 = vst [vmem:[#allocation27_spill] sm:$0xff] %v7105_v56  ;;  %v7123_v27 = vld [vmem:[#allocation2 + $0xa1] sm:$0xff] }
 0x2cc   : > { %v7091_v48 = vpop.permute.xlu0 %2524  ;;  %2991 = vrot.lane.b32.xlu1 %v7089_v37, %s4647_s26  ;;  %v2380_v34 = vsub.f32 %v9221_v43, %v7067_v57  ;;  %v7109_v3 = vmul.f32 %v7105_v56, %v6849_v35  ;;  %4264 = vpow2.f32 %v2440_v58  ;;  %v2444_v32 = vmul.f32 1.442695, %v2426_v61  ;;  %9229 = vst [vmem:[#allocation5_spill] sm:$0xff] %v7123_v27  ;;  %v7129_v58 = vld [vmem:[#allocation2 + $0x109] sm:$0xff] }
 0x2cd   : > { %v2428_v36 = vsub.f32 %v7013_v18, %v7067_v57  ;;  %v7117_v7 = vmax.f32 %v6603_v25, %v7078_v53  ;;  %4266 = vpow2.f32 %v2394_v39  ;;  %v2398_v23 = vmul.f32 1.442695, %v2379_v52  ;;  %9230 = vst [vmem:[#allocation43_spill] sm:$0xff] %v7129_v58  ;;  %v7140_v39 = vld [vmem:[#allocation2 + $0x121] sm:$0xff]  ;;  %v7146_v37 = vld [vmem:[#allocation2 + $0xa9] sm:$0xff] }
 0x2ce   : > { %2993 = vrot.lane.b32.xlu0 %v7101_v2, %s4647_s26  ;;  %v7119_v60 = vpop.permute.xlu1 %2526  ;;  %v2381_v35 = vsub.f32 %v9224_v26, %v7087_v33  ;;  %v7127_v43 = vmul.f32 %v7123_v27, %v6857_v10  ;;  %v7134_v61 = vadd.f32 %v7028_v49, %v2151_v21  ;;  %4268 = vpow2.f32 %v2442_v13  ;;  %9232 = vst [vmem:[#allocation35_spill] sm:$0xff] %v7140_v39  ;;  %v9233_v26 = vld [vmem:[#allocation23_spill] sm:$0xff]  ;;  %v9274_v27 = vld [vmem:[#allocation44_spill] sm:$0xff] }
 0x2cf   : > { %v2446_v62 = vmul.f32 1.442695, %v2427_v0  ;;  %v2429_v52 = vsub.f32 %v7042_v20, %v7087_v33  ;;  %4270 = vpow2.f32 %v2396_v22  ;;  %v2400_v10 = vmul.f32 1.442695, %v2380_v34  ;;  %9235 = vst [vmem:[#allocation56_spill] sm:$0xff] %v7146_v37 }
 0x2d0   : > { %v7131_v18 = vpop.permute.xlu0 %2528  ;;  %9231 = vst [vmem:[#allocation10_spill] sm:$0xff] %v7134_v61  ;;  %2995 = vrot.lane.b32.xlu1 %v7129_v58, %s4647_s26  ;;  %v7144_v2 = vmax.f32 %v9233_v26, %v7109_v3  ;;  %v7150_v13 = vmul.f32 %v7146_v37, %v6882_v44  ;;  %v7155_v20 = vadd.f32 %v2245_v28, %v7022_v14  ;;  %4272 = vpow2.f32 %v2444_v32  ;;  %v9237_v61 = vld [vmem:[#allocation21_spill] sm:$0xff]  ;;  %v9239_v44 = vld [vmem:[#allocation31_spill] sm:$0xff] }
 0x2d1   : > { %v2448_v21 = vmul.f32 1.442695, %v2428_v36  ;;  %v2382_v0 = vsub.f32 %v6603_v25, %v7117_v7  ;;  %4274 = vpow2.f32 %v2398_v23  ;;  %v2402_v34 = vmul.f32 1.442695, %v2381_v35  ;;  %v9241_v28 = vld [vmem:[#allocation29_spill] sm:$0xff]  ;;  %v9242_v23 = vld [vmem:[#allocation59_spill] sm:$0xff] }
 0x2d2   : > { %9234 = vst [vmem:[#allocation47_spill] sm:$0xff] %v7144_v2  ;;  %2997 = vrot.lane.b32.xlu0 %v7140_v39, %s4647_s26  ;;  %9236 = vst [vmem:[#allocation15_spill] sm:$0xff] %v7155_v20  ;;  %v7159_v22 = vpop.permute.xlu1 %2530  ;;  %v7163_v58 = vmax.f32 %v9237_v61, %v7127_v43  ;;  %v7167_v37 = vmul.f32 %v9239_v44, %v6893_v54  ;;  %v7169_v39 = vld [vmem:[#allocation2 + $0x129] sm:$0xff]  ;;  %v2247_v32 = vmul.f32 %v7028_v49, %v9241_v28 }
 0x2d3   : > { %9240 = vst [vmem:[#allocation23_spill] sm:$0xff] %v7169_v39  ;;  %4276 = vpow2.f32 %v2446_v62  ;;  %v2450_v25 = vmul.f32 1.442695, %v2429_v52  ;;  %v2430_v36 = vsub.f32 %v7078_v53, %v7117_v7  ;;  %v2383_v54 = vsub.f32 %v9233_v26, %v7144_v2  ;;  %v9244_v44 = vld [vmem:[#allocation60_spill] sm:$0xff]  ;;  %v9247_v26 = vld [vmem:[#allocation38_spill] sm:$0xff] }
 0x2d4   : > { %9238 = vst [vmem:[#allocation6_spill] sm:$0xff] %v7163_v58  ;;  %v7171_v14 = vpop.permute.xlu0 %2532  ;;  %2999 = vrot.lane.b32.xlu1 %v7169_v39, %s4647_s26  ;;  %4278 = vpow2.f32 %v2400_v10  ;;  %v7183_v35 = vmax.f32 %v9242_v23, %v7150_v13  ;;  %v7187_v20 = vmul.f32 %v9244_v44, %v6928_v47  ;;  %v7192_v49 = vadd.f32 %v2246_v17, %v7053_v40  ;;  %v7210_v40 = vld [vmem:[#allocation2 + $0x42] sm:$0xff]  ;;  %v7223_v44 = vld [vmem:[#allocation2 + $0x4a] sm:$0xff] }
 0x2d5   : > { %4280 = vpow2.f32 %v2448_v21  ;;  %v2404_v53 = vmul.f32 1.442695, %v2382_v0  ;;  %v2431_v62 = vsub.f32 %v7109_v3, %v7144_v2  ;;  %v7198_v10 = vpop.eup %4262  ;;  %v2384_v47 = vsub.f32 %v9237_v61, %v7163_v58  ;;  %9250 = vst [vmem:[#allocation60_spill] sm:$0xff] %v7210_v40  ;;  %9253 = vst [vmem:[#allocation62_spill] sm:$0xff] %v7223_v44  ;;  %v9268_v2 = vld [vmem:[#allocation26_spill] sm:$0xff] }
 0x2d6   : > { %9243 = vst [vmem:[#allocation21_spill] sm:$0xff] %v7183_v35  ;;  %3193 = vrot.lane.b32.xlu0 %v6839_v9, %s4655_s6  ;;  %9245 = vst [vmem:[#allocation31_spill] sm:$0xff] %v7192_v49  ;;  %v7196_v52 = vpop.permute.xlu1 %2534  ;;  %4282 = vpow2.f32 %v2402_v34  ;;  %v7204_v28 = vmax.f32 %v9247_v26, %v7167_v37  ;;  %v9249_v9 = vld [vmem:[#allocation61_spill] sm:$0xff]  ;;  %v7214_v3 = vpop.eup %4264  ;;  %v7217_v0 = vadd.f32 %v2247_v32, %v7095_v8  ;;  %v2452_v34 = vmul.f32 1.442695, %v2430_v36  ;;  %v9255_v32 = vld [vmem:[#allocation20_spill] sm:$0xff] }
 0x2d7   : > { %9246 = vst [vmem:[#allocation29_spill] sm:$0xff] %v7196_v52  ;;  %v7208_v17 = vmul.f32 %v9249_v9, %v6943_v55  ;;  %4284 = vpow2.f32 %v2450_v25  ;;  %v2432_v61 = vsub.f32 %v7127_v43, %v7163_v58  ;;  %v7225_v55 = vpop.eup %4266  ;;  %v2406_v9 = vmul.f32 1.442695, %v2383_v54  ;;  %v9256_v36 = vld [vmem:[#allocation50_spill] sm:$0xff]  ;;  %v7271_v58 = vld [vmem:[#allocation2 + $0x6a] sm:$0xff] }
 0x2d8   : > { %9248 = vst [vmem:[#allocation59_spill] sm:$0xff] %v7204_v28  ;;  %v7212_v21 = vpop.permute.xlu0 %2536  ;;  %9252 = vst [vmem:[#allocation61_spill] sm:$0xff] %v7217_v0  ;;  %3305 = vrot.lane.b32.xlu1 %v7210_v40, %s4647_s26  ;;  %v2385_v39 = vsub.f32 %v9242_v23, %v7183_v35  ;;  %v7231_v8 = vmax.f32 %v6704_v31, %v7187_v20  ;;  %v7235_v25 = vmul.f32 %v9255_v32, %v6974_v29  ;;  %v7239_v43 = vpop.eup %4268  ;;  %v9264_v52 = vld [vmem:[#allocation17_spill] sm:$0xff] }
 0x2d9   : > { %9251 = vst [vmem:[#allocation38_spill] sm:$0xff] %v7212_v21  ;;  %v2472_v0 = vmul.f32 %v7198_v10, %v9256_v36  ;;  %4286 = vpow2.f32 %v2404_v53  ;;  %v2454_v54 = vmul.f32 1.442695, %v2431_v62  ;;  %v2433_v23 = vsub.f32 %v7150_v13, %v7183_v35  ;;  %v7247_v49 = vpop.eup %4270  ;;  %v7259_v53 = vld [vmem:[#allocation2 + $0x62] sm:$0xff] }
 0x2da   : > { %9254 = vst [vmem:[#allocation63_spill] sm:$0xff] %v7231_v8  ;;  %3307 = vrot.lane.b32.xlu0 %v7223_v44, %s4647_s26  ;;  %v7245_v40 = vpop.permute.xlu1 %2538  ;;  %v2408_v21 = vmul.f32 1.442695, %v2384_v47  ;;  %v2386_v29 = vsub.f32 %v9247_v26, %v7204_v28  ;;  %v7253_v32 = vmax.f32 %v6728_v45, %v7208_v17  ;;  %v9259_v44 = vld [vmem:[#allocation7_spill] sm:$0xff]  ;;  %v7263_v13 = vpop.eup %4272  ;;  %4288 = vpow2.f32 %v2452_v34 }
 0x2db   : > { %9257 = vst [vmem:[#allocation20_spill] sm:$0xff] %v7245_v40  ;;  %v7257_v36 = vmul.f32 %v9259_v44, %v6991_v1  ;;  %9260 = vst [vmem:[#allocation7_spill] sm:$0xff] %v7259_v53  ;;  %v9262_v40 = vld [vmem:[#allocation52_spill] sm:$0xff]  ;;  %v2456_v35 = vmul.f32 1.442695, %v2432_v61  ;;  %v2434_v26 = vsub.f32 %v7167_v37, %v7204_v28  ;;  %v7273_v1 = vpop.eup %4274  ;;  %4290 = vpow2.f32 %v2406_v9  ;;  %v9266_v9 = vld [vmem:[#allocation46_spill] sm:$0xff] }
 0x2dc   : > { %9258 = vst [vmem:[#allocation50_spill] sm:$0xff] %v7253_v32  ;;  %v7261_v62 = vpop.permute.xlu0 %2540  ;;  %v2473_v47 = vmul.f32 %v7225_v55, %v9262_v40  ;;  %3309 = vrot.lane.b32.xlu1 %v7259_v53, %s4647_s26  ;;  %9263 = vst [vmem:[#allocation52_spill] sm:$0xff] %v7271_v58  ;;  %v2410_v44 = vmul.f32 1.442695, %v2385_v39  ;;  %v7279_v40 = vmax.f32 %v9264_v52, %v7235_v25  ;;  %4292 = vpow2.f32 %v2454_v54 }
 0x2dd   : > { %9261 = vst [vmem:[#allocation64_spill] sm:$0xff] %v7261_v62  ;;  %v2387_v62 = vsub.f32 %v6704_v31, %v7231_v8  ;;  %v7283_v37 = vpop.eup %4276  ;;  %v2458_v34 = vmul.f32 1.442695, %v2433_v23  ;;  %v2435_v61 = vsub.f32 %v7187_v20, %v7231_v8  ;;  %v7289_v39 = vmul.f32 %v9266_v9, %v7026_v11  ;;  %v7301_v23 = vld [vmem:[#allocation2 + $0x82] sm:$0xff] }
 0x2de   : > { %9265 = vst [vmem:[#allocation17_spill] sm:$0xff] %v7279_v40  ;;  %3311 = vrot.lane.b32.xlu0 %v7271_v58, %s4647_s26  ;;  %v7291_v53 = vpop.permute.xlu1 %2542  ;;  %v7293_v31 = vpop.eup %4278  ;;  %4294 = vpow2.f32 %v2408_v21  ;;  %v2412_v28 = vmul.f32 1.442695, %v2386_v29  ;;  %v2388_v58 = vsub.f32 %v6728_v45, %v7253_v32  ;;  %v7299_v54 = vmax.f32 %v9268_v2, %v7257_v36  ;;  %9269 = vst [vmem:[#allocation26_spill] sm:$0xff] %v7301_v23  ;;  %v9272_v11 = vld [vmem:[#allocation36_spill] sm:$0xff] }
 0x2df   : > { %9267 = vst [vmem:[#allocation46_spill] sm:$0xff] %v7291_v53  ;;  %v7305_v8 = vpop.eup %4280  ;;  %v2474_v9 = vmul.f32 %v7247_v49, %v9272_v11  ;;  %4296 = vpow2.f32 %v2456_v35  ;;  %v2460_v53 = vmul.f32 1.442695, %v2434_v26  ;;  %v2436_v21 = vsub.f32 %v7208_v17, %v7253_v32  ;;  %v7313_v45 = vld [vmem:[#allocation2 + $0x8a] sm:$0xff] }
 0x2e0   : > { %v7303_v20 = vpop.permute.xlu0 %2544  ;;  %9271 = vst [vmem:[#allocation66_spill] sm:$0xff] %v7305_v8  ;;  %3313 = vrot.lane.b32.xlu1 %v7301_v23, %s4647_s26  ;;  %9273 = vst [vmem:[#allocation36_spill] sm:$0xff] %v7313_v45  ;;  %v7315_v29 = vpop.eup %4282  ;;  %4298 = vpow2.f32 %v2410_v44  ;;  %v2414_v56 = vmul.f32 1.442695, %v2387_v62  ;;  %v2389_v11 = vsub.f32 %v9264_v52, %v7279_v40  ;;  %v2462_v17 = vmul.f32 1.442695, %v2435_v61 }
 0x2e1   : > { %9270 = vst [vmem:[#allocation65_spill] sm:$0xff] %v7303_v20  ;;  %v2475_v20 = vmul.f32 %v7273_v1, %v9274_v27  ;;  %v7323_v35 = vpop.eup %4284  ;;  %4300 = vpow2.f32 %v2458_v34  ;;  %v2437_v26 = vsub.f32 %v7235_v25, %v7279_v40  ;;  %v9276_v23 = vld [vmem:[#allocation8_spill] sm:$0xff]  ;;  %v7334_v62 = vadd.f32 %v7214_v3, %v2472_v0 }
 0x2e2   : > { %3315 = vrot.lane.b32.xlu0 %v7313_v45, %s4647_s26  ;;  %9275 = vst [vmem:[#allocation44_spill] sm:$0xff] %v7323_v35  ;;  %v7329_v32 = vmax.f32 %v9276_v23, %v7289_v39  ;;  %v7331_v27 = vpop.permute.xlu1 %2546  ;;  %4302 = vpow2.f32 %v2412_v28  ;;  %v2416_v52 = vmul.f32 1.442695, %v2388_v58  ;;  %v2390_v44 = vsub.f32 %v9268_v2, %v7299_v54  ;;  %v7338_v45 = vld [vmem:[#allocation2 + $0xa2] sm:$0xff]  ;;  %v7351_v58 = vld [vmem:[#allocation2 + $0xaa] sm:$0xff] }
 0x2e3   : > { %9277 = vst [vmem:[#allocation8_spill] sm:$0xff] %v7334_v62  ;;  %9278 = vst [vmem:[#allocation67_spill] sm:$0xff] %v7338_v45  ;;  %v7342_v61 = vpop.eup %4286  ;;  %v7345_v25 = vadd.f32 %v7239_v43, %v2473_v47  ;;  %4304 = vpow2.f32 %v2460_v53  ;;  %v2464_v40 = vmul.f32 1.442695, %v2436_v21  ;;  %v2438_v0 = vsub.f32 %v7257_v36, %v7299_v54 }
 0x2e4   : > { %v7340_v34 = vpop.permute.xlu0 %2548  ;;  %3317 = vrot.lane.b32.xlu1 %v7338_v45, %s4647_s26  ;;  %9280 = vst [vmem:[#allocation69_spill] sm:$0xff] %v7351_v58  ;;  %v7354_v2 = vadd.f32 %v7263_v13, %v2474_v9  ;;  %v7357_v28 = vadd.f32 %v7283_v37, %v2475_v20  ;;  %4306 = vpow2.f32 %v2414_v56  ;;  %v2418_v62 = vmul.f32 1.442695, %v2389_v11  ;;  %v7361_v53 = vpop.eup %4288  ;;  %v9285_v20 = vld [vmem:[#allocation11_spill] sm:$0xff]  ;;  %v9344_v45 = vld [vmem:[#allocation9_spill] sm:$0xff] }
 0x2e5   : > { %9279 = vst [vmem:[#allocation68_spill] sm:$0xff] %v7345_v25  ;;  %9283 = vst [vmem:[#allocation72_spill] sm:$0xff] %v7361_v53  ;;  %4308 = vpow2.f32 %v2462_v17  ;;  %v2466_v36 = vmul.f32 1.442695, %v2437_v26  ;;  %v2391_v47 = vsub.f32 %v9276_v23, %v7329_v32  ;;  %v2568_v21 = vmul.f32 %v7214_v3, %v7046_v6  ;;  %v7377_v26 = vld [vmem:[#allocation2 + $0xc2] sm:$0xff] }
 0x2e6   : > { %9281 = vst [vmem:[#allocation70_spill] sm:$0xff] %v7354_v2  ;;  %9282 = vst [vmem:[#allocation71_spill] sm:$0xff] %v7357_v28  ;;  %3319 = vrot.lane.b32.xlu0 %v7351_v58, %s4647_s26  ;;  %v7367_v9 = vpop.permute.xlu1 %2550  ;;  %v7369_v2 = vpop.eup %4290  ;;  %v7373_v56 = vmul.f32 %v7293_v31, %v9285_v20  ;;  %4310 = vpow2.f32 %v2416_v52  ;;  %v2420_v11 = vmul.f32 1.442695, %v2390_v44  ;;  %v2439_v17 = vsub.f32 %v7289_v39, %v7329_v32  ;;  %v7386_v52 = vld [vmem:[#allocation2 + $0xca] sm:$0xff]  ;;  %v9291_v39 = vld [vmem:[#allocation54_spill] sm:$0xff] }
 0x2e7   : > { %9284 = vst [vmem:[#allocation73_spill] sm:$0xff] %v7369_v2  ;;  %9287 = vst [vmem:[#allocation74_spill] sm:$0xff] %v7377_v26  ;;  %v7379_v23 = vpop.eup %4292  ;;  %4312 = vpow2.f32 %v2464_v40  ;;  %v2468_v6 = vmul.f32 1.442695, %v2438_v0  ;;  %v2504_v3 = vmul.f32 %v7198_v10, %v6878_v19  ;;  %v7392_v25 = vmul.f32 %v7315_v29, %v9291_v39 }
 0x2e8   : > { %9286 = vst [vmem:[#allocation11_spill] sm:$0xff] %v7373_v56  ;;  %v2634_v28 = vpop.permute.xlu0 %2633  ;;  %9288 = vst [vmem:[#allocation75_spill] sm:$0xff] %v7379_v23  ;;  %3321 = vrot.lane.b32.xlu1 %v7377_v26, %s4647_s26  ;;  %v7388_v44 = vpop.eup %4294  ;;  %4314 = vpow2.f32 %v2418_v62  ;;  %v2505_v40 = vmul.f32 %v7225_v55, %v6887_v30  ;;  %v2569_v19 = vmul.f32 %v7239_v43, %v7080_v15  ;;  %v2470_v30 = vmul.f32 1.442695, %v2439_v17  ;;  %v7412_v43 = vld [vmem:[#allocation2 + $0xe2] sm:$0xff] }
 0x2e9   : > { %v2681_v20 = vmul.f32 %v6912_v50, %v2634_v28  ;;  %9289 = vst [vmem:[#allocation76_spill] sm:$0xff] %v7386_v52  ;;  %9290 = vst [vmem:[#allocation77_spill] sm:$0xff] %v7388_v44  ;;  %v7400_v10 = vpop.eup %4296  ;;  %4316 = vpow2.f32 %v2466_v36  ;;  %v2422_v50 = vmul.f32 1.442695, %v2391_v47  ;;  %v7402_v0 = vadd.f32 %v2568_v21, %v2504_v3 }
 0x2ea   : > { %9292 = vst [vmem:[#allocation54_spill] sm:$0xff] %v7392_v25  ;;  %3323 = vrot.lane.b32.xlu0 %v7386_v52, %s4647_s26  ;;  %9293 = vst [vmem:[#allocation78_spill] sm:$0xff] %v7400_v10  ;;  %v2636_v39 = vpop.permute.xlu1 %2635  ;;  %v7407_v62 = vpop.eup %4298  ;;  %4318 = vpow2.f32 %v2420_v11  ;;  %v2570_v15 = vmul.f32 %v7263_v13, %v7091_v48  ;;  %v2506_v47 = vmul.f32 %v7247_v49, %v6896_v51  ;;  %v7423_v48 = vld [vmem:[#allocation2 + $0xea] sm:$0xff]  ;;  %v7606_v25 = vld [vmem:[#allocation2 + $0xe1] sm:$0xff] }
 0x2eb   : > { %v7405_v28 = vmax.f32 %v6960_v16, %v2681_v20  ;;  %9295 = vst [vmem:[#allocation80_spill] sm:$0xff] %v7407_v62  ;;  %v2682_v55 = vmul.f32 %v6935_v24, %v2636_v39  ;;  %9296 = vst [vmem:[#allocation81_spill] sm:$0xff] %v7412_v43  ;;  %v7414_v36 = vpop.eup %4300  ;;  %4320 = vpow2.f32 %v2468_v6  ;;  %v2571_v21 = vmul.f32 %v7283_v37, %v7119_v60 }
 0x2ec   : > { %v2638_v52 = vpop.permute.xlu0 %2637  ;;  %9297 = vst [vmem:[#allocation82_spill] sm:$0xff] %v7414_v36  ;;  %3325 = vrot.lane.b32.xlu1 %v7412_v43, %s4647_s26  ;;  %9298 = vst [vmem:[#allocation83_spill] sm:$0xff] %v7423_v48  ;;  %v7425_v24 = vpop.eup %4302  ;;  %v7427_v13 = vadd.f32 %v2569_v19, %v2505_v40  ;;  %v2507_v17 = vmul.f32 %v7273_v1, %v6899_v42  ;;  %4322 = vpow2.f32 %v2422_v50  ;;  %v7453_v40 = vld [vmem:[#allocation2 + $0x102] sm:$0xff] }
 0x2ed   : > { %9294 = vst [vmem:[#allocation79_spill] sm:$0xff] %v7405_v28  ;;  %v2683_v11 = vmul.f32 %v6962_v59, %v2638_v52  ;;  %9299 = vst [vmem:[#allocation84_spill] sm:$0xff] %v7425_v24  ;;  %v2713_v51 = vsub.f32 %v6960_v16, %v7405_v28  ;;  %v7434_v49 = vmax.f32 %v6981_v38, %v2682_v55  ;;  %v7438_v60 = vpop.eup %4304  ;;  %4324 = vpow2.f32 %v2470_v30 }
 0x2ee   : > { %3327 = vrot.lane.b32.xlu0 %v7423_v48, %s4647_s26  ;;  %9301 = vst [vmem:[#allocation86_spill] sm:$0xff] %v7438_v60  ;;  %v2572_v59 = vmul.f32 %v7305_v8, %v7131_v18  ;;  %v2761_v37 = vsub.f32 %v2681_v20, %v7405_v28  ;;  %v2640_v42 = vpop.permute.xlu1 %2639  ;;  %v7446_v1 = vpop.eup %4306  ;;  %v7448_v16 = vadd.f32 %v2570_v15, %v2506_v47  ;;  %9304 = vst [vmem:[#allocation89_spill] sm:$0xff] %v7453_v40  ;;  %v9345_v8 = vld [vmem:[#allocation51_spill] sm:$0xff] }
 0x2ef   : > { %9300 = vst [vmem:[#allocation85_spill] sm:$0xff] %v7434_v49  ;;  %v7444_v6 = vmax.f32 %v7007_v63, %v2683_v11  ;;  %9303 = vst [vmem:[#allocation88_spill] sm:$0xff] %v7446_v1  ;;  %v2714_v3 = vsub.f32 %v6981_v38, %v7434_v49  ;;  %v2684_v52 = vmul.f32 %v6983_v12, %v2640_v42  ;;  %v7455_v18 = vpop.eup %4308  ;;  %v7465_v38 = vld [vmem:[#allocation2 + $0x10a] sm:$0xff]  ;;  %v2729_v47 = vmul.f32 1.442695, %v2713_v51 }
 0x2f0   : > { %v2642_v19 = vpop.permute.xlu0 %2641  ;;  %v7457_v20 = vadd.f32 %v2571_v21, %v2507_v17  ;;  %v2508_v50 = vmul.f32 %v7293_v31, %v6910_v4  ;;  %v2762_v39 = vsub.f32 %v2682_v55, %v7434_v49  ;;  %3329 = vrot.lane.b32.xlu1 %v7453_v40, %s4647_s26  ;;  %9305 = vst [vmem:[#allocation90_spill] sm:$0xff] %v7465_v38  ;;  %v7467_v12 = vpop.eup %4310  ;;  %v2777_v55 = vmul.f32 1.442695, %v2761_v37 }
 0x2f1   : > { %9302 = vst [vmem:[#allocation87_spill] sm:$0xff] %v7444_v6  ;;  %v2685_v30 = vmul.f32 %v7009_v46, %v2642_v19  ;;  %9306 = vst [vmem:[#allocation91_spill] sm:$0xff] %v7467_v12  ;;  %v7471_v15 = vmul.f32 %v7315_v29, %v6921_v41  ;;  %v2715_v21 = vsub.f32 %v7007_v63, %v7444_v6  ;;  %v7480_v31 = vpop.eup %4312  ;;  %v2731_v42 = vmul.f32 1.442695, %v2714_v3 }
 0x2f2   : > { %v7476_v4 = vmax.f32 %v7036_v5, %v2684_v52  ;;  %3331 = vrot.lane.b32.xlu0 %v7465_v38, %s4647_s26  ;;  %v7482_v46 = vadd.f32 %v2572_v59, %v2508_v50  ;;  %v2763_v17 = vsub.f32 %v2683_v11, %v7444_v6  ;;  %v2644_v29 = vpop.permute.xlu1 %2643  ;;  %v7488_v51 = vpop.eup %4314  ;;  %v2573_v63 = vmul.f32 %v7323_v35, %v7159_v22  ;;  %v9310_v38 = vld [vmem:[#allocation3_spill] sm:$0xff]  ;;  %v9312_v11 = vld [vmem:[#allocation14_spill] sm:$0xff]  ;;  %v9313_v22 = vld [vmem:[#allocation49_spill] sm:$0xff] }
 0x2f3   : > { %v7486_v41 = vmax.f32 %v7067_v57, %v2685_v30  ;;  %9309 = vst [vmem:[#allocation94_spill] sm:$0xff] %v7488_v51  ;;  %v2686_v40 = vmul.f32 %v9310_v38, %v2644_v29  ;;  %v7495_v59 = vld [vmem:[#allocation2 + $0x122] sm:$0xff]  ;;  %v7497_v50 = vpop.eup %4316  ;;  %v2510_v6 = vmul.f32 %v7342_v61, %v9312_v11  ;;  %v2779_v49 = vmul.f32 1.442695, %v2762_v39 }
 0x2f4   : > { %9307 = vst [vmem:[#allocation92_spill] sm:$0xff] %v7476_v4  ;;  %v2716_v19 = vsub.f32 %v7036_v5, %v7476_v4  ;;  %9311 = vst [vmem:[#allocation3_spill] sm:$0xff] %v7495_v59  ;;  %v2646_v37 = vpop.permute.xlu0 %2645  ;;  %v2764_v48 = vsub.f32 %v2684_v52, %v7476_v4  ;;  %3333 = vrot.lane.b32.xlu1 %v7495_v59, %s4647_s26  ;;  %v7507_v5 = vld [vmem:[#allocation2 + $0x12a] sm:$0xff]  ;;  %v7509_v38 = vpop.eup %4318  ;;  %4326 = vpow2.f32 %v2729_v47  ;;  %v2733_v29 = vmul.f32 1.442695, %v2715_v21  ;;  %v9317_v59 = vld [vmem:[#allocation27_spill] sm:$0xff] }
 0x2f5   : > { %9308 = vst [vmem:[#allocation93_spill] sm:$0xff] %v7486_v41  ;;  %v7505_v3 = vmul.f32 %v9313_v22, %v2646_v37  ;;  %9314 = vst [vmem:[#allocation14_spill] sm:$0xff] %v7507_v5  ;;  %v2717_v28 = vsub.f32 %v7067_v57, %v7486_v41  ;;  %v7514_v11 = vmax.f32 %v7087_v33, %v2686_v40  ;;  %v7518_v52 = vpop.eup %4320  ;;  %4328 = vpow2.f32 %v2777_v55 }
 0x2f6   : > { %3335 = vrot.lane.b32.xlu0 %v7507_v5, %s4647_s26  ;;  %v2781_v39 = vmul.f32 1.442695, %v2763_v17  ;;  %v2765_v37 = vsub.f32 %v2685_v30, %v7486_v41  ;;  %v2648_v47 = vpop.permute.xlu1 %2647  ;;  %v2574_v57 = vmul.f32 %v7361_v53, %v7171_v14  ;;  %4330 = vpow2.f32 %v2731_v42  ;;  %v7528_v5 = vpop.eup %4322  ;;  %v9318_v17 = vld [vmem:[#allocation19_spill] sm:$0xff]  ;;  %v9319_v41 = vld [vmem:[#allocation5_spill] sm:$0xff]  ;;  %v9325_v53 = vld [vmem:[#allocation40_spill] sm:$0xff] }
 0x2f7   : > { %9315 = vst [vmem:[#allocation49_spill] sm:$0xff] %v7514_v11  ;;  %v7523_v22 = vmax.f32 %v7117_v7, %v7505_v3  ;;  %v2735_v21 = vmul.f32 1.442695, %v2716_v19  ;;  %v2688_v4 = vmul.f32 %v9317_v59, %v2648_v47  ;;  %4332 = vpow2.f32 %v2779_v49  ;;  %v7537_v58 = vpop.eup %4324  ;;  %v9320_v14 = vld [vmem:[#allocation33_spill] sm:$0xff]  ;;  %v9321_v59 = vld [vmem:[#allocation47_spill] sm:$0xff] }
 0x2f8   : > { %v2650_v43 = vpop.permute.xlu0 %2649  ;;  %v2783_v55 = vmul.f32 1.442695, %v2764_v48  ;;  %v2718_v30 = vsub.f32 %v7087_v33, %v7514_v11  ;;  %3195 = vrot.lane.b32.xlu1 %v9318_v17, %s4655_s6  ;;  %v7541_v42 = vmul.f32 %v7369_v2, %v9320_v14  ;;  %4334 = vpow2.f32 %v2733_v29  ;;  %v9323_v48 = vld [vmem:[#allocation34_spill] sm:$0xff]  ;;  %v9324_v17 = vld [vmem:[#allocation29_spill] sm:$0xff] }
 0x2f9   : > { %9316 = vst [vmem:[#allocation95_spill] sm:$0xff] %v7523_v22  ;;  %v7535_v26 = vmul.f32 %v9319_v41, %v2650_v43  ;;  %v2737_v19 = vmul.f32 1.442695, %v2717_v28  ;;  %v7544_v49 = vmax.f32 %v9321_v59, %v2688_v4  ;;  %4336 = vpow2.f32 %v2781_v39  ;;  %v9326_v29 = vld [vmem:[#allocation6_spill] sm:$0xff]  ;;  %9339 = vst [vmem:[#allocation29_spill] sm:$0xff] %v7606_v25 }
 0x2fa   : > { %3197 = vrot.lane.b32.xlu0 %v9323_v48, %s4655_s6  ;;  %v2785_v33 = vmul.f32 1.442695, %v2765_v37  ;;  %v2766_v47 = vsub.f32 %v2686_v40, %v7514_v11  ;;  %v2719_v43 = vsub.f32 %v7117_v7, %v7523_v22  ;;  %v2652_v41 = vpop.permute.xlu1 %2651  ;;  %v2575_v14 = vmul.f32 %v7379_v23, %v9324_v17  ;;  %v9328_v7 = vld [vmem:[#allocation56_spill] sm:$0xff]  ;;  %v9329_v11 = vld [vmem:[#allocation55_spill] sm:$0xff] }
 0x2fb   : > { %9322 = vst [vmem:[#allocation27_spill] sm:$0xff] %v7544_v49  ;;  %v7555_v28 = vmul.f32 %v7388_v44, %v9325_v53  ;;  %4338 = vpow2.f32 %v2735_v21  ;;  %v7559_v35 = vmax.f32 %v9326_v29, %v7535_v26  ;;  %v2739_v37 = vmul.f32 1.442695, %v2718_v30 }
 0x2fc   : > { %v2654_v39 = vpop.permute.xlu0 %2653  ;;  %4340 = vpow2.f32 %v2783_v55  ;;  %v2767_v40 = vsub.f32 %v7505_v3, %v7523_v22  ;;  %v2690_v48 = vmul.f32 %v9328_v7, %v2652_v41  ;;  %3199 = vrot.lane.b32.xlu1 %v9329_v11, %s4655_s6  ;;  %v7567_v17 = vadd.f32 %v2573_v63, %v7471_v15  ;;  %v9330_v55 = vld [vmem:[#allocation48_spill] sm:$0xff] }
 0x2fd   : > { %9327 = vst [vmem:[#allocation19_spill] sm:$0xff] %v7559_v35  ;;  %v7569_v53 = vadd.f32 %v2574_v57, %v2510_v6  ;;  %4342 = vpow2.f32 %v2737_v19  ;;  %v2720_v21 = vsub.f32 %v9321_v59, %v7544_v49  ;;  %v2787_v30 = vmul.f32 1.442695, %v2766_v47  ;;  %v9331_v6 = vld [vmem:[#allocation21_spill] sm:$0xff]  ;;  %v7583_v11 = vld [vmem:[#allocation2 + $0xc1] sm:$0xff]  ;;  %v9335_v47 = vld [vmem:[#allocation38_spill] sm:$0xff] }
 0x2fe   : > { %3201 = vrot.lane.b32.xlu0 %v9330_v55, %s4655_s6  ;;  %4344 = vpow2.f32 %v2785_v33  ;;  %v2741_v3 = vmul.f32 1.442695, %v2719_v43  ;;  %v2768_v41 = vsub.f32 %v2688_v4, %v7544_v49  ;;  %v2656_v7 = vpop.permute.xlu1 %2655  ;;  %v7576_v22 = vpop.eup %4326  ;;  %v2721_v15 = vsub.f32 %v9326_v29, %v7559_v35  ;;  %9333 = vst [vmem:[#allocation33_spill] sm:$0xff] %v7583_v11  ;;  %v7586_v19 = vld [vmem:[#allocation2 + $0xc9] sm:$0xff] }
 0x2ff   : > { %v7581_v63 = vmax.f32 %v9331_v6, %v2690_v48  ;;  %v2691_v57 = vmul.f32 %v7583_v11, %v2654_v39  ;;  %9334 = vst [vmem:[#allocation47_spill] sm:$0xff] %v7586_v19  ;;  %v7589_v59 = vmul.f32 %v7586_v19, %v2656_v7  ;;  %v7591_v4 = vpop.eup %4328  ;;  %v2576_v43 = vmul.f32 %v7400_v10, %v9335_v47  ;;  %v9336_v49 = vld [vmem:[#allocation28_spill] sm:$0xff]  ;;  %v9337_v19 = vld [vmem:[#allocation59_spill] sm:$0xff] }
 0x300   : > { %v2658_v33 = vpop.permute.xlu0 %2657  ;;  %4346 = vpow2.f32 %v2739_v37  ;;  %v2789_v29 = vmul.f32 1.442695, %v2767_v40  ;;  %v2769_v55 = vsub.f32 %v7535_v26, %v7559_v35  ;;  %3203 = vrot.lane.b32.xlu1 %v9336_v49, %s4655_s6  ;;  %v7599_v39 = vpop.eup %4330  ;;  %v2743_v11 = vmul.f32 1.442695, %v2720_v21  ;;  %v9340_v40 = vld [vmem:[#allocation16_spill] sm:$0xff]  ;;  %v9342_v47 = vld [vmem:[#allocation63_spill] sm:$0xff] }
 0x301   : > { %9332 = vst [vmem:[#allocation5_spill] sm:$0xff] %v7581_v63  ;;  %v2722_v7 = vsub.f32 %v9331_v6, %v7581_v63  ;;  %v7604_v23 = vmax.f32 %v9337_v19, %v2691_v57  ;;  %v7609_v37 = vmul.f32 %v7606_v25, %v2658_v33  ;;  %v7613_v26 = vpop.eup %4332  ;;  %4348 = vpow2.f32 %v2787_v30 }
 0x302   : > { %3205 = vrot.lane.b32.xlu0 %v9340_v40, %s4655_s6  ;;  %9341 = vst [vmem:[#allocation40_spill] sm:$0xff] %v7613_v26  ;;  %v2791_v49 = vmul.f32 1.442695, %v2768_v41  ;;  %v2770_v21 = vsub.f32 %v2690_v48, %v7581_v63  ;;  %v7618_v6 = vmax.f32 %v9342_v47, %v7589_v59  ;;  %v2660_v35 = vpop.permute.xlu1 %2659  ;;  %v7620_v10 = vpop.eup %4334  ;;  %v7624_v33 = vmul.f32 %v7407_v62, %v9344_v45 }
 0x303   : > { %9338 = vst [vmem:[#allocation34_spill] sm:$0xff] %v7604_v23  ;;  %4350 = vpow2.f32 %v2741_v3  ;;  %v2745_v25 = vmul.f32 1.442695, %v2721_v15  ;;  %v2723_v40 = vsub.f32 %v9337_v19, %v7604_v23  ;;  %v7628_v41 = vpop.eup %4336  ;;  %v7631_v48 = vadd.f32 %v2575_v14, %v7541_v42  ;;  %v9346_v19 = vld [vmem:[#allocation50_spill] sm:$0xff]  ;;  %v9348_v42 = vld [vmem:[#allocation24_spill] sm:$0xff] }
 0x304   : > { %9343 = vst [vmem:[#allocation6_spill] sm:$0xff] %v7618_v6  ;;  %v2662_v30 = vpop.permute.xlu0 %2661  ;;  %4352 = vpow2.f32 %v2789_v29  ;;  %v2793_v63 = vmul.f32 1.442695, %v2769_v55  ;;  %v2771_v44 = vsub.f32 %v2691_v57, %v7604_v23  ;;  %3207 = vrot.lane.b32.xlu1 %v9345_v8, %s4655_s6  ;;  %v2747_v3 = vmul.f32 1.442695, %v2722_v7  ;;  %v9349_v57 = vld [vmem:[#allocation32_spill] sm:$0xff] }
 0x305   : > { %v7636_v45 = vpop.eup %4338  ;;  %4354 = vpow2.f32 %v2743_v11  ;;  %v2724_v15 = vsub.f32 %v9342_v47, %v7618_v6  ;;  %v7642_v62 = vmax.f32 %v9346_v19, %v7609_v37  ;;  %v7650_v29 = vmul.f32 %v7425_v24, %v9349_v57  ;;  %v9350_v47 = vld [vmem:[#allocation39_spill] sm:$0xff] }
 0x306   : > { %3209 = vrot.lane.b32.xlu0 %v9348_v42, %s4655_s6  ;;  %v7646_v14 = vpop.eup %4340  ;;  %4356 = vpow2.f32 %v2791_v49  ;;  %v2795_v8 = vmul.f32 1.442695, %v2770_v21  ;;  %v2772_v11 = vsub.f32 %v7589_v59, %v7618_v6  ;;  %v2664_v55 = vpop.permute.xlu1 %2663  ;;  %v7658_v23 = vmul.f32 %v7446_v1, %v9350_v47  ;;  %v7666_v21 = vld [vmem:[#allocation2 + $0xe9] sm:$0xff]  ;;  %v7675_v1 = vld [vmem:[#allocation2 + $0x101] sm:$0xff] }
 0x307   : > { %9347 = vst [vmem:[#allocation56_spill] sm:$0xff] %v7642_v62  ;;  %v7654_v7 = vpop.eup %4342  ;;  %4358 = vpow2.f32 %v2745_v25  ;;  %v2749_v42 = vmul.f32 1.442695, %v2723_v40  ;;  %v2725_v56 = vsub.f32 %v9346_v19, %v7642_v62  ;;  %v2797_v49 = vmul.f32 1.442695, %v2771_v44  ;;  %9351 = vst [vmem:[#allocation55_spill] sm:$0xff] %v7666_v21 }
 0x308   : > { %v2858_v51 = vpop.permute.xlu0 %2857  ;;  %v7662_v57 = vpop.eup %4344  ;;  %4360 = vpow2.f32 %v2793_v63  ;;  %v2773_v59 = vsub.f32 %v7609_v37, %v7642_v62  ;;  %v2694_v6 = vmul.f32 %v7666_v21, %v2660_v35  ;;  %v9352_v47 = vld [vmem:[#allocation4_spill] sm:$0xff]  ;;  %v9353_v25 = vld [vmem:[#allocation25_spill] sm:$0xff]  ;;  %v2751_v19 = vmul.f32 1.442695, %v2724_v15  ;;  %9355 = vst [vmem:[#allocation21_spill] sm:$0xff] %v7675_v1  ;;  %v9356_v63 = vld [vmem:[#allocation42_spill] sm:$0xff] }
 0x309   : > { %3211 = vrot.lane.b32.xlu1 %v9352_v47, %s4655_s6  ;;  %v7673_v40 = vmul.f32 %v7467_v12, %v9353_v25  ;;  %4362 = vpow2.f32 %v2747_v3  ;;  %v2695_v44 = vmul.f32 %v7675_v1, %v2662_v30  ;;  %v7683_v35 = vadd.f32 %v2576_v43, %v7555_v28  ;;  %v9357_v21 = vld [vmem:[#allocation17_spill] sm:$0xff]  ;;  %v9361_v28 = vld [vmem:[#allocation20_spill] sm:$0xff] }
 0x30a   : > { %3213 = vrot.lane.b32.xlu0 %v9356_v63, %s4655_s6  ;;  %v7680_v37 = vpop.eup %4346  ;;  %4364 = vpow2.f32 %v2795_v8  ;;  %v2799_v47 = vmul.f32 1.442695, %v2772_v11  ;;  %v7686_v62 = vmax.f32 %v9357_v21, %v2694_v6  ;;  %v2860_v25 = vpop.permute.xlu1 %2859  ;;  %v2753_v3 = vmul.f32 1.442695, %v2725_v56  ;;  %v7691_v30 = vld [vmem:[#allocation2 + $0x109] sm:$0xff] }
 0x30b   : > { %9354 = vst [vmem:[#allocation48_spill] sm:$0xff] %v7673_v40  ;;  %4366 = vpow2.f32 %v2749_v42  ;;  %v7689_v15 = vmax.f32 %v7299_v54, %v2695_v44  ;;  %9360 = vst [vmem:[#allocation59_spill] sm:$0xff] %v7691_v30  ;;  %v7694_v63 = vmul.f32 %v7691_v30, %v2664_v55  ;;  %v7696_v12 = vpop.eup %4348  ;;  %v2577_v43 = vmul.f32 %v7414_v36, %v9361_v28  ;;  %v9362_v8 = vld [vmem:[#allocation64_spill] sm:$0xff]  ;;  %v9363_v42 = vld [vmem:[#allocation18_spill] sm:$0xff] }
 0x30c   : > { %9358 = vst [vmem:[#allocation38_spill] sm:$0xff] %v7686_v62  ;;  %v2862_v1 = vpop.permute.xlu0 %2861  ;;  %v7702_v11 = vmul.f32 %v7438_v60, %v9362_v8  ;;  %4368 = vpow2.f32 %v2797_v49  ;;  %v2801_v56 = vmul.f32 1.442695, %v2773_v59  ;;  %v2726_v55 = vsub.f32 %v9357_v21, %v7686_v62  ;;  %v9365_v8 = vld [vmem:[#allocation30_spill] sm:$0xff] }
 0x30d   : > { %9359 = vst [vmem:[#allocation28_spill] sm:$0xff] %v7689_v15  ;;  %3215 = vrot.lane.b32.xlu1 %v9363_v42, %s4655_s6  ;;  %v7706_v24 = vpop.eup %4350  ;;  %4370 = vpow2.f32 %v2751_v19  ;;  %v2727_v30 = vsub.f32 %v7299_v54, %v7689_v15  ;;  %v7714_v28 = vmax.f32 %v7329_v32, %v7694_v63  ;;  %v2774_v59 = vsub.f32 %v2694_v6, %v7686_v62 }
 0x30e   : > { %3217 = vrot.lane.b32.xlu0 %v9365_v8, %s4655_s6  ;;  %v7718_v49 = vpop.eup %4352  ;;  %4372 = vpow2.f32 %v2799_v47  ;;  %v2841_v19 = vmul.f32 %v7576_v22, %v7402_v0  ;;  %v2905_v21 = vmul.f32 %v7591_v4, %v2858_v51  ;;  %v2864_v42 = vpop.permute.xlu1 %2863  ;;  %v2775_v36 = vsub.f32 %v2695_v44, %v7689_v15  ;;  %v9366_v47 = vld [vmem:[#allocation31_spill] sm:$0xff] }
 0x30f   : > { %9364 = vst [vmem:[#allocation16_spill] sm:$0xff] %v7714_v28  ;;  %v7724_v60 = vpop.eup %4354  ;;  %4374 = vpow2.f32 %v2753_v3  ;;  %v2757_v54 = vmul.f32 1.442695, %v2727_v30  ;;  %v2728_v8 = vsub.f32 %v7329_v32, %v7714_v28  ;;  %v7732_v6 = vadd.f32 %v2577_v43, %v7624_v33  ;;  %v9368_v3 = vld [vmem:[#allocation43_spill] sm:$0xff] }
 0x310   : > { %v2866_v40 = vpop.permute.xlu0 %2865  ;;  %v7729_v2 = vpop.eup %4356  ;;  %v7736_v0 = vmul.f32 %v7509_v38, %v9366_v47  ;;  %4376 = vpow2.f32 %v2801_v56  ;;  %v7738_v51 = vadd.f32 %v2905_v21, %v2841_v19  ;;  %v2755_v30 = vmul.f32 1.442695, %v2726_v55  ;;  %v9369_v43 = vld [vmem:[#allocation35_spill] sm:$0xff]  ;;  %v9370_v56 = vld [vmem:[#allocation46_spill] sm:$0xff] }
 0x311   : > { %3219 = vrot.lane.b32.xlu1 %v9368_v3, %s4655_s6  ;;  %v7742_v44 = vpop.eup %4358  ;;  %v2759_v32 = vmul.f32 1.442695, %v2728_v8  ;;  %v2842_v15 = vmul.f32 %v7599_v39, %v7427_v13  ;;  %v2906_v33 = vmul.f32 %v7613_v26, %v2860_v25  ;;  %v2579_v19 = vmul.f32 %v7455_v18, %v9370_v56 }
 0x312   : > { %9367 = vst [vmem:[#allocation63_spill] sm:$0xff] %v7738_v51  ;;  %3221 = vrot.lane.b32.xlu0 %v9369_v43, %s4655_s6  ;;  %v7749_v47 = vpop.eup %4360  ;;  %v2582_v21 = vmul.f32 %v7518_v52, %v7340_v34  ;;  %v2803_v3 = vmul.f32 1.442695, %v2774_v59  ;;  %4378 = vpow2.f32 %v2757_v54  ;;  %v2868_v55 = vpop.permute.xlu1 %2867  ;;  %v2805_v51 = vmul.f32 1.442695, %v2775_v36  ;;  %v9372_v36 = vld [vmem:[#allocation23_spill] sm:$0xff] }
 0x313   : > { %v7755_v8 = vpop.eup %4362  ;;  %v7757_v13 = vadd.f32 %v2906_v33, %v2842_v15  ;;  %v2843_v25 = vmul.f32 %v7620_v10, %v7448_v16  ;;  %v2907_v43 = vmul.f32 %v7628_v41, %v2862_v1  ;;  %4380 = vpow2.f32 %v2759_v32 }
 0x314   : > { %v2870_v62 = vpop.permute.xlu0 %2869  ;;  %v7762_v26 = vpop.eup %4364  ;;  %v2776_v34 = vsub.f32 %v7694_v63, %v7714_v28  ;;  %v2844_v59 = vmul.f32 %v7636_v45, %v7457_v20  ;;  %v2908_v54 = vmul.f32 %v7646_v14, %v2864_v42  ;;  %4382 = vpow2.f32 %v2755_v30  ;;  %v9374_v63 = vld [vmem:[#allocation60_spill] sm:$0xff] }
 0x315   : > { %9371 = vst [vmem:[#allocation9_spill] sm:$0xff] %v7757_v13  ;;  %3223 = vrot.lane.b32.xlu1 %v9372_v36, %s4655_s6  ;;  %v7771_v15 = vpop.eup %4366  ;;  %v7773_v16 = vadd.f32 %v2907_v43, %v2843_v25  ;;  %v2845_v1 = vmul.f32 %v7654_v7, %v7482_v46  ;;  %v2909_v32 = vmul.f32 %v7662_v57, %v2866_v40  ;;  %4384 = vpow2.f32 %v2803_v3 }
 0x316   : > { %3529 = vrot.lane.b32.xlu0 %v9374_v63, %s4656_s7  ;;  %v7780_v20 = vpop.eup %4368  ;;  %v2583_v42 = vmul.f32 %v7537_v58, %v7367_v9  ;;  %v7784_v33 = vadd.f32 %v2908_v54, %v2844_v59  ;;  %v2846_v30 = vmul.f32 %v7680_v37, %v7567_v17  ;;  %v2872_v56 = vpop.permute.xlu1 %2871  ;;  %v2910_v40 = vmul.f32 %v7696_v12, %v2868_v55  ;;  %v9377_v54 = vld [vmem:[#allocation62_spill] sm:$0xff] }
 0x317   : > { %9373 = vst [vmem:[#allocation51_spill] sm:$0xff] %v7773_v16  ;;  %v7788_v25 = vpop.eup %4370  ;;  %v7790_v46 = vadd.f32 %v2909_v32, %v2845_v1  ;;  %v2847_v43 = vmul.f32 %v7706_v24, %v7569_v53  ;;  %v2911_v36 = vmul.f32 %v7718_v49, %v2870_v62  ;;  %4386 = vpow2.f32 %v2805_v51 }
 0x318   : > { %9375 = vst [vmem:[#allocation50_spill] sm:$0xff] %v7784_v33  ;;  %v2874_v63 = vpop.permute.xlu0 %2873  ;;  %v7796_v9 = vpop.eup %4372  ;;  %v2807_v3 = vmul.f32 1.442695, %v2776_v34  ;;  %v2848_v17 = vmul.f32 %v7724_v60, %v7631_v48  ;;  %v2912_v59 = vmul.f32 %v7729_v2, %v2872_v56  ;;  %v7805_v55 = vadd.f32 %v2910_v40, %v2846_v30  ;;  %v9381_v34 = vld [vmem:[#allocation7_spill] sm:$0xff]  ;;  %v9383_v56 = vld [vmem:[#allocation65_spill] sm:$0xff] }
 0x319   : > { %9376 = vst [vmem:[#allocation24_spill] sm:$0xff] %v7790_v46  ;;  %3531 = vrot.lane.b32.xlu1 %v9377_v54, %s4656_s7  ;;  %v7803_v1 = vpop.eup %4374  ;;  %v7807_v53 = vadd.f32 %v2911_v36, %v2847_v43  ;;  %v2849_v62 = vmul.f32 %v7742_v44, %v7683_v35  ;;  %v2913_v51 = vmul.f32 %v7749_v47, %v2874_v63  ;;  %v9384_v30 = vld [vmem:[#allocation61_spill] sm:$0xff] }
 0x31a   : > { %9378 = vst [vmem:[#allocation32_spill] sm:$0xff] %v7803_v1  ;;  %9379 = vst [vmem:[#allocation39_spill] sm:$0xff] %v7805_v55  ;;  %3533 = vrot.lane.b32.xlu0 %v9381_v34, %s4656_s7  ;;  %v7814_v48 = vpop.eup %4376  ;;  %v2594_v32 = vadd.f32 %v7702_v11, %v7650_v29  ;;  %v2580_v54 = vmul.f32 %v7480_v31, %v9383_v56  ;;  %v2519_v40 = vmul.f32 %v7528_v5, %v9384_v30  ;;  %v2876_v36 = vpop.permute.xlu1 %2875  ;;  %v9388_v56 = vld [vmem:[#allocation52_spill] sm:$0xff]  ;;  %v9393_v30 = vld [vmem:[#allocation58_spill] sm:$0xff] }
 0x31b   : > { %9380 = vst [vmem:[#allocation4_spill] sm:$0xff] %v7807_v53  ;;  %9382 = vst [vmem:[#allocation25_spill] sm:$0xff] %v7814_v48  ;;  %v7822_v43 = vadd.f32 %v2912_v59, %v2848_v17  ;;  %v2598_v35 = vadd.f32 %v2582_v21, %v7736_v0  ;;  %v7825_v63 = vadd.f32 %v2913_v51, %v2849_v62  ;;  %4388 = vpow2.f32 %v2807_v3  ;;  %v9390_v62 = vld [vmem:[#allocation26_spill] sm:$0xff]  ;;  %v9406_v33 = vld [vmem:[#allocation41_spill] sm:$0xff] }
 0x31c   : > { %v2850_v34 = vmul.f32 %v7755_v8, %v7732_v6  ;;  %v2914_v53 = vmul.f32 %v7762_v26, %v2876_v36  ;;  %v2878_v55 = vpop.permute.xlu0 %2877  ;;  %v7830_v29 = vpop.eup %4378  ;;  %v2595_v11 = vadd.f32 %v2579_v19, %v7658_v23  ;;  %v2851_v17 = vmul.f32 %v7771_v15, %v2594_v32  ;;  %v9392_v19 = vld [vmem:[#allocation37_spill] sm:$0xff] }
 0x31d   : > { %9385 = vst [vmem:[#allocation42_spill] sm:$0xff] %v7822_v43  ;;  %9386 = vst [vmem:[#allocation17_spill] sm:$0xff] %v7825_v63  ;;  %3535 = vrot.lane.b32.xlu1 %v9388_v56, %s4656_s7  ;;  %v2915_v0 = vmul.f32 %v7780_v20, %v2878_v55  ;;  %v2581_v21 = vmul.f32 %v7497_v50, %v7331_v27  ;;  %v2599_v59 = vadd.f32 %v2583_v42, %v2519_v40  ;;  %v7844_v23 = vpop.eup %4380  ;;  %v9394_v32 = vld [vmem:[#allocation73_spill] sm:$0xff]  ;;  %v9395_v55 = vld [vmem:[#allocation48_spill] sm:$0xff] }
 0x31e   : > { %9387 = vst [vmem:[#allocation20_spill] sm:$0xff] %v7830_v29  ;;  %v7839_v6 = vadd.f32 %v2914_v53, %v2850_v34  ;;  %3537 = vrot.lane.b32.xlu0 %v9390_v62, %s4656_s7  ;;  %v2855_v51 = vmul.f32 %v7830_v29, %v2598_v35  ;;  %9391 = vst [vmem:[#allocation18_spill] sm:$0xff] %v7844_v23  ;;  %v2478_v3 = vmul.f32 %v7342_v61, %v9392_v19  ;;  %v2880_v27 = vpop.permute.xlu1 %2879  ;;  %v7853_v42 = vpop.eup %4382  ;;  %v9397_v53 = vld [vmem:[#allocation15_spill] sm:$0xff]  ;;  %v9398_v40 = vld [vmem:[#allocation94_spill] sm:$0xff] }
 0x31f   : > { %v2479_v36 = vmul.f32 %v9394_v32, %v9393_v30  ;;  %v2596_v56 = vadd.f32 %v2580_v54, %v9395_v55  ;;  %v7851_v63 = vadd.f32 %v2915_v0, %v2851_v17  ;;  %v2517_v34 = vmul.f32 %v9398_v40, %v9397_v53  ;;  %v7860_v19 = vpop.eup %4384  ;;  %v9399_v30 = vld [vmem:[#allocation11_spill] sm:$0xff]  ;;  %v9400_v32 = vld [vmem:[#allocation66_spill] sm:$0xff]  ;;  %v9401_v17 = vld [vmem:[#allocation57_spill] sm:$0xff] }
 0x320   : > { %9389 = vst [vmem:[#allocation64_spill] sm:$0xff] %v7839_v6  ;;  %v2852_v35 = vmul.f32 %v7788_v25, %v2595_v11  ;;  %v2916_v62 = vmul.f32 %v7796_v9, %v2880_v27  ;;  %v2882_v6 = vpop.permute.xlu0 %2881  ;;  %v2856_v61 = vmul.f32 %v7844_v23, %v2599_v59  ;;  %v2492_v54 = vadd.f32 %v9400_v32, %v9399_v30  ;;  %v9402_v0 = vld [vmem:[#allocation77_spill] sm:$0xff]  ;;  %v9405_v27 = vld [vmem:[#allocation80_spill] sm:$0xff]  ;;  %v9409_v30 = vld [vmem:[#allocation67_spill] sm:$0xff] }
 0x321   : > { %9396 = vst [vmem:[#allocation30_spill] sm:$0xff] %v7851_v63  ;;  %v2480_v55 = vmul.f32 %v9402_v0, %v9401_v17  ;;  %v9403_v63 = vld [vmem:[#allocation36_spill] sm:$0xff]  ;;  %v2853_v53 = vmul.f32 %v7803_v1, %v2596_v56  ;;  %v2917_v11 = vmul.f32 %v7814_v48, %v2882_v6  ;;  %v9404_v43 = vld [vmem:[#allocation45_spill] sm:$0xff]  ;;  %v2597_v13 = vadd.f32 %v2581_v21, %v2517_v34  ;;  %v7878_v32 = vpop.eup %4386  ;;  %v9410_v17 = vld [vmem:[#allocation54_spill] sm:$0xff] }
 0x322   : > { %3539 = vrot.lane.b32.xlu1 %v9403_v63, %s4656_s7  ;;  %v2481_v46 = vmul.f32 %v9405_v27, %v9404_v43  ;;  %v9407_v59 = vld [vmem:[#allocation84_spill] sm:$0xff]  ;;  %v7874_v28 = vadd.f32 %v2916_v62, %v2852_v35  ;;  %3541 = vrot.lane.b32.xlu0 %v9409_v30, %s4656_s7  ;;  %v9413_v6 = vld [vmem:[#allocation75_spill] sm:$0xff]  ;;  %v2884_v43 = vpop.permute.xlu1 %2883  ;;  %v9415_v27 = vld [vmem:[#allocation13_spill] sm:$0xff] }
 0x323   : > { %v2482_v16 = vmul.f32 %v9407_v59, %v9406_v33  ;;  %v9411_v63 = vld [vmem:[#allocation44_spill] sm:$0xff]  ;;  %v2495_v29 = vadd.f32 %v9413_v6, %v2479_v36  ;;  %v7884_v48 = vadd.f32 %v2917_v11, %v2853_v53  ;;  %v9417_v34 = vld [vmem:[#allocation22_spill] sm:$0xff]  ;;  %v9418_v35 = vld [vmem:[#allocation91_spill] sm:$0xff]  ;;  %v2854_v59 = vmul.f32 %v7853_v42, %v2597_v13 }
 0x324   : > { %9408 = vst [vmem:[#allocation31_spill] sm:$0xff] %v7874_v28  ;;  %v2493_v0 = vadd.f32 %v9411_v63, %v9410_v17  ;;  %v9412_v56 = vld [vmem:[#allocation72_spill] sm:$0xff]  ;;  %v2484_v62 = vmul.f32 %v9418_v35, %v9417_v34  ;;  %v2918_v30 = vmul.f32 %v7860_v19, %v2884_v43  ;;  %v2886_v28 = vpop.permute.xlu0 %2885  ;;  %v9419_v1 = vld [vmem:[#allocation78_spill] sm:$0xff]  ;;  %v9421_v36 = vld [vmem:[#allocation53_spill] sm:$0xff] }
 0x325   : > { %v2494_v23 = vadd.f32 %v9412_v56, %v2478_v3  ;;  %9414 = vst [vmem:[#allocation43_spill] sm:$0xff] %v7884_v48  ;;  %v9416_v33 = vld [vmem:[#allocation88_spill] sm:$0xff]  ;;  %v2496_v17 = vadd.f32 %v9419_v1, %v2480_v55  ;;  %v2486_v53 = vmul.f32 %v7509_v38, %v9421_v36  ;;  %v9422_v11 = vld [vmem:[#allocation69_spill] sm:$0xff]  ;;  %v2919_v56 = vmul.f32 %v7878_v32, %v2886_v28  ;;  %v9423_v6 = vld [vmem:[#allocation82_spill] sm:$0xff] }
 0x326   : > { %v2483_v21 = vmul.f32 %v9416_v33, %v9415_v27  ;;  %v9420_v63 = vld [vmem:[#allocation12_spill] sm:$0xff]  ;;  %3543 = vrot.lane.b32.xlu1 %v9422_v11, %s4656_s7  ;;  %v2497_v27 = vadd.f32 %v9423_v6, %v2481_v46  ;;  %v9424_v33 = vld [vmem:[#allocation86_spill] sm:$0xff]  ;;  %v7904_v35 = vadd.f32 %v2918_v30, %v2854_v59  ;;  %v2888_v11 = vpop.permute.xlu1 %2887  ;;  %v7922_v59 = vadd.f32 %v7480_v31, %v2484_v62  ;;  %v9432_v30 = vld [vmem:[#allocation71_spill] sm:$0xff] }
 0x327   : > { %v2485_v3 = vmul.f32 %v9398_v40, %v9420_v63  ;;  %v2498_v13 = vadd.f32 %v9424_v33, %v2482_v16  ;;  %v9425_v34 = vld [vmem:[#allocation10_spill] sm:$0xff]  ;;  %v7908_v40 = vpop.eup %4388  ;;  %v9428_v38 = vld [vmem:[#allocation8_spill] sm:$0xff]  ;;  %v7916_v16 = vadd.f32 %v2919_v56, %v2855_v51  ;;  %v2812_v6 = vmul.f32 %v7636_v45, %v9432_v30  ;;  %v9441_v30 = vld [vmem:[#allocation87_spill] sm:$0xff] }
 0x328   : > { %v2487_v43 = vmul.f32 %v7528_v5, %v9425_v34  ;;  %9426 = vst [vmem:[#allocation35_spill] sm:$0xff] %v7904_v35  ;;  %v9427_v1 = vld [vmem:[#allocation74_spill] sm:$0xff]  ;;  %v2809_v55 = vmul.f32 %v7576_v22, %v9428_v38  ;;  %v9429_v63 = vld [vmem:[#allocation68_spill] sm:$0xff]  ;;  %v7919_v5 = vadd.f32 %v7455_v18, %v2483_v21  ;;  %v2920_v22 = vmul.f32 %v7908_v40, %v2888_v11  ;;  %v2970_v33 = vpop.permute.xlu0 %2969 }
 0x329   : > { %3545 = vrot.lane.b32.xlu0 %v9427_v1, %s4656_s7  ;;  %v2810_v28 = vmul.f32 %v7599_v39, %v9429_v63  ;;  %v9430_v36 = vld [vmem:[#allocation70_spill] sm:$0xff]  ;;  %9431 = vst [vmem:[#allocation46_spill] sm:$0xff] %v7916_v16  ;;  %v7928_v39 = vadd.f32 %v7497_v50, %v2485_v3  ;;  %v2813_v51 = vmul.f32 %v7654_v7, %v2492_v54  ;;  %v9433_v18 = vld [vmem:[#allocation76_spill] sm:$0xff] }
 0x32a   : > { %v2811_v46 = vmul.f32 %v7620_v10, %v9430_v36  ;;  %v7931_v10 = vadd.f32 %v7518_v52, %v2486_v53  ;;  %3547 = vrot.lane.b32.xlu1 %v9433_v18, %s4656_s7  ;;  %v7936_v21 = vld [vmem:[#allocation2 + $0x21] sm:$0xff]  ;;  %v7940_v45 = vadd.f32 %v7537_v58, %v2487_v43  ;;  %v2814_v62 = vmul.f32 %v7680_v37, %v2493_v0  ;;  %v9435_v52 = vld [vmem:[#allocation81_spill] sm:$0xff]  ;;  %v2972_v37 = vpop.permute.xlu1 %2971 }
 0x32b   : > { %v3017_v31 = vmul.f32 %v7936_v21, %v2970_v33  ;;  %v2815_v50 = vmul.f32 %v7706_v24, %v2494_v23  ;;  %v7944_v3 = vadd.f32 %v2920_v22, %v2856_v61  ;;  %v7949_v7 = vadd.f32 %v7591_v4, %v2809_v55  ;;  %v9436_v54 = vld [vmem:[#allocation40_spill] sm:$0xff]  ;;  %v9437_v58 = vld [vmem:[#allocation79_spill] sm:$0xff] }
 0x32c   : > { %v7952_v53 = vadd.f32 %v9436_v54, %v2810_v28  ;;  %v7955_v56 = vadd.f32 %v7628_v41, %v2811_v46  ;;  %v7961_v24 = vadd.f32 %v7646_v14, %v2812_v6  ;;  %v2816_v23 = vmul.f32 %v7724_v60, %v2495_v29  ;;  %v7965_v0 = vld [vmem:[#allocation2 + $0x29] sm:$0xff]  ;;  %v2974_v43 = vpop.permute.xlu0 %2973  ;;  %v9438_v14 = vld [vmem:[#allocation83_spill] sm:$0xff] }
 0x32d   : > { %9434 = vst [vmem:[#allocation23_spill] sm:$0xff] %v7944_v3  ;;  %3549 = vrot.lane.b32.xlu0 %v9435_v52, %s4656_s7  ;;  %v7958_v34 = vmax.f32 %v9437_v58, %v3017_v31  ;;  %v2817_v61 = vmul.f32 %v7742_v44, %v2496_v17  ;;  %v3018_v4 = vmul.f32 %v7965_v0, %v2972_v37  ;;  %v7976_v55 = vld [vmem:[#allocation2 + $0x41] sm:$0xff]  ;;  %v9439_v17 = vld [vmem:[#allocation85_spill] sm:$0xff] }
 0x32e   : > { %v7969_v1 = vadd.f32 %v7662_v57, %v2813_v51  ;;  %3551 = vrot.lane.b32.xlu1 %v9438_v14, %s4656_s7  ;;  %v3019_v60 = vmul.f32 %v7976_v55, %v2974_v43  ;;  %v7980_v44 = vadd.f32 %v7696_v12, %v2814_v62  ;;  %v7983_v29 = vadd.f32 %v7718_v49, %v2815_v50  ;;  %v9440_v28 = vld [vmem:[#allocation89_spill] sm:$0xff]  ;;  %v2976_v12 = vpop.permute.xlu1 %2975  ;;  %v8011_v18 = vld [vmem:[#allocation2 + $0x61] sm:$0xff] }
 0x32f   : > { %v3049_v41 = vsub.f32 %v9437_v58, %v7958_v34  ;;  %v3097_v38 = vsub.f32 %v3017_v31, %v7958_v34  ;;  %v2818_v57 = vmul.f32 %v7755_v8, %v2497_v27  ;;  %v7987_v63 = vmax.f32 %v9439_v17, %v3018_v4  ;;  %v8003_v27 = vld [vmem:[#allocation2 + $0x49] sm:$0xff]  ;;  %v9444_v58 = vld [vmem:[#allocation3_spill] sm:$0xff] }
 0x330   : > { %v2819_v36 = vmul.f32 %v7771_v15, %v2498_v13  ;;  %v7993_v6 = vmax.f32 %v9441_v30, %v3019_v60  ;;  %v7996_v22 = vadd.f32 %v7729_v2, %v2816_v23  ;;  %v7999_v49 = vadd.f32 %v7749_v47, %v2817_v61  ;;  %v2978_v15 = vpop.permute.xlu0 %2977  ;;  %v9442_v2 = vld [vmem:[#allocation90_spill] sm:$0xff]  ;;  %v9443_v52 = vld [vmem:[#allocation92_spill] sm:$0xff]  ;;  %v9445_v61 = vld [vmem:[#allocation93_spill] sm:$0xff] }
 0x331   : > { %3553 = vrot.lane.b32.xlu0 %v9440_v28, %s4656_s7  ;;  %v3065_v46 = vmul.f32 1.442695, %v3049_v41  ;;  %v3113_v11 = vmul.f32 1.442695, %v3097_v38  ;;  %v3050_v8 = vsub.f32 %v9439_v17, %v7987_v63  ;;  %v3020_v33 = vmul.f32 %v8003_v27, %v2976_v12  ;;  %v8034_v14 = vld [vmem:[#allocation2 + $0x69] sm:$0xff]  ;;  %v9446_v28 = vld [vmem:[#allocation14_spill] sm:$0xff] }
 0x332   : > { %v3098_v13 = vsub.f32 %v3018_v4, %v7987_v63  ;;  %v3051_v51 = vsub.f32 %v9441_v30, %v7993_v6  ;;  %3555 = vrot.lane.b32.xlu1 %v9442_v2, %s4656_s7  ;;  %v3021_v47 = vmul.f32 %v8011_v18, %v2978_v15  ;;  %v8015_v31 = vadd.f32 %v7762_v26, %v2818_v57  ;;  %v2980_v43 = vpop.permute.xlu1 %2979  ;;  %v9447_v30 = vld [vmem:[#allocation49_spill] sm:$0xff]  ;;  %v9448_v15 = vld [vmem:[#allocation95_spill] sm:$0xff] }
 0x333   : > { %4390 = vpow2.f32 %v3065_v46  ;;  %v3067_v62 = vmul.f32 1.442695, %v3050_v8  ;;  %v3099_v50 = vsub.f32 %v3019_v60, %v7993_v6  ;;  %v8019_v54 = vmax.f32 %v9443_v52, %v3020_v33 }
 0x334   : > { %v8024_v37 = vadd.f32 %v7780_v20, %v2819_v36  ;;  %4392 = vpow2.f32 %v3113_v11  ;;  %v3069_v23 = vmul.f32 1.442695, %v3051_v51  ;;  %v8027_v4 = vmax.f32 %v9445_v61, %v3021_v47  ;;  %v2982_v20 = vpop.permute.xlu0 %2981  ;;  %v8041_v36 = vld [vmem:[#allocation2 + $0x81] sm:$0xff] }
 0x335   : > { %3557 = vrot.lane.b32.xlu0 %v9444_v58, %s4656_s7  ;;  %v2820_v26 = vmul.f32 %v7788_v25, %v7919_v5  ;;  %v3052_v41 = vsub.f32 %v9443_v52, %v8019_v54  ;;  %v3100_v38 = vsub.f32 %v3020_v33, %v8019_v54  ;;  %v3022_v60 = vmul.f32 %v8034_v14, %v2980_v43 }
 0x336   : > { %4394 = vpow2.f32 %v3067_v62  ;;  %v3115_v57 = vmul.f32 1.442695, %v3098_v13  ;;  %v3053_v17 = vsub.f32 %v9445_v61, %v8027_v4  ;;  %3559 = vrot.lane.b32.xlu1 %v9446_v28, %s4656_s7  ;;  %v3023_v25 = vmul.f32 %v8041_v36, %v2982_v20  ;;  %v2984_v51 = vpop.permute.xlu1 %2983  ;;  %v8062_v61 = vld [vmem:[#allocation2 + $0xa1] sm:$0xff] }
 0x337   : > { %v3117_v5 = vmul.f32 1.442695, %v3099_v50  ;;  %v3071_v46 = vmul.f32 1.442695, %v3052_v41  ;;  %v3101_v11 = vsub.f32 %v3021_v47, %v8027_v4  ;;  %v8046_v12 = vmax.f32 %v9447_v30, %v3022_v60  ;;  %v8054_v50 = vld [vmem:[#allocation2 + $0x89] sm:$0xff]  ;;  %v9450_v20 = vld [vmem:[#allocation27_spill] sm:$0xff] }
 0x338   : > { %4396 = vpow2.f32 %v3069_v23  ;;  %v3119_v8 = vmul.f32 1.442695, %v3100_v38  ;;  %v3073_v33 = vmul.f32 1.442695, %v3053_v17  ;;  %v8049_v13 = vmax.f32 %v9448_v15, %v3023_v25  ;;  %v2986_v52 = vpop.permute.xlu0 %2985  ;;  %v9449_v41 = vld [vmem:[#allocation32_spill] sm:$0xff] }
 0x339   : > { %4398 = vpow2.f32 %v3071_v46  ;;  %v3054_v2 = vsub.f32 %v9447_v30, %v8046_v12  ;;  %v3102_v62 = vsub.f32 %v3022_v60, %v8046_v12  ;;  %v3024_v47 = vmul.f32 %v8054_v50, %v2984_v51 }
 0x33a   : > { %v8058_v58 = vadd.f32 %v7796_v9, %v2820_v26  ;;  %4400 = vpow2.f32 %v3115_v57  ;;  %v3055_v23 = vsub.f32 %v9448_v15, %v8049_v13  ;;  %v3025_v43 = vmul.f32 %v8062_v61, %v2986_v52  ;;  %v9451_v57 = vld [vmem:[#allocation19_spill] sm:$0xff]  ;;  %v2988_v30 = vpop.permute.xlu1 %2987 }
 0x33b   : > { %v2821_v38 = vmul.f32 %v9449_v41, %v7922_v59  ;;  %4402 = vpow2.f32 %v3117_v5  ;;  %v3075_v60 = vmul.f32 1.442695, %v3054_v2  ;;  %v8068_v17 = vmax.f32 %v9450_v20, %v3024_v47  ;;  %v9454_v41 = vld [vmem:[#allocation25_spill] sm:$0xff] }
 0x33c   : > { %4404 = vpow2.f32 %v3119_v8  ;;  %v3121_v9 = vmul.f32 1.442695, %v3101_v11  ;;  %v3103_v26 = vsub.f32 %v3023_v25, %v8049_v13  ;;  %v8074_v46 = vmax.f32 %v9451_v57, %v3025_v43  ;;  %v2990_v51 = vpop.permute.xlu0 %2989  ;;  %v8083_v25 = vld [vmem:[#allocation2 + $0xa9] sm:$0xff] }
 0x33d   : > { %v8070_v28 = vpop.eup %4390  ;;  %4406 = vpow2.f32 %v3073_v33  ;;  %v3123_v59 = vmul.f32 1.442695, %v3102_v62  ;;  %v3077_v5 = vmul.f32 1.442695, %v3055_v23  ;;  %v3056_v8 = vsub.f32 %v9450_v20, %v8068_v17  ;;  %9453 = vst [vmem:[#allocation62_spill] sm:$0xff] %v8083_v25  ;;  %v9456_v33 = vld [vmem:[#allocation20_spill] sm:$0xff] }
 0x33e   : > { %9452 = vst [vmem:[#allocation60_spill] sm:$0xff] %v8074_v46  ;;  %v3145_v15 = vmul.f32 %v8070_v28, %v7949_v7  ;;  %v8078_v2 = vpop.eup %4392  ;;  %4408 = vpow2.f32 %v3075_v60  ;;  %v3104_v11 = vsub.f32 %v3024_v47, %v8068_v17  ;;  %v3026_v52 = vmul.f32 %v8083_v25, %v2988_v30 }
 0x33f   : > { %v8087_v3 = vadd.f32 %v9454_v41, %v2821_v38  ;;  %v2822_v7 = vmul.f32 %v7853_v42, %v7928_v39  ;;  %v2823_v62 = vmul.f32 %v9456_v33, %v7931_v10  ;;  %4410 = vpow2.f32 %v3121_v9  ;;  %v2992_v38 = vpop.permute.xlu1 %2991  ;;  %v9458_v41 = vld [vmem:[#allocation5_spill] sm:$0xff]  ;;  %v9461_v10 = vld [vmem:[#allocation47_spill] sm:$0xff]  ;;  %v9463_v9 = vld [vmem:[#allocation18_spill] sm:$0xff] }
 0x340   : > { %v8094_v23 = vadd.f32 %v8078_v2, %v3145_v15  ;;  %v8096_v60 = vpop.eup %4394  ;;  %v3125_v47 = vmul.f32 1.442695, %v3103_v26  ;;  %v3057_v20 = vsub.f32 %v9451_v57, %v8074_v46  ;;  %v3105_v30 = vsub.f32 %v3025_v43, %v8074_v46  ;;  %v9460_v42 = vld [vmem:[#allocation33_spill] sm:$0xff]  ;;  %v2994_v15 = vpop.permute.xlu0 %2993 }
 0x341   : > { %9455 = vst [vmem:[#allocation7_spill] sm:$0xff] %v8087_v3  ;;  %9457 = vst [vmem:[#allocation65_spill] sm:$0xff] %v8096_v60  ;;  %4412 = vpow2.f32 %v3077_v5  ;;  %v8102_v16 = vmax.f32 %v9458_v41, %v3026_v52  ;;  %v3027_v39 = vmul.f32 %v9460_v42, %v2990_v51  ;;  %v8106_v33 = vmul.f32 %v9461_v10, %v2992_v38  ;;  %v9465_v42 = vld [vmem:[#allocation34_spill] sm:$0xff]  ;;  %v9466_v10 = vld [vmem:[#allocation29_spill] sm:$0xff] }
 0x342   : > { %v8108_v35 = vpop.eup %4396  ;;  %v2824_v26 = vmul.f32 %v9463_v9, %v7940_v45  ;;  %4414 = vpow2.f32 %v3123_v59  ;;  %v3079_v57 = vmul.f32 1.442695, %v3056_v8  ;;  %v3127_v48 = vmul.f32 1.442695, %v3104_v11  ;;  %v9468_v8 = vld [vmem:[#allocation6_spill] sm:$0xff] }
 0x343   : > { %9459 = vst [vmem:[#allocation61_spill] sm:$0xff] %v8102_v16  ;;  %9462 = vst [vmem:[#allocation52_spill] sm:$0xff] %v8108_v35  ;;  %v8112_v43 = vpop.eup %4398  ;;  %v3146_v5 = vmul.f32 %v8096_v60, %v7952_v53  ;;  %v3058_v51 = vsub.f32 %v9458_v41, %v8102_v16  ;;  %v8119_v38 = vmax.f32 %v9465_v42, %v3027_v39  ;;  %4416 = vpow2.f32 %v3125_v47  ;;  %v2996_v53 = vpop.permute.xlu1 %2995 }
 0x344   : > { %9464 = vst [vmem:[#allocation26_spill] sm:$0xff] %v8112_v43  ;;  %v8122_v3 = vmul.f32 %v9466_v10, %v2994_v15  ;;  %v8124_v25 = vpop.eup %4400  ;;  %v3081_v45 = vmul.f32 1.442695, %v3057_v20  ;;  %v3106_v59 = vsub.f32 %v3026_v52, %v8102_v16  ;;  %v8129_v11 = vmax.f32 %v9468_v8, %v8106_v33  ;;  %v2998_v20 = vpop.permute.xlu0 %2997 }
 0x345   : > { %9467 = vst [vmem:[#allocation37_spill] sm:$0xff] %v8124_v25  ;;  %v8131_v9 = vpop.eup %4402  ;;  %v3147_v41 = vmul.f32 %v8108_v35, %v7955_v56  ;;  %v3148_v15 = vmul.f32 %v8112_v43, %v7961_v24  ;;  %v3129_v10 = vmul.f32 1.442695, %v3105_v30  ;;  %v3059_v47 = vsub.f32 %v9465_v42, %v8119_v38  ;;  %v9474_v42 = vld [vmem:[#allocation56_spill] sm:$0xff] }
 0x346   : > { %9469 = vst [vmem:[#allocation58_spill] sm:$0xff] %v8131_v9  ;;  %v8139_v60 = vpop.eup %4404  ;;  %v8142_v52 = vadd.f32 %v7860_v19, %v2822_v7  ;;  %v8145_v16 = vadd.f32 %v7878_v32, %v2823_v62  ;;  %4418 = vpow2.f32 %v3079_v57  ;;  %v3107_v46 = vsub.f32 %v3027_v39, %v8119_v38 }
 0x347   : > { %9470 = vst [vmem:[#allocation73_spill] sm:$0xff] %v8139_v60  ;;  %v8148_v56 = vpop.eup %4406  ;;  %v8151_v24 = vadd.f32 %v7908_v40, %v2824_v26  ;;  %4420 = vpow2.f32 %v3127_v48  ;;  %v3083_v30 = vmul.f32 1.442695, %v3058_v51  ;;  %v8155_v43 = vmax.f32 %v9474_v42, %v8122_v3  ;;  %v3000_v62 = vpop.permute.xlu1 %2999 }
 0x348   : > { %9471 = vst [vmem:[#allocation48_spill] sm:$0xff] %v8145_v16  ;;  %9472 = vst [vmem:[#allocation15_spill] sm:$0xff] %v8148_v56  ;;  %v8157_v35 = vpop.eup %4408  ;;  %v8160_v19 = vadd.f32 %v8124_v25, %v3146_v5  ;;  %4422 = vpow2.f32 %v3081_v45  ;;  %v3131_v32 = vmul.f32 1.442695, %v3106_v59  ;;  %v3060_v7 = vsub.f32 %v9468_v8, %v8129_v11  ;;  %v3194_v26 = vpop.permute.xlu0 %3193  ;;  %v9477_v59 = vld [vmem:[#allocation55_spill] sm:$0xff] }
 0x349   : > { %9473 = vst [vmem:[#allocation94_spill] sm:$0xff] %v8151_v24  ;;  %9475 = vst [vmem:[#allocation11_spill] sm:$0xff] %v8155_v43  ;;  %v8165_v40 = vadd.f32 %v8131_v9, %v3147_v41  ;;  %v8168_v48 = vadd.f32 %v8139_v60, %v3148_v15  ;;  %4424 = vpow2.f32 %v3129_v10  ;;  %v3085_v39 = vmul.f32 1.442695, %v3059_v47  ;;  %v8170_v57 = vpop.eup %4410  ;;  %v9479_v10 = vld [vmem:[#allocation21_spill] sm:$0xff] }
 0x34a   : > { %9476 = vst [vmem:[#allocation66_spill] sm:$0xff] %v8157_v35  ;;  %v3149_v5 = vmul.f32 %v8148_v56, %v7969_v1  ;;  %v3133_v51 = vmul.f32 1.442695, %v3107_v46  ;;  %v3108_v45 = vsub.f32 %v8106_v33, %v8129_v11  ;;  %v3030_v8 = vmul.f32 %v9477_v59, %v2996_v53  ;;  %v9480_v33 = vld [vmem:[#allocation38_spill] sm:$0xff]  ;;  %v9482_v56 = vld [vmem:[#allocation28_spill] sm:$0xff] }
 0x34b   : > { %v8177_v24 = vpop.eup %4412  ;;  %v3150_v41 = vmul.f32 %v8157_v35, %v7980_v44  ;;  %4426 = vpow2.f32 %v3083_v30  ;;  %v3061_v15 = vsub.f32 %v9474_v42, %v8155_v43  ;;  %v3031_v47 = vmul.f32 %v9479_v10, %v2998_v20  ;;  %v3306_v59 = vpop.permute.xlu1 %3305  ;;  %v9483_v30 = vld [vmem:[#allocation59_spill] sm:$0xff] }
 0x34c   : > { %9478 = vst [vmem:[#allocation57_spill] sm:$0xff] %v8177_v24  ;;  %v8184_v60 = vpop.eup %4414  ;;  %4428 = vpow2.f32 %v3131_v32  ;;  %v3087_v1 = vmul.f32 1.442695, %v3060_v7  ;;  %v3109_v46 = vsub.f32 %v8122_v3, %v8155_v43  ;;  %v8189_v53 = vmax.f32 %v9480_v33, %v3030_v8  ;;  %v9484_v42 = vld [vmem:[#allocation63_spill] sm:$0xff]  ;;  %v3308_v10 = vpop.permute.xlu0 %3307 }
 0x34d   : > { %4430 = vpow2.f32 %v3085_v39  ;;  %v8192_v44 = vmax.f32 %v9482_v56, %v3031_v47  ;;  %v3032_v35 = vmul.f32 %v9483_v30, %v3000_v62  ;;  %v3177_v20 = vmul.f32 %v8070_v28, %v9484_v42  ;;  %v8197_v9 = vpop.eup %4416  ;;  %v9486_v30 = vld [vmem:[#allocation16_spill] sm:$0xff] }
 0x34e   : > { %9481 = vst [vmem:[#allocation77_spill] sm:$0xff] %v8189_v53  ;;  %9485 = vst [vmem:[#allocation36_spill] sm:$0xff] %v8197_v9  ;;  %v3151_v32 = vmul.f32 %v8177_v24, %v7983_v29  ;;  %4432 = vpow2.f32 %v3133_v51  ;;  %v3135_v3 = vmul.f32 1.442695, %v3108_v45  ;;  %v3062_v7 = vsub.f32 %v9480_v33, %v8189_v53 }
 0x34f   : > { %v3089_v39 = vmul.f32 1.442695, %v3061_v15  ;;  %v3110_v25 = vsub.f32 %v3030_v8, %v8189_v53  ;;  %v3063_v62 = vsub.f32 %v9482_v56, %v8192_v44  ;;  %v8207_v16 = vmax.f32 %v9486_v30, %v3032_v35  ;;  %v3310_v45 = vpop.permute.xlu1 %3309 }
 0x350   : > { %v8209_v28 = vpop.eup %4418  ;;  %v3137_v42 = vmul.f32 1.442695, %v3109_v46  ;;  %v3111_v43 = vsub.f32 %v3031_v47, %v8192_v44  ;;  %v3241_v29 = vmul.f32 %v8078_v2, %v3194_v26  ;;  %v3353_v51 = vmul.f32 %v7936_v21, %v3306_v59  ;;  %v3312_v24 = vpop.permute.xlu0 %3311 }
 0x351   : > { %v8214_v33 = vpop.eup %4420  ;;  %v8217_v8 = vadd.f32 %v8170_v57, %v3149_v5  ;;  %v8220_v56 = vadd.f32 %v8184_v60, %v3150_v41  ;;  %4434 = vpow2.f32 %v3087_v1  ;;  %v3091_v15 = vmul.f32 1.442695, %v3062_v7 }
 0x352   : > { %v8222_v53 = vpop.eup %4422  ;;  %4436 = vpow2.f32 %v3135_v3  ;;  %v3139_v47 = vmul.f32 1.442695, %v3110_v25  ;;  %v3064_v2 = vsub.f32 %v9486_v30, %v8207_v16  ;;  %v8226_v21 = vadd.f32 %v3241_v29, %v3177_v20 }
 0x353   : > { %v8228_v26 = vpop.eup %4424  ;;  %4438 = vpow2.f32 %v3089_v39  ;;  %v3093_v5 = vmul.f32 1.442695, %v3063_v62  ;;  %v3369_v46 = vmax.f32 %v7958_v34, %v3353_v51  ;;  %v3354_v41 = vmul.f32 %v7965_v0, %v3308_v10  ;;  %v3314_v3 = vpop.permute.xlu1 %3313 }
 0x354   : > { %9487 = vst [vmem:[#allocation45_spill] sm:$0xff] %v8226_v21  ;;  %v8233_v1 = vadd.f32 %v8197_v9, %v3151_v32  ;;  %4440 = vpow2.f32 %v3137_v42  ;;  %v3141_v59 = vmul.f32 1.442695, %v3111_v43  ;;  %v3112_v25 = vsub.f32 %v3032_v35, %v8207_v16  ;;  %v3316_v62 = vpop.permute.xlu0 %3315 }
 0x355   : > { %v8236_v7 = vpop.eup %4426  ;;  %4442 = vpow2.f32 %v3091_v15  ;;  %v3385_v20 = vsub.f32 %v7958_v34, %v3369_v46  ;;  %v3433_v30 = vsub.f32 %v3353_v51, %v3369_v46  ;;  %v3370_v39 = vmax.f32 %v7987_v63, %v3354_v41 }
 0x356   : > { %v8240_v29 = vpop.eup %4428  ;;  %v3152_v0 = vmul.f32 %v8209_v28, %v7996_v22  ;;  %4444 = vpow2.f32 %v3139_v47  ;;  %v3095_v10 = vmul.f32 1.442695, %v3064_v2  ;;  %v3355_v43 = vmul.f32 %v7976_v55, %v3310_v45 }
 0x357   : > { %v8245_v35 = vpop.eup %4430  ;;  %4446 = vpow2.f32 %v3093_v5  ;;  %v3401_v32 = vmul.f32 1.442695, %v3385_v20  ;;  %v3449_v42 = vmul.f32 1.442695, %v3433_v30  ;;  %v3386_v34 = vsub.f32 %v7987_v63, %v3370_v39  ;;  %v3318_v9 = vpop.permute.xlu1 %3317 }
 0x358   : > { %v8248_v51 = vpop.eup %4432  ;;  %4448 = vpow2.f32 %v3141_v59  ;;  %v3143_v15 = vmul.f32 1.442695, %v3112_v25  ;;  %v3434_v46 = vsub.f32 %v3354_v41, %v3370_v39  ;;  %v3371_v21 = vmax.f32 %v7993_v6, %v3355_v43  ;;  %v3320_v45 = vpop.permute.xlu0 %3319 }
 0x359   : > { %4450 = vpow2.f32 %v3401_v32  ;;  %v3403_v22 = vmul.f32 1.442695, %v3386_v34  ;;  %v3356_v47 = vmul.f32 %v8003_v27, %v3312_v24  ;;  %v3357_v55 = vmul.f32 %v8011_v18, %v3314_v3 }
 0x35a   : > { %v3153_v2 = vmul.f32 %v8222_v53, %v7999_v49  ;;  %4452 = vpow2.f32 %v3449_v42  ;;  %v3451_v63 = vmul.f32 1.442695, %v3434_v46  ;;  %v3387_v5 = vsub.f32 %v7993_v6, %v3371_v21 }
 0x35b   : > { %v8256_v59 = vpop.eup %4434  ;;  %4454 = vpow2.f32 %v3403_v22  ;;  %v3435_v41 = vsub.f32 %v3355_v43, %v3371_v21  ;;  %v3372_v25 = vmax.f32 %v8019_v54, %v3356_v47  ;;  %v3373_v20 = vmax.f32 %v8027_v4, %v3357_v55  ;;  %v3322_v24 = vpop.permute.xlu1 %3321 }
 0x35c   : > { %v8260_v30 = vpop.eup %4436  ;;  %v3154_v27 = vmul.f32 %v8236_v7, %v8015_v31  ;;  %4456 = vpow2.f32 %v3095_v10  ;;  %v3405_v18 = vmul.f32 1.442695, %v3387_v5  ;;  %v3358_v49 = vmul.f32 %v8034_v14, %v3316_v62  ;;  %v3324_v43 = vpop.permute.xlu0 %3323 }
 0x35d   : > { %v8265_v3 = vpop.eup %4438  ;;  %4458 = vpow2.f32 %v3143_v15  ;;  %v3453_v6 = vmul.f32 1.442695, %v3435_v41  ;;  %v3388_v21 = vsub.f32 %v8019_v54, %v3372_v25  ;;  %v3359_v39 = vmul.f32 %v8041_v36, %v3318_v9 }
 0x35e   : > { %v8269_v32 = vpop.eup %4440  ;;  %4460 = vpow2.f32 %v3405_v18  ;;  %v3436_v42 = vsub.f32 %v3356_v47, %v3372_v25  ;;  %v3389_v31 = vsub.f32 %v8027_v4, %v3373_v20  ;;  %v3374_v10 = vmax.f32 %v8046_v12, %v3358_v49 }
 0x35f   : > { %v8273_v34 = vpop.eup %4442  ;;  %v8276_v14 = vadd.f32 %v8214_v33, %v3152_v0  ;;  %4462 = vpow2.f32 %v3451_v63  ;;  %v3407_v62 = vmul.f32 1.442695, %v3388_v21  ;;  %v3437_v15 = vsub.f32 %v3357_v55, %v3373_v20  ;;  %v3326_v4 = vpop.permute.xlu1 %3325 }
 0x360   : > { %v8278_v54 = vpop.eup %4444  ;;  %v8281_v36 = vadd.f32 %v8228_v26, %v3153_v2  ;;  %4464 = vpow2.f32 %v3453_v6  ;;  %v3409_v9 = vmul.f32 1.442695, %v3389_v31  ;;  %v3390_v46 = vsub.f32 %v8046_v12, %v3374_v10  ;;  %v3328_v63 = vpop.permute.xlu0 %3327 }
 0x361   : > { %v8284_v22 = vpop.eup %4446  ;;  %v8287_v47 = vadd.f32 %v8240_v29, %v3154_v27  ;;  %v3155_v0 = vmul.f32 %v8245_v35, %v8024_v37  ;;  %4466 = vpow2.f32 %v3407_v62  ;;  %v3438_v55 = vsub.f32 %v3358_v49, %v3374_v10 }
 0x362   : > { %v8291_v5 = vpop.eup %4448  ;;  %v3455_v2 = vmul.f32 1.442695, %v3436_v42  ;;  %v3411_v41 = vmul.f32 1.442695, %v3390_v46  ;;  %v3375_v25 = vmax.f32 %v8049_v13, %v3359_v39  ;;  %v3360_v12 = vmul.f32 %v8054_v50, %v3320_v45 }
 0x363   : > { %v8295_v20 = vpop.eup %4450  ;;  %v3156_v27 = vmul.f32 %v8256_v59, %v8058_v58  ;;  %4468 = vpow2.f32 %v3409_v9  ;;  %v3457_v18 = vmul.f32 1.442695, %v3437_v15  ;;  %v3361_v37 = vmul.f32 %v8062_v61, %v3322_v24  ;;  %v3330_v10 = vpop.permute.xlu1 %3329  ;;  %v9491_v58 = vld [vmem:[#allocation60_spill] sm:$0xff]  ;;  %v9492_v15 = vld [vmem:[#allocation62_spill] sm:$0xff] }
 0x364   : > { %9488 = vst [vmem:[#allocation80_spill] sm:$0xff] %v8295_v20  ;;  %v8300_v6 = vpop.eup %4452  ;;  %v3481_v49 = vmul.f32 %v8295_v20, %v8094_v23  ;;  %v3459_v21 = vmul.f32 1.442695, %v3438_v55  ;;  %v3391_v42 = vsub.f32 %v8049_v13, %v3375_v25  ;;  %v3439_v31 = vsub.f32 %v3359_v39, %v3375_v25  ;;  %v8312_v61 = vpop.permute.xlu0 %3331 }
 0x365   : > { %9489 = vst [vmem:[#allocation41_spill] sm:$0xff] %v8300_v6  ;;  %v8305_v50 = vpop.eup %4454  ;;  %4470 = vpow2.f32 %v3411_v41  ;;  %v3376_v45 = vmax.f32 %v8068_v17, %v3360_v12  ;;  %v3377_v62 = vmax.f32 %v9491_v58, %v3361_v37  ;;  %v8310_v9 = vmul.f32 %v9492_v15, %v3324_v43 }
 0x366   : > { %9490 = vst [vmem:[#allocation84_spill] sm:$0xff] %v8305_v50  ;;  %v8314_v24 = vpop.eup %4456  ;;  %v3497_v23 = vadd.f32 %v8300_v6, %v3481_v49  ;;  %v3482_v13 = vmul.f32 %v8305_v50, %v8160_v19  ;;  %4472 = vpow2.f32 %v3455_v2  ;;  %v3413_v39 = vmul.f32 1.442695, %v3391_v42  ;;  %v9496_v19 = vld [vmem:[#allocation61_spill] sm:$0xff] }
 0x367   : > { %9493 = vst [vmem:[#allocation67_spill] sm:$0xff] %v8314_v24  ;;  %v8319_v46 = vpop.eup %4458  ;;  %4474 = vpow2.f32 %v3457_v18  ;;  %v3461_v55 = vmul.f32 1.442695, %v3439_v31  ;;  %v3392_v41 = vsub.f32 %v8068_v17, %v3376_v45  ;;  %v3393_v43 = vsub.f32 %v9491_v58, %v3377_v62  ;;  %v8333_v42 = vpop.permute.xlu1 %3333 }
 0x368   : > { %9494 = vst [vmem:[#allocation54_spill] sm:$0xff] %v8319_v46  ;;  %v8323_v25 = vpop.eup %4460  ;;  %v8326_v15 = vadd.f32 %v8248_v51, %v3155_v0  ;;  %v8329_v49 = vadd.f32 %v8260_v30, %v3156_v27  ;;  %4476 = vpow2.f32 %v3459_v21  ;;  %v3378_v2 = vmax.f32 %v9496_v19, %v8310_v9  ;;  %v8339_v50 = vpop.permute.xlu0 %3335  ;;  %v9497_v27 = vld [vmem:[#allocation7_spill] sm:$0xff] }
 0x369   : > { %9495 = vst [vmem:[#allocation44_spill] sm:$0xff] %v8323_v25  ;;  %v8335_v18 = vpop.eup %4462  ;;  %v3483_v17 = vmul.f32 %v8323_v25, %v8165_v40  ;;  %4478 = vpow2.f32 %v3413_v39  ;;  %v3415_v31 = vmul.f32 1.442695, %v3392_v41  ;;  %v3440_v58 = vsub.f32 %v3360_v12, %v3376_v45  ;;  %v4601_v39 = vld [vmem:[#allocation2 + $0xc1] sm:$0xff]  ;;  %v4602_v25 = vld [vmem:[#allocation2 + $0xc9] sm:$0xff] }
 0x36a   : > { %v8341_v0 = vpop.eup %4464  ;;  %v3157_v21 = vmul.f32 %v8265_v3, %v9497_v27  ;;  %4480 = vrcp.f32 %v3497_v23  ;;  %v3498_v6 = vadd.f32 %v8335_v18, %v3482_v13  ;;  %v3441_v20 = vsub.f32 %v3361_v37, %v3377_v62 }
 0x36b   : > { %v8346_v46 = vpop.eup %4466  ;;  %4482 = vpow2.f32 %v3461_v55  ;;  %v3417_v24 = vmul.f32 1.442695, %v3393_v43  ;;  %v3394_v40 = vsub.f32 %v9496_v19, %v3378_v2  ;;  %v3363_v41 = vmul.f32 %v4601_v39, %v3326_v4  ;;  %v8354_v23 = vpop.permute.xlu1 %3195  ;;  %v4603_v4 = vld [vmem:[#allocation2 + $0xe1] sm:$0xff] }
 0x36c   : > { %v3158_v12 = vmul.f32 %v8273_v34, %v8142_v52  ;;  %v3499_v45 = vadd.f32 %v8341_v0, %v3483_v17  ;;  %4484 = vpow2.f32 %v3415_v31  ;;  %v8352_v27 = vmul.f32 %v4602_v25, %v3328_v63  ;;  %v8363_v52 = vpop.permute.xlu0 %3197 }
 0x36d   : > { %v8356_v37 = vpop.eup %4468  ;;  %v3484_v62 = vmul.f32 %v8346_v46, %v8168_v48  ;;  %v3463_v13 = vmul.f32 1.442695, %v3440_v58  ;;  %v3379_v55 = vmax.f32 %v8119_v38, %v3363_v41  ;;  %v8361_v43 = vmul.f32 %v4603_v4, %v3330_v10 }
 0x36e   : > { %9498 = vst [vmem:[#allocation72_spill] sm:$0xff] %v8356_v37  ;;  %4486 = vrcp.f32 %v3498_v6  ;;  %v3485_v63 = vmul.f32 %v8356_v37, %v8217_v8  ;;  %v3465_v25 = vmul.f32 1.442695, %v3441_v20  ;;  %v3442_v19 = vsub.f32 %v8310_v9, %v3378_v2 }
 0x36f   : > { %v8368_v17 = vpop.eup %4470  ;;  %v8371_v31 = vadd.f32 %v8269_v32, %v3157_v21  ;;  %4488 = vpow2.f32 %v3417_v24  ;;  %v3419_v48 = vmul.f32 1.442695, %v3394_v40  ;;  %v3380_v10 = vmax.f32 %v8129_v11, %v8352_v27  ;;  %v8383_v9 = vpop.permute.xlu1 %3199  ;;  %v9504_v40 = vld [vmem:[#allocation11_spill] sm:$0xff] }
 0x370   : > { %9499 = vst [vmem:[#allocation75_spill] sm:$0xff] %v8368_v17  ;;  %v8375_v58 = vpop.eup %4472  ;;  %v8378_v6 = vadd.f32 %v8278_v54, %v3158_v12  ;;  %4490 = vrcp.f32 %v3499_v45  ;;  %v3486_v8 = vmul.f32 %v8368_v17, %v8220_v56  ;;  %v3395_v20 = vsub.f32 %v8119_v38, %v3379_v55  ;;  %v8390_v4 = vpop.permute.xlu0 %3201  ;;  %v9506_v45 = vld [vmem:[#allocation48_spill] sm:$0xff] }
 0x371   : > { %9500 = vst [vmem:[#allocation13_spill] sm:$0xff] %v8371_v31  ;;  %9501 = vst [vmem:[#allocation88_spill] sm:$0xff] %v8375_v58  ;;  %v8385_v2 = vpop.eup %4474  ;;  %v3500_v24 = vadd.f32 %v8375_v58, %v3484_v62  ;;  %4492 = vpow2.f32 %v3463_v13  ;;  %v3443_v21 = vsub.f32 %v3363_v41, %v3379_v55  ;;  %v3381_v39 = vmax.f32 %v9504_v40, %v8361_v43  ;;  %v4604_v13 = vld [vmem:[#allocation2 + $0xe9] sm:$0xff] }
 0x372   : > { %9502 = vst [vmem:[#allocation22_spill] sm:$0xff] %v8378_v6  ;;  %9503 = vst [vmem:[#allocation91_spill] sm:$0xff] %v8385_v2  ;;  %v8392_v12 = vpop.eup %4476  ;;  %v3159_v56 = vmul.f32 %v8284_v22, %v9506_v45  ;;  %v3501_v38 = vadd.f32 %v8385_v2, %v3485_v63  ;;  %4494 = vpow2.f32 %v3465_v25  ;;  %v3467_v6 = vmul.f32 1.442695, %v3442_v19  ;;  %v4605_v25 = vld [vmem:[#allocation2 + $0x101] sm:$0xff] }
 0x373   : > { %9505 = vst [vmem:[#allocation78_spill] sm:$0xff] %v8392_v12  ;;  %v8397_v17 = vpop.eup %4478  ;;  %v3502_v62 = vadd.f32 %v8392_v12, %v3486_v8  ;;  %4496 = vpow2.f32 %v3419_v48  ;;  %v3396_v41 = vsub.f32 %v8129_v11, %v3380_v10  ;;  %v3366_v55 = vmul.f32 %v4604_v13, %v8312_v61  ;;  %v8408_v2 = vpop.permute.xlu1 %3203  ;;  %v9510_v61 = vld [vmem:[#allocation77_spill] sm:$0xff] }
 0x374   : > { %9507 = vst [vmem:[#allocation12_spill] sm:$0xff] %v8397_v17  ;;  %v8402_v58 = vpop.eup %4480  ;;  %v3487_v31 = vmul.f32 %v8397_v17, %v8233_v1  ;;  %v3421_v45 = vmul.f32 1.442695, %v3395_v20  ;;  %v3444_v63 = vsub.f32 %v8352_v27, %v3380_v10  ;;  %v3367_v19 = vmul.f32 %v4605_v25, %v8333_v42  ;;  %v8414_v12 = vpop.permute.xlu0 %3205  ;;  %v9512_v42 = vld [vmem:[#allocation9_spill] sm:$0xff] }
 0x375   : > { %9508 = vst [vmem:[#allocation53_spill] sm:$0xff] %v8402_v58  ;;  %v8410_v8 = vpop.eup %4482  ;;  %4498 = vrcp.f32 %v3500_v24  ;;  %v3469_v11 = vmul.f32 1.442695, %v3443_v21  ;;  %v3397_v48 = vsub.f32 %v9504_v40, %v3381_v39  ;;  %v3382_v13 = vmax.f32 %v9510_v61, %v3366_v55  ;;  %v9513_v10 = vld [vmem:[#allocation65_spill] sm:$0xff] }
 0x376   : > { %9509 = vst [vmem:[#allocation69_spill] sm:$0xff] %v8410_v8  ;;  %v8416_v58 = vpop.eup %4484  ;;  %4500 = vrcp.f32 %v3501_v38  ;;  %v3445_v1 = vsub.f32 %v8361_v43, %v3381_v39  ;;  %v3383_v27 = vmax.f32 %v8192_v44, %v3367_v19  ;;  %v3178_v20 = vmul.f32 %v9513_v10, %v9512_v42  ;;  %v4606_v21 = vld [vmem:[#allocation2 + $0x109] sm:$0xff] }
 0x377   : > { %9511 = vst [vmem:[#allocation82_spill] sm:$0xff] %v8416_v58  ;;  %v8423_v25 = vadd.f32 %v8291_v5, %v3159_v56  ;;  %4502 = vrcp.f32 %v3502_v62  ;;  %v3503_v24 = vadd.f32 %v8410_v8, %v3487_v31  ;;  %v8427_v40 = vmul.f32 %v4606_v21, %v8339_v50  ;;  %v3208_v37 = vpop.permute.xlu1 %3207 }
 0x378   : > { %v8429_v17 = vpop.eup %4486  ;;  %v3488_v43 = vmul.f32 %v8416_v58, %v8276_v14  ;;  %4504 = vpow2.f32 %v3421_v45  ;;  %v3423_v39 = vmul.f32 1.442695, %v3396_v41  ;;  %v3471_v38 = vmul.f32 1.442695, %v3444_v63  ;;  %v8436_v10 = vpop.permute.xlu0 %3209  ;;  %v9523_v58 = vld [vmem:[#allocation73_spill] sm:$0xff] }
 0x379   : > { %9514 = vst [vmem:[#allocation86_spill] sm:$0xff] %v8423_v25  ;;  %v8433_v42 = vpop.eup %4488  ;;  %4506 = vpow2.f32 %v3467_v6  ;;  %v3425_v56 = vmul.f32 1.442695, %v3397_v48  ;;  %v3398_v62 = vsub.f32 %v9510_v61, %v3382_v13  ;;  %v3446_v31 = vsub.f32 %v3366_v55, %v3382_v13  ;;  %v9517_v55 = vld [vmem:[#allocation37_spill] sm:$0xff] }
 0x37a   : > { %9515 = vst [vmem:[#allocation10_spill] sm:$0xff] %v8433_v42  ;;  %v8438_v50 = vpop.eup %4490  ;;  %4508 = vpow2.f32 %v3469_v11  ;;  %v3473_v21 = vmul.f32 1.442695, %v3445_v1  ;;  %v3399_v14 = vsub.f32 %v8192_v44, %v3383_v27  ;;  %v3447_v45 = vsub.f32 %v3367_v19, %v3383_v27  ;;  %v9518_v44 = vld [vmem:[#allocation51_spill] sm:$0xff]  ;;  %v9519_v19 = vld [vmem:[#allocation52_spill] sm:$0xff]  ;;  %v9520_v1 = vld [vmem:[#allocation58_spill] sm:$0xff] }
 0x37b   : > { %v8441_v41 = vpop.eup %4492  ;;  %4510 = vrcp.f32 %v3503_v24  ;;  %v3489_v6 = vmul.f32 %v8433_v42, %v8281_v36  ;;  %v8447_v63 = vmax.f32 %v8207_v16, %v8427_v40  ;;  %v3242_v48 = vmul.f32 %v9517_v55, %v8354_v23  ;;  %v3212_v24 = vpop.permute.xlu1 %3211 }
 0x37c   : > { %9516 = vst [vmem:[#allocation74_spill] sm:$0xff] %v8441_v41  ;;  %v8451_v61 = vpop.eup %4494  ;;  %v3504_v11 = vadd.f32 %v8441_v41, %v3488_v43  ;;  %4512 = vpow2.f32 %v3423_v39  ;;  %v3179_v13 = vmul.f32 %v9519_v19, %v9518_v44  ;;  %v3243_v27 = vmul.f32 %v9520_v1, %v8363_v52  ;;  %v3214_v55 = vpop.permute.xlu0 %3213  ;;  %v9521_v44 = vld [vmem:[#allocation50_spill] sm:$0xff] }
 0x37d   : > { %v8459_v36 = vpop.eup %4496  ;;  %4514 = vpow2.f32 %v3471_v38  ;;  %v3427_v25 = vmul.f32 1.442695, %v3398_v62  ;;  %v3475_v8 = vmul.f32 1.442695, %v3446_v31  ;;  %v8461_v23 = vadd.f32 %v3242_v48, %v3178_v20  ;;  %v9522_v19 = vld [vmem:[#allocation26_spill] sm:$0xff]  ;;  %v9524_v62 = vld [vmem:[#allocation24_spill] sm:$0xff] }
 0x37e   : > { %v3429_v42 = vmul.f32 1.442695, %v3399_v14  ;;  %v8463_v43 = vmul.f32 1.442695, %v3447_v45  ;;  %v8465_v39 = vadd.f32 %v3243_v27, %v3179_v13  ;;  %v3180_v41 = vmul.f32 %v9522_v19, %v9521_v44  ;;  %v9525_v31 = vld [vmem:[#allocation15_spill] sm:$0xff]  ;;  %v9528_v13 = vld [vmem:[#allocation66_spill] sm:$0xff] }
 0x37f   : > { %v8469_v52 = vpop.eup %4498  ;;  %v3505_v1 = vadd.f32 %v8451_v61, %v3489_v6  ;;  %v3244_v38 = vmul.f32 %v9523_v58, %v8383_v9  ;;  %v3181_v20 = vmul.f32 %v9525_v31, %v9524_v62  ;;  %v3245_v14 = vmul.f32 %v8170_v57, %v8390_v4  ;;  %v9527_v48 = vld [vmem:[#allocation39_spill] sm:$0xff]  ;;  %v3216_v27 = vpop.permute.xlu1 %3215 }
 0x380   : > { %v8484_v45 = vpop.eup %4500  ;;  %4516 = vrcp.f32 %v3504_v11  ;;  %v3490_v6 = vmul.f32 %v8459_v36, %v8287_v47  ;;  %v3182_v58 = vmul.f32 %v9528_v13, %v9527_v48  ;;  %v3246_v9 = vmul.f32 %v8184_v60, %v8408_v2  ;;  %v3218_v47 = vpop.permute.xlu0 %3217  ;;  %v9529_v60 = vld [vmem:[#allocation4_spill] sm:$0xff]  ;;  %v9530_v2 = vld [vmem:[#allocation57_spill] sm:$0xff] }
 0x381   : > { %v8492_v44 = vpop.eup %4502  ;;  %4518 = vpow2.f32 %v3425_v56  ;;  %v3400_v57 = vsub.f32 %v8207_v16, %v8447_v63  ;;  %v8496_v4 = vadd.f32 %v3244_v38, %v3180_v41  ;;  %v8498_v11 = vadd.f32 %v3245_v14, %v3181_v20  ;;  %v9531_v48 = vld [vmem:[#allocation36_spill] sm:$0xff]  ;;  %v9532_v41 = vld [vmem:[#allocation42_spill] sm:$0xff] }
 0x382   : > { %v8500_v19 = vpop.eup %4504  ;;  %4520 = vpow2.f32 %v3473_v21  ;;  %v8502_v62 = vadd.f32 %v3246_v9, %v3182_v58  ;;  %v3183_v31 = vmul.f32 %v9530_v2, %v9529_v60  ;;  %v3247_v13 = vmul.f32 %v9531_v48, %v8414_v12 }
 0x383   : > { %v8508_v56 = vpop.eup %4506  ;;  %4522 = vrcp.f32 %v3505_v1  ;;  %v3448_v16 = vsub.f32 %v8427_v40, %v8447_v63  ;;  %v3184_v38 = vmul.f32 %v8209_v28, %v9532_v41  ;;  %v3248_v20 = vmul.f32 %v8214_v33, %v3208_v37  ;;  %v9533_v1 = vld [vmem:[#allocation17_spill] sm:$0xff]  ;;  %v3220_v40 = vpop.permute.xlu1 %3219 }
 0x384   : > { %v8521_v21 = vpop.eup %4508  ;;  %v3506_v14 = vadd.f32 %v8508_v56, %v3490_v6  ;;  %4524 = vpow2.f32 %v3427_v25  ;;  %v8524_v12 = vadd.f32 %v3247_v13, %v3183_v31  ;;  %v3185_v58 = vmul.f32 %v8222_v53, %v9533_v1  ;;  %v9534_v6 = vld [vmem:[#allocation64_spill] sm:$0xff]  ;;  %v3222_v9 = vpop.permute.xlu0 %3221  ;;  %v9535_v31 = vld [vmem:[#allocation30_spill] sm:$0xff] }
 0x385   : > { %v8528_v63 = vpop.eup %4510  ;;  %v3491_v28 = vmul.f32 %v8500_v19, %v8326_v15  ;;  %v8532_v33 = vadd.f32 %v3248_v20, %v3184_v38  ;;  %v3249_v37 = vmul.f32 %v8228_v26, %v8436_v10  ;;  %v3186_v25 = vmul.f32 %v8236_v7, %v9534_v6  ;;  %v9536_v10 = vld [vmem:[#allocation31_spill] sm:$0xff]  ;;  %v9542_v6 = vld [vmem:[#allocation54_spill] sm:$0xff] }
 0x386   : > { %v8538_v60 = vpop.eup %4512  ;;  %4526 = vpow2.f32 %v3475_v8  ;;  %v3431_v53 = vmul.f32 1.442695, %v3400_v57  ;;  %v3250_v2 = vmul.f32 %v8240_v29, %v3212_v24  ;;  %v3187_v48 = vmul.f32 %v8245_v35, %v9535_v31  ;;  %v9537_v24 = vld [vmem:[#allocation43_spill] sm:$0xff] }
 0x387   : > { %v8543_v15 = vpop.eup %4514  ;;  %4528 = vpow2.f32 %v3429_v42  ;;  %v8545_v13 = vadd.f32 %v3249_v37, %v3185_v58  ;;  %v3251_v26 = vmul.f32 %v8248_v51, %v3214_v55  ;;  %v3188_v7 = vmul.f32 %v8256_v59, %v9536_v10  ;;  %v3224_v57 = vpop.permute.xlu1 %3223  ;;  %v9538_v55 = vld [vmem:[#allocation35_spill] sm:$0xff]  ;;  %v9545_v10 = vld [vmem:[#allocation41_spill] sm:$0xff] }
 0x388   : > { %4530 = vrcp.f32 %v3506_v14  ;;  %v8552_v8 = vadd.f32 %v3250_v2, %v3186_v25  ;;  %v3252_v29 = vmul.f32 %v8260_v30, %v3216_v27  ;;  %v3189_v35 = vmul.f32 %v8265_v3, %v9537_v24  ;;  %v3530_v38 = vpop.permute.xlu0 %3529  ;;  %v9539_v27 = vld [vmem:[#allocation46_spill] sm:$0xff]  ;;  %v9540_v58 = vld [vmem:[#allocation23_spill] sm:$0xff] }
 0x389   : > { %v3507_v42 = vadd.f32 %v8521_v21, %v3491_v28  ;;  %v8558_v41 = vadd.f32 %v3251_v26, %v3187_v48  ;;  %v3253_v51 = vmul.f32 %v8269_v32, %v3218_v47  ;;  %v3190_v59 = vmul.f32 %v8273_v34, %v9538_v55  ;;  %v9541_v28 = vld [vmem:[#allocation67_spill] sm:$0xff]  ;;  %v9543_v48 = vld [vmem:[#allocation45_spill] sm:$0xff] }
 0x38a   : > { %v8563_v20 = vpop.eup %4516  ;;  %4532 = vpow2.f32 %v8463_v43  ;;  %v8566_v30 = vadd.f32 %v3252_v29, %v3188_v7  ;;  %v3254_v3 = vmul.f32 %v8278_v54, %v3220_v40  ;;  %v3191_v14 = vmul.f32 %v8284_v22, %v9539_v27 }
 0x38b   : > { %v4519_v1 = vpop.eup %4518  ;;  %v3492_v32 = vmul.f32 %v8538_v60, %v8329_v49  ;;  %v3269_v34 = vadd.f32 %v3253_v51, %v3189_v35  ;;  %v3255_v47 = vmul.f32 %v8291_v5, %v3222_v9  ;;  %v3192_v43 = vmul.f32 %v9541_v28, %v9540_v58  ;;  %v3532_v25 = vpop.permute.xlu1 %3531  ;;  %v9544_v49 = vld [vmem:[#allocation80_spill] sm:$0xff]  ;;  %v9551_v58 = vld [vmem:[#allocation53_spill] sm:$0xff] }
 0x38c   : > { %v8578_v37 = vpop.eup %4520  ;;  %4534 = vpow2.f32 %v3431_v53  ;;  %v3479_v54 = vmul.f32 1.442695, %v3448_v16  ;;  %v3270_v40 = vadd.f32 %v3254_v3, %v3190_v59  ;;  %v3256_v22 = vmul.f32 %v9542_v6, %v3224_v57  ;;  %v9546_v9 = vld [vmem:[#allocation84_spill] sm:$0xff]  ;;  %v3534_v29 = vpop.permute.xlu0 %3533  ;;  %v9547_v53 = vld [vmem:[#allocation94_spill] sm:$0xff] }
 0x38d   : > { %v8581_v2 = vpop.eup %4522  ;;  %v3271_v31 = vadd.f32 %v3255_v47, %v3191_v14  ;;  %v3513_v26 = vmul.f32 %v9544_v49, %v9543_v48  ;;  %v3577_v5 = vmul.f32 %v9545_v10, %v3530_v38  ;;  %v3514_v7 = vmul.f32 %v9546_v9, %v8461_v23  ;;  %v9548_v59 = vld [vmem:[#allocation44_spill] sm:$0xff]  ;;  %v9550_v47 = vld [vmem:[#allocation13_spill] sm:$0xff]  ;;  %v9556_v9 = vld [vmem:[#allocation22_spill] sm:$0xff] }
 0x38e   : > { %v4525_v24 = vpop.eup %4524  ;;  %v3160_v16 = vmul.f32 %v9541_v28, %v9547_v53  ;;  %4536 = vrcp.f32 %v3507_v42  ;;  %v3272_v35 = vadd.f32 %v3256_v22, %v3192_v43  ;;  %v3578_v57 = vmul.f32 %v8335_v18, %v3532_v25  ;;  %v9549_v14 = vld [vmem:[#allocation72_spill] sm:$0xff] }
 0x38f   : > { %v3508_v51 = vadd.f32 %v8543_v15, %v3492_v32  ;;  %v3593_v55 = vadd.f32 %v3577_v5, %v3513_v26  ;;  %v3515_v3 = vmul.f32 %v9548_v59, %v8465_v39  ;;  %v3579_v38 = vmul.f32 %v8341_v0, %v3534_v29  ;;  %v3536_v42 = vpop.permute.xlu1 %3535  ;;  %v9553_v26 = vld [vmem:[#allocation91_spill] sm:$0xff]  ;;  %v9555_v10 = vld [vmem:[#allocation12_spill] sm:$0xff] }
 0x390   : > { %v8596_v27 = vpop.eup %4526  ;;  %4538 = vpow2.f32 %v3479_v54  ;;  %v3594_v23 = vadd.f32 %v3578_v57, %v3514_v7  ;;  %v3516_v18 = vmul.f32 %v8346_v46, %v8496_v4  ;;  %v3517_v32 = vmul.f32 %v9549_v14, %v8498_v11  ;;  %v9552_v54 = vld [vmem:[#allocation88_spill] sm:$0xff]  ;;  %v3538_v25 = vpop.permute.xlu0 %3537  ;;  %v9554_v4 = vld [vmem:[#allocation75_spill] sm:$0xff]  ;;  %v9557_v57 = vld [vmem:[#allocation82_spill] sm:$0xff] }
 0x391   : > { %v4529_v39 = vpop.eup %4528  ;;  %v3493_v0 = vmul.f32 %v4519_v1, %v9550_v47  ;;  %v3625_v28 = vmul.f32 %v9551_v58, %v3593_v55  ;;  %v3595_v43 = vadd.f32 %v3579_v38, %v3515_v3  ;;  %v3580_v22 = vmul.f32 %v9552_v54, %v3536_v42  ;;  %v9560_v58 = vld [vmem:[#allocation69_spill] sm:$0xff] }
 0x392   : > { %v8610_v48 = vpop.eup %4530  ;;  %v3626_v49 = vmul.f32 %v8429_v17, %v3594_v23  ;;  %v3581_v46 = vmul.f32 %v9553_v26, %v3538_v25  ;;  %v3518_v11 = vmul.f32 %v9554_v4, %v8502_v62  ;;  %v3519_v5 = vmul.f32 %v9555_v10, %v8524_v12  ;;  %v9558_v62 = vld [vmem:[#allocation10_spill] sm:$0xff] }
 0x393   : > { %v3494_v7 = vmul.f32 %v4525_v24, %v9556_v9  ;;  %3642 = vst.msk [vmem:[%s8601_s21] sm:$0xff] %vm3641_vm3, %v3625_v28  ;;  %v3627_v29 = vmul.f32 %v8438_v50, %v3595_v43  ;;  %v3596_v53 = vadd.f32 %v3580_v22, %v3516_v18  ;;  %v3520_v55 = vmul.f32 %v9557_v57, %v8532_v33  ;;  %v9559_v23 = vld [vmem:[#allocation78_spill] sm:$0xff] }
 0x394   : > { %v8624_v17 = vpop.eup %4532  ;;  %3643 = vst.msk [vmem:[%s8601_s21 + $0x8] sm:$0xff] %vm3641_vm3, %v3626_v49  ;;  %v3597_v59 = vadd.f32 %v3581_v46, %v3517_v32  ;;  %v3540_v3 = vpop.permute.xlu1 %3539  ;;  %v3521_v38 = vmul.f32 %v9558_v62, %v8545_v13  ;;  %v3522_v12 = vmul.f32 %v8459_v36, %v8552_v8  ;;  %v3523_v50 = vmul.f32 %v8500_v19, %v8558_v41  ;;  %v9561_v41 = vld [vmem:[#allocation86_spill] sm:$0xff] }
 0x395   : > { %3644 = vst.msk [vmem:[%s8601_s21 + $0x10] sm:$0xff] %vm3641_vm3, %v3627_v29  ;;  %v3628_v33 = vmul.f32 %v8469_v52, %v3596_v53  ;;  %v3582_v42 = vmul.f32 %v9559_v23, %v3540_v3  ;;  %v3542_v18 = vpop.permute.xlu0 %3541  ;;  %v3524_v14 = vmul.f32 %v8538_v60, %v8566_v30  ;;  %v3525_v32 = vmul.f32 %v4519_v1, %v3269_v34  ;;  %v9562_v34 = vld [vmem:[#allocation74_spill] sm:$0xff] }
 0x396   : > { %v4535_v13 = vpop.eup %4534  ;;  %v3629_v47 = vmul.f32 %v8484_v45, %v3597_v59  ;;  %v3583_v36 = vmul.f32 %v9560_v58, %v3542_v18  ;;  %v3526_v8 = vmul.f32 %v4525_v24, %v3270_v40  ;;  %v3527_v28 = vmul.f32 %v4529_v39, %v3271_v31 }
 0x397   : > { %v3509_v19 = vadd.f32 %v8578_v37, %v3493_v0  ;;  %v3495_v43 = vmul.f32 %v4529_v39, %v9561_v41  ;;  %3645 = vst.msk [vmem:[%s8601_s21 + $0x18] sm:$0xff] %vm3641_vm3, %v3628_v33  ;;  %v3598_v52 = vadd.f32 %v3582_v42, %v3518_v11  ;;  %v8646_v54 = vmul.f32 %v4535_v13, %v3272_v35 }
 0x398   : > { %v4537_v22 = vpop.eup %4536  ;;  %v3176_v60 = vadd.f32 %v9542_v6, %v3160_v16  ;;  %3646 = vst.msk [vmem:[%s8601_s21 + $0x20] sm:$0xff] %vm3641_vm3, %v3629_v47  ;;  %v3599_v45 = vadd.f32 %v3583_v36, %v3519_v5  ;;  %v3544_v30 = vpop.permute.xlu1 %3543  ;;  %4540 = vrcp.f32 %v3508_v51  ;;  %v3510_v39 = vadd.f32 %v8596_v27, %v3494_v7 }
 0x399   : > { %v3630_v1 = vmul.f32 %v8492_v44, %v3598_v52  ;;  %v3584_v40 = vmul.f32 %v9562_v34, %v3544_v30  ;;  %4542 = vrcp.f32 %v3509_v19  ;;  %v3511_v6 = vadd.f32 %v8624_v17, %v3495_v43 }
 0x39a   : > { %v4539_v24 = vpop.eup %4538  ;;  %v3496_v35 = vmul.f32 %v4535_v13, %v3176_v60  ;;  %v3631_v0 = vmul.f32 %v8528_v63, %v3599_v45  ;;  %4544 = vrcp.f32 %v3510_v39 }
 0x39b   : > { %v3546_v31 = vpop.permute.xlu0 %3545  ;;  %3647 = vst.msk [vmem:[%s8601_s21 + $0x28] sm:$0xff] %vm3641_vm3, %v3630_v1  ;;  %v3600_v16 = vadd.f32 %v3584_v40, %v3520_v55  ;;  %4546 = vrcp.f32 %v3511_v6 }
 0x39c   : > { %v3585_v25 = vmul.f32 %v8451_v61, %v3546_v31  ;;  %3648 = vst.msk [vmem:[%s8601_s21 + $0x30] sm:$0xff] %vm3641_vm3, %v3631_v0  ;;  %v3548_v51 = vpop.permute.xlu1 %3547  ;;  %v3512_v63 = vadd.f32 %v4539_v24, %v3496_v35 }
 0x39d   : > { %v3632_v49 = vmul.f32 %v8563_v20, %v3600_v16  ;;  %v3586_v26 = vmul.f32 %v8508_v56, %v3548_v51 }
 0x39e   : > { %v3601_v44 = vadd.f32 %v3585_v25, %v3521_v38  ;;  %4548 = vrcp.f32 %v3512_v63 }
 0x39f   : > { %v3550_v46 = vpop.permute.xlu0 %3549  ;;  %3649 = vst.msk [vmem:[%s8601_s21 + $0x38] sm:$0xff] %vm3641_vm3, %v3632_v49  ;;  %v3602_v11 = vadd.f32 %v3586_v26, %v3522_v12 }
 0x3a0   : > { %v3633_v61 = vmul.f32 %v8581_v2, %v3601_v44  ;;  %v3587_v4 = vmul.f32 %v8521_v21, %v3550_v46  ;;  %v3552_v5 = vpop.permute.xlu1 %3551 }
 0x3a1   : > { %v3634_v20 = vmul.f32 %v8610_v48, %v3602_v11  ;;  %v3588_v56 = vmul.f32 %v8543_v15, %v3552_v5 }
 0x3a2   : > { %3650 = vst.msk [vmem:[%s8601_s21 + $0x40] sm:$0xff] %vm3641_vm3, %v3633_v61  ;;  %v3603_v10 = vadd.f32 %v3587_v4, %v3523_v50  ;;  %v4541_v21 = vpop.eup %4540 }
 0x3a3   : > { %v3554_v9 = vpop.permute.xlu0 %3553  ;;  %3651 = vst.msk [vmem:[%s8601_s21 + $0x48] sm:$0xff] %vm3641_vm3, %v3634_v20  ;;  %v3604_v29 = vadd.f32 %v3588_v56, %v3524_v14  ;;  %v4543_v55 = vpop.eup %4542 }
 0x3a4   : > { %v3635_v7 = vmul.f32 %v4537_v22, %v3603_v10  ;;  %v3589_v2 = vmul.f32 %v8578_v37, %v3554_v9  ;;  %v3556_v57 = vpop.permute.xlu1 %3555  ;;  %v4545_v38 = vpop.eup %4544 }
 0x3a5   : > { %v3636_v48 = vmul.f32 %v4541_v21, %v3604_v29  ;;  %v3590_v15 = vmul.f32 %v8596_v27, %v3556_v57  ;;  %v4547_v33 = vpop.eup %4546 }
 0x3a6   : > { %3652 = vst.msk [vmem:[%s8601_s21 + $0x50] sm:$0xff] %vm3641_vm3, %v3635_v7  ;;  %v3605_v53 = vadd.f32 %v3589_v2, %v3525_v32 }
 0x3a7   : > { %v3558_v59 = vpop.permute.xlu0 %3557  ;;  %3653 = vst.msk [vmem:[%s8601_s21 + $0x58] sm:$0xff] %vm3641_vm3, %v3636_v48  ;;  %v3606_v37 = vadd.f32 %v3590_v15, %v3526_v8 }
 0x3a8   : > { %v3637_v3 = vmul.f32 %v4543_v55, %v3605_v53  ;;  %v3591_v62 = vmul.f32 %v8624_v17, %v3558_v59  ;;  %v3560_v50 = vpop.permute.xlu1 %3559  ;;  %v4549_v14 = vpop.eup %4548 }
 0x3a9   : > { %v3638_v23 = vmul.f32 %v4545_v38, %v3606_v37  ;;  %v3592_v42 = vmul.f32 %v4539_v24, %v3560_v50 }
 0x3aa   : > { %3654 = vst.msk [vmem:[%s8601_s21 + $0x60] sm:$0xff] %vm3641_vm3, %v3637_v3  ;;  %v3607_v12 = vadd.f32 %v3591_v62, %v3527_v28 }
 0x3ab   : > { %3655 = vst.msk [vmem:[%s8601_s21 + $0x68] sm:$0xff] %vm3641_vm3, %v3638_v23  ;;  %v3608_v27 = vadd.f32 %v3592_v42, %v8646_v54 }
 0x3ac   : > { %v3639_v18 = vmul.f32 %v4547_v33, %v3607_v12 }
 0x3ad   : > { %v3640_v17 = vmul.f32 %v4549_v14, %v3608_v27 }
 0x3ae   : > { %3656 = vst.msk [vmem:[%s8601_s21 + $0x70] sm:$0xff] %vm3641_vm3, %v3639_v18 }
 0x3af   : > { %3657 = vst.msk [vmem:[%s8601_s21 + $0x78] sm:$0xff] %vm3641_vm3, %v3640_v17 }
 0x3b0 PF: > { %s12_s13 = sadd.s32 1, %s4645_s13   ;;  %s9563_s9 = smov %s4637_s11 }
 0x3b1   : > { %p9_p7 = scmp.ge.s32.totalorder %s12_s13, 6   ;;  %s9564_s10 = smov %s4641_s12 }
 0x3b2   : > { %s9565_s11 = smov %s9568_s14  ;;  %s9566_s12 = smov %s9572_s15 }
 0x3b3   :  { %11 = sbr.rel (!%p9_p7) target bundleno = 3 (0x3), region = 61 }

</bundles_post_ra>
